<compile_context>
chip_gen: v7x
topology: tpu7x:2x2x1
jax: 0.10.0
libtpu: 0.0.40
codegen_flags: <defaults>
</compile_context>

<pallas_src>
import functools
from collections import OrderedDict

import jax
import jax.numpy as jnp
from jax.experimental import pallas as pl
from jax.experimental.pallas import tpu as pltpu

# ----------------------------- small config ---------------------------------
B = 2            # images
NUM_TEXT = 2     # text queries per image
SEQ = 8          # text sequence length
VOCAB = 64
D_TEXT = 32
D_VISION = 32
N_HEADS = 4
N_LAYERS = 2
PROJ = 16        # projection dim (class-embedding space)
IMG = 32         # image height/width
PATCH = 16       # patch size -> 2x2 = 4 patches
C = 3            # image channels
EPS = 1e-5


def _const_spec(arr):
    """Whole-array BlockSpec with a constant index map (weights shared over the grid)."""
    nd = arr.ndim
    return pl.BlockSpec(arr.shape, lambda *_: (0,) * nd)


def _ln(x, g_ref, b_ref, eps):
    mu = jnp.mean(x, axis=-1, keepdims=True)
    var = jnp.mean((x - mu) * (x - mu), axis=-1, keepdims=True)
    return (x - mu) * jax.lax.rsqrt(var + eps) * g_ref[...] + b_ref[...]


# ----------------------------- fused encoder layer ---------------------------
def _encoder_layer_kernel(h_ref, mask_ref,
                          ln1_g, ln1_b, qkv_w, qkv_b, o_w, o_b,
                          ln2_g, ln2_b, fc1_w, fc1_b, fc2_w, fc2_b,
                          o_ref, *, num_heads, eps):
    h = h_ref[0].astype(jnp.float32)            # (S, D)
    mask = mask_ref[0]                          # (S, S) additive
    S, D = h.shape
    Dh = D // num_heads
    scale = 1.0 / (Dh ** 0.5)

    # ---- self-attention block ----
    x = _ln(h, ln1_g, ln1_b, eps)
    qkv = jnp.dot(x, qkv_w[...], preferred_element_type=jnp.float32) + qkv_b[...]   # (S, 3D)
    q = qkv[:, 0:D]
    k = qkv[:, D:2 * D]
    v = qkv[:, 2 * D:3 * D]

    heads = []
    for hh in range(num_heads):                 # static unroll, all inside one kernel
        lo, hi = hh * Dh, (hh + 1) * Dh
        qh = q[:, lo:hi] * scale
        kh = k[:, lo:hi]
        vh = v[:, lo:hi]
        s = jax.lax.dot_general(qh, kh, (((1,), (1,)), ((), ())),
                                preferred_element_type=jnp.float32) + mask
        s = s - jnp.max(s, axis=-1, keepdims=True)
        p = jnp.exp(s)
        p = p * pl.reciprocal(jnp.sum(p, axis=-1, keepdims=True), approx=True)
        heads.append(jnp.dot(p, vh, preferred_element_type=jnp.float32))
    attn = jnp.concatenate(heads, axis=-1)                                           # (S, D)
    attn = jnp.dot(attn, o_w[...], preferred_element_type=jnp.float32) + o_b[...]
    h = h + attn

    # ---- MLP block ----
    x = _ln(h, ln2_g, ln2_b, eps)
    x = jnp.dot(x, fc1_w[...], preferred_element_type=jnp.float32) + fc1_b[...]
    x = x * jax.nn.sigmoid(1.702 * x)            # quick_gelu
    x = jnp.dot(x, fc2_w[...], preferred_element_type=jnp.float32) + fc2_b[...]
    o_ref[0] = (h + x).astype(o_ref.dtype)


def encoder_layer(h, mask, p, num_heads):
    Bb, S, D = h.shape
    weights = [p["ln1_g"], p["ln1_b"], p["qkv_w"], p["qkv_b"], p["o_w"], p["o_b"],
               p["ln2_g"], p["ln2_b"], p["fc1_w"], p["fc1_b"], p["fc2_w"], p["fc2_b"]]
    in_specs = [pl.BlockSpec((1, S, D), lambda b: (b, 0, 0)),
                pl.BlockSpec((1, S, S), lambda b: (b, 0, 0))] + [_const_spec(w) for w in weights]
    return pl.pallas_call(
        functools.partial(_encoder_layer_kernel, num_heads=num_heads, eps=EPS),
        out_shape=jax.ShapeDtypeStruct((Bb, S, D), jnp.float32),
        grid=(Bb,),
        in_specs=in_specs,
        out_specs=pl.BlockSpec((1, S, D), lambda b: (b, 0, 0)),
        compiler_params=pltpu.CompilerParams(dimension_semantics=("parallel",)),
    )(h, mask, *weights)


# ----------------------------- vision embedding -------------------------------
def _vision_embed_kernel(patches_ref, w_ref, b_ref, cls_ref, pos_ref, g_ref, beta_ref,
                         o_ref, *, eps):
    # conv (kernel == stride == PATCH) as matmul, fused with cls concat + pos + pre-LN
    pe = jnp.dot(patches_ref[0].astype(jnp.float32), w_ref[...],
                 preferred_element_type=jnp.float32) + b_ref[...]        # (P, D)
    emb = jnp.concatenate([cls_ref[...], pe], axis=0) + pos_ref[...]     # (P+1, D)
    o_ref[0] = _ln(emb, g_ref, beta_ref, eps).astype(o_ref.dtype)


def vision_tower(pixel_values, p):
    Bb, Cc, H, W = pixel_values.shape
    ph, pw = H // PATCH, W // PATCH
    n_pos = ph * pw + 1
    # glue: patch extraction (reshape/transpose), no Pallas equivalent needed
    patches = pixel_values.reshape(Bb, Cc, ph, PATCH, pw, PATCH)
    patches = patches.transpose(0, 2, 4, 1, 3, 5).reshape(Bb, ph * pw, Cc * PATCH * PATCH)

    weights = [p["patch_w"], p["patch_b"], p["class_emb"], p["vis_pos"],
               p["pre_ln_g"], p["pre_ln_b"]]
    h = pl.pallas_call(
        functools.partial(_vision_embed_kernel, eps=EPS),
        out_shape=jax.ShapeDtypeStruct((Bb, n_pos, D_VISION), jnp.float32),
        grid=(Bb,),
        in_specs=[pl.BlockSpec((1, ph * pw, Cc * PATCH * PATCH), lambda b: (b, 0, 0))]
                 + [_const_spec(w) for w in weights],
        out_specs=pl.BlockSpec((1, n_pos, D_VISION), lambda b: (b, 0, 0)),
        compiler_params=pltpu.CompilerParams(dimension_semantics=("parallel",)),
    )(patches, *weights)

    mask = jnp.zeros((Bb, n_pos, n_pos), jnp.float32)
    for layer_p in p["vis_layers"]:
        h = encoder_layer(h, mask, layer_p, N_HEADS)
    return h  # last_hidden_state (pre post-layernorm)


# ----------------------------- text pooling + projection ----------------------
def _text_project_kernel(x_ref, g_ref, b_ref, w_ref, o_ref, *, eps):
    x = _ln(x_ref[...].astype(jnp.float32), g_ref, b_ref, eps)          # final LN (per-row)
    t = jnp.dot(x, w_ref[...], preferred_element_type=jnp.float32)      # bias-free projection
    t = t / (jnp.sqrt(jnp.sum(t * t, axis=-1, keepdims=True)) + 1e-6)   # L2 normalize
    o_ref[...] = t.astype(o_ref.dtype)


def text_tower(input_ids, attention_mask, p):
    N, S = input_ids.shape
    tok = jnp.take(p["tok_emb"], input_ids, axis=0)          # glue: embedding gather
    h = tok + p["txt_pos"][None]
    causal = jnp.triu(jnp.full((S, S), -1e9, jnp.float32), k=1)
    pad = (1.0 - attention_mask.astype(jnp.float32))[:, None, :] * -1e9
    mask = causal[None] + pad
    for layer_p in p["txt_layers"]:
        h = encoder_layer(h, mask, layer_p, N_HEADS)
    # TODO(synk): argmax(input_ids) EOS pooling matches the scaled-down model, not a real tokenizer.
    eos_idx = jnp.argmax(input_ids, axis=-1)
    pooled = h[jnp.arange(N), eos_idx]                        # (N, D_TEXT), pre final-LN
    # final LN commutes with per-row gather -> fuse LN + projection + normalize in one kernel
    return pl.pallas_call(
        functools.partial(_text_project_kernel, eps=EPS),
        out_shape=jax.ShapeDtypeStruct((N, PROJ), jnp.float32),
    )(pooled, p["final_ln_g"], p["final_ln_b"], p["text_proj_w"])


# ----------------------------- fused detection heads --------------------------
def _detection_head_kernel(hid_ref, qry_ref, qmask_ref,
                           post_g, post_b, det_g, det_b,
                           heads_w, heads_b, box1_w, box1_b, box2_w, box2_b, bias_ref,
                           logits_ref, obj_ref, boxes_ref, img_ref, clsout_ref,
                           *, proj, d_vision, eps):
    h = _ln(hid_ref[0].astype(jnp.float32), post_g, post_b, eps)         # (P+1, D)
    cls_tok = h[0:1, :]
    img = _ln(h[1:, :] * cls_tok, det_g, det_b, eps)                     # (P, D)

    # one wide matmul for [cls_d0 | logit_shift | logit_scale | objectness | box_d0]
    y = jnp.dot(img, heads_w[...], preferred_element_type=jnp.float32) + heads_b[...]
    cls_e = y[:, 0:proj]                                                 # (P, PROJ)
    shift = y[:, proj:proj + 1]
    scale_raw = y[:, proj + 1:proj + 2]
    obj = y[:, proj + 2:proj + 3]
    bh = y[:, proj + 3:proj + 3 + d_vision]                              # (P, D)

    # ELU(x)+1 without exp-overflow on the unselected branch
    scale = jnp.where(scale_raw > 0, scale_raw + 1.0, jnp.exp(jnp.minimum(scale_raw, 0.0)))

    # box MLP.  TODO(synk): HF heads use exact erf-GELU; tanh approximation here.
    bh = jax.nn.gelu(bh, approximate=True)
    bh = jax.nn.gelu(jnp.dot(bh, box1_w[...], preferred_element_type=jnp.float32) + box1_b[...],
                     approximate=True)
    box = jnp.dot(bh, box2_w[...], preferred_element_type=jnp.float32) + box2_b[...]
    boxes = jax.nn.sigmoid(box + bias_ref[...])

    # class logits
    qry = qry_ref[0].astype(jnp.float32)                                 # (Q, PROJ)
    img_n = cls_e / (jnp.sqrt(jnp.sum(cls_e * cls_e, axis=-1, keepdims=True)) + 1e-6)
    qry_n = qry / (jnp.sqrt(jnp.sum(qry * qry, axis=-1, keepdims=True)) + 1e-6)
    lg = jax.lax.dot_general(img_n, qry_n, (((1,), (1,)), ((), ())),
                             preferred_element_type=jnp.float32)         # (P, Q)
    lg = (lg + shift) * scale
    lg = jnp.where(qmask_ref[0] == 0.0, -1e6, lg)

    logits_ref[0] = lg
    obj_ref[0] = obj
    boxes_ref[0] = boxes
    img_ref[0] = img
    clsout_ref[0] = cls_e


def detection_heads(last_hidden, query_embeds, query_mask, box_bias, p):
    Bb, S, D = last_hidden.shape
    P_ = S - 1
    Q = query_embeds.shape[1]
    heads_w = jnp.concatenate([p["cls_d0_w"], p["cls_shift_w"], p["cls_scale_w"],
                               p["obj_w"], p["box_d0_w"]], axis=1)         # (D, PROJ+3+D)
    heads_b = jnp.concatenate([p["cls_d0_b"], p["cls_shift_b"], p["cls_scale_b"],
                               p["obj_b"], p["box_d0_b"]], axis=1)

    weights = [p["post_ln_g"], p["post_ln_b"], p["det_ln_g"], p["det_ln_b"],
               heads_w, heads_b, p["box_d1_w"], p["box_d1_b"],
               p["box_d2_w"], p["box_d2_b"], box_bias]
    in_specs = [pl.BlockSpec((1, S, D), lambda b: (b, 0, 0)),
                pl.BlockSpec((1, Q, PROJ), lambda b: (b, 0, 0)),
                pl.BlockSpec((1, 1, Q), lambda b: (b, 0, 0))] + [_const_spec(w) for w in weights]
    out_shape = (jax.ShapeDtypeStruct((Bb, P_, Q), jnp.float32),
                 jax.ShapeDtypeStruct((Bb, P_, 1), jnp.float32),
                 jax.ShapeDtypeStruct((Bb, P_, 4), jnp.float32),
                 jax.ShapeDtypeStruct((Bb, P_, D), jnp.float32),
                 jax.ShapeDtypeStruct((Bb, P_, PROJ), jnp.float32))
    out_specs = (pl.BlockSpec((1, P_, Q), lambda b: (b, 0, 0)),
                 pl.BlockSpec((1, P_, 1), lambda b: (b, 0, 0)),
                 pl.BlockSpec((1, P_, 4), lambda b: (b, 0, 0)),
                 pl.BlockSpec((1, P_, D), lambda b: (b, 0, 0)),
                 pl.BlockSpec((1, P_, PROJ), lambda b: (b, 0, 0)))
    return pl.pallas_call(
        functools.partial(_detection_head_kernel, proj=PROJ, d_vision=D_VISION, eps=EPS),
        out_shape=out_shape,
        grid=(Bb,),
        in_specs=in_specs,
        out_specs=out_specs,
        compiler_params=pltpu.CompilerParams(dimension_semantics=("parallel",)),
    )(last_hidden, query_embeds, query_mask, *weights)


# ----------------------------- box bias (constant) ----------------------------
def compute_box_bias(nph, npw):
    x = jnp.arange(1, npw + 1, dtype=jnp.float32)
    y = jnp.arange(1, nph + 1, dtype=jnp.float32)
    xx, yy = jnp.meshgrid(x, y, indexing="xy")
    coords = jnp.stack([xx / npw, yy / nph], axis=-1).reshape(-1, 2)
    coords = jnp.clip(coords, 0.0, 1.0)
    coord_bias = jnp.log(coords + 1e-4) - jnp.log1p(-coords + 1e-4)
    size = jnp.concatenate([jnp.full((coords.shape[0], 1), 1.0 / npw),
                            jnp.full((coords.shape[0], 1), 1.0 / nph)], axis=-1)
    size_bias = jnp.log(size + 1e-4) - jnp.log1p(-size + 1e-4)
    return jnp.concatenate([coord_bias, size_bias], axis=-1)  # (num_patches, 4)


# ----------------------------- forward -----------------------------------------
def forward(params, input_ids, attention_mask, pixel_values):
    Bb = pixel_values.shape[0]
    num_queries = input_ids.shape[0] // Bb
    nph = npw = IMG // PATCH

    # ------------------ text branch ------------------
    text_embeds = text_tower(input_ids, attention_mask, params)        # (N, PROJ), normalized
    query_embeds = text_embeds.reshape(Bb, num_queries, PROJ)

    # ------------------ vision branch ------------------
    last_hidden = vision_tower(pixel_values, params)                   # (B, P+1, D)

    # ------------------ fused heads ------------------
    ids = input_ids.reshape(Bb, num_queries, -1)
    query_mask = (ids[..., 0] > 0).astype(jnp.float32).reshape(Bb, 1, num_queries)
    box_bias = compute_box_bias(nph, npw)                              # (P, 4)

    logits, objectness, pred_boxes, image_feats, class_embeds = detection_heads(
        last_hidden, query_embeds, query_mask, box_bias, params)

    feature_map = image_feats.reshape(Bb, nph, npw, D_VISION)

    return OrderedDict(
        logits=logits,
        objectness_logits=objectness.reshape(Bb, -1),
        pred_boxes=pred_boxes,
        text_embeds=query_embeds,
        image_embeds=feature_map,
        class_embeds=class_embeds,
    )


# ----------------------------- params init -------------------------------------
def init_params(key):
    keys = iter(jax.random.split(key, 128))

    def w(din, dout, scale=0.02):
        return scale * jax.random.normal(next(keys), (din, dout), dtype=jnp.float32)

    def vec(n, val=0.0):
        return jnp.full((1, n), val, jnp.float32)

    def enc_layer(D):
        return dict(
            ln1_g=vec(D, 1.0), ln1_b=vec(D),
            qkv_w=w(D, 3 * D), qkv_b=vec(3 * D),          # fused QKV
            o_w=w(D, D), o_b=vec(D),
            ln2_g=vec(D, 1.0), ln2_b=vec(D),
            fc1_w=w(D, 4 * D), fc1_b=vec(4 * D),
            fc2_w=w(4 * D, D), fc2_b=vec(D),
        )

    n_patches = (IMG // PATCH) ** 2
    return dict(
        # vision embeddings / encoder
        patch_w=w(C * PATCH * PATCH, D_VISION), patch_b=vec(D_VISION),
        class_emb=w(1, D_VISION),
        vis_pos=w(n_patches + 1, D_VISION),
        pre_ln_g=vec(D_VISION, 1.0), pre_ln_b=vec(D_VISION),
        post_ln_g=vec(D_VISION, 1.0), post_ln_b=vec(D_VISION),
        vis_layers=[enc_layer(D_VISION) for _ in range(N_LAYERS)],
        # text embeddings / encoder
        tok_emb=w(VOCAB, D_TEXT),
        txt_pos=w(SEQ, D_TEXT),
        final_ln_g=vec(D_TEXT, 1.0), final_ln_b=vec(D_TEXT),
        txt_layers=[enc_layer(D_TEXT) for _ in range(N_LAYERS)],
        text_proj_w=w(D_TEXT, PROJ),                       # bias-free, like HF text_projection
        # detection heads
        det_ln_g=vec(D_VISION, 1.0), det_ln_b=vec(D_VISION),
        cls_d0_w=w(D_VISION, PROJ), cls_d0_b=vec(PROJ),
        cls_shift_w=w(D_VISION, 1), cls_shift_b=vec(1),
        cls_scale_w=w(D_VISION, 1), cls_scale_b=vec(1),
        obj_w=w(D_VISION, 1), obj_b=vec(1),
        box_d0_w=w(D_VISION, D_VISION), box_d0_b=vec(D_VISION),
        box_d1_w=w(D_VISION, D_VISION), box_d1_b=vec(D_VISION),
        box_d2_w=w(D_VISION, 4), box_d2_b=vec(4),
    )


# ----------------------------- main ---------------------------------------------
if __name__ == "__main__":
    key = jax.random.PRNGKey(0)
    k_ids, k_pix, k_par = jax.random.split(key, 3)

    input_ids = jax.random.randint(k_ids, (B * NUM_TEXT, SEQ), 1, VOCAB, dtype=jnp.int32)
    attention_mask = jnp.ones((B * NUM_TEXT, SEQ), jnp.int32).at[1, -2:].set(0)
    pixel_values = jax.random.normal(k_pix, (B, C, IMG, IMG), dtype=jnp.float32)

    params = init_params(k_par)
    out = jax.jit(forward)(params, input_ids, attention_mask, pixel_values)
    jax.block_until_ready(out)

    expected = {
        "logits": (B, 4, NUM_TEXT),
        "objectness_logits": (B, 4),
        "pred_boxes": (B, 4, 4),
        "text_embeds": (B, NUM_TEXT, PROJ),
        "image_embeds": (B, 2, 2, D_VISION),
        "class_embeds": (B, 4, PROJ),
    }
    for name, shape in expected.items():
        assert out[name].shape == shape, (name, out[name].shape, shape)
        assert bool(jnp.all(jnp.isfinite(out[name]))), name

    print("KERNEL_OK")
</pallas_src>

<mosaic_0001>
module attributes {stable_mosaic.version = 11 : i64} {
  func.func @_vision_embed_kernel(%arg0: i32, %arg1: memref<1x4x768xf32, #tpu.memory_space<vmem>>, %arg2: memref<768x32xf32, #tpu.memory_space<vmem>>, %arg3: memref<1x32xf32, #tpu.memory_space<vmem>>, %arg4: memref<1x32xf32, #tpu.memory_space<vmem>>, %arg5: memref<5x32xf32, #tpu.memory_space<vmem>>, %arg6: memref<1x32xf32, #tpu.memory_space<vmem>>, %arg7: memref<1x32xf32, #tpu.memory_space<vmem>>, %arg8: memref<1x5x32xf32, #tpu.memory_space<vmem>>) attributes {dimension_semantics = [#tpu.dimension_semantics<parallel>], iteration_bounds = array<i64: 2>, scalar_prefetch = 0 : i64, scratch_operands = 0 : i64, tpu.core_type = #tpu.core_type<tc>, window_params = [{transform_indices = @transform_0, window_bounds = array<i64: 1, 4, 768>}, {pipeline_mode = #tpu.pipeline_mode<synchronous>, transform_indices = @transform_1, window_bounds = array<i64: 768, 32>}, {pipeline_mode = #tpu.pipeline_mode<synchronous>, transform_indices = @transform_2, window_bounds = array<i64: 1, 32>}, {pipeline_mode = #tpu.pipeline_mode<synchronous>, transform_indices = @transform_3, window_bounds = array<i64: 1, 32>}, {pipeline_mode = #tpu.pipeline_mode<synchronous>, transform_indices = @transform_4, window_bounds = array<i64: 5, 32>}, {pipeline_mode = #tpu.pipeline_mode<synchronous>, transform_indices = @transform_5, window_bounds = array<i64: 1, 32>}, {pipeline_mode = #tpu.pipeline_mode<synchronous>, transform_indices = @transform_6, window_bounds = array<i64: 1, 32>}, {transform_indices = @transform_7, window_bounds = array<i64: 1, 5, 32>}]} {
    %c0 = arith.constant 0 : index
    %c0_0 = arith.constant 0 : index
    %c0_1 = arith.constant 0 : index
    %0 = vector.load %arg1[%c0, %c0_0, %c0_1] : memref<1x4x768xf32, #tpu.memory_space<vmem>>, vector<1x4x768xf32>
    %1 = vector.shape_cast %0 : vector<1x4x768xf32> to vector<4x768xf32>
    %c0_2 = arith.constant 0 : index
    %c0_3 = arith.constant 0 : index
    %2 = vector.load %arg2[%c0_2, %c0_3] : memref<768x32xf32, #tpu.memory_space<vmem>>, vector<768x32xf32>
    %cst = arith.constant dense<0.000000e+00> : vector<4x32xf32>
    %3 = tpu.matmul %1, %2, %cst {dimension_numbers = #tpu.dot_dimension_numbers<[1], [0], [0], [1], [0, 0, 1, 1], [], []>} : vector<4x768xf32>, vector<768x32xf32>, vector<4x32xf32> -> vector<4x32xf32>
    %c0_4 = arith.constant 0 : index
    %c0_5 = arith.constant 0 : index
    %4 = vector.load %arg3[%c0_4, %c0_5] : memref<1x32xf32, #tpu.memory_space<vmem>>, vector<1x32xf32>
    %5 = vector.broadcast %4 : vector<1x32xf32> to vector<4x32xf32>
    %6 = arith.addf %3, %5 : vector<4x32xf32>
    %c0_6 = arith.constant 0 : index
    %c0_7 = arith.constant 0 : index
    %7 = vector.load %arg4[%c0_6, %c0_7] : memref<1x32xf32, #tpu.memory_space<vmem>>, vector<1x32xf32>
    %8 = tpu.concatenate %7, %6 in 0 : vector<1x32xf32>, vector<4x32xf32> -> vector<5x32xf32>
    %c0_8 = arith.constant 0 : index
    %c0_9 = arith.constant 0 : index
    %9 = vector.load %arg5[%c0_8, %c0_9] : memref<5x32xf32, #tpu.memory_space<vmem>>, vector<5x32xf32>
    %10 = arith.addf %8, %9 : vector<5x32xf32>
    %cst_10 = arith.constant dense<0.000000e+00> : vector<5xf32>
    %11 = vector.multi_reduction <add>, %10, %cst_10 [1] : vector<5x32xf32> to vector<5xf32>
    %12 = vector.shape_cast %11 : vector<5xf32> to vector<5x1xf32>
    %cst_11 = arith.constant 3.200000e+01 : f32
    %13 = vector.broadcast %cst_11 : f32 to vector<5x1xf32>
    %14 = arith.divf %12, %13 : vector<5x1xf32>
    %15 = vector.broadcast %14 : vector<5x1xf32> to vector<5x32xf32>
    %16 = arith.subf %10, %15 : vector<5x32xf32>
    %17 = vector.broadcast %14 : vector<5x1xf32> to vector<5x32xf32>
    %18 = arith.subf %10, %17 : vector<5x32xf32>
    %19 = arith.mulf %16, %18 : vector<5x32xf32>
    %cst_12 = arith.constant dense<0.000000e+00> : vector<5xf32>
    %20 = vector.multi_reduction <add>, %19, %cst_12 [1] : vector<5x32xf32> to vector<5xf32>
    %21 = vector.shape_cast %20 : vector<5xf32> to vector<5x1xf32>
    %cst_13 = arith.constant 3.200000e+01 : f32
    %22 = vector.broadcast %cst_13 : f32 to vector<5x1xf32>
    %23 = arith.divf %21, %22 : vector<5x1xf32>
    %24 = vector.broadcast %14 : vector<5x1xf32> to vector<5x32xf32>
    %25 = arith.subf %10, %24 : vector<5x32xf32>
    %cst_14 = arith.constant 9.99999974E-6 : f32
    %26 = vector.broadcast %cst_14 : f32 to vector<5x1xf32>
    %27 = arith.addf %23, %26 : vector<5x1xf32>
    %28 = math.rsqrt %27 : vector<5x1xf32>
    %29 = vector.broadcast %28 : vector<5x1xf32> to vector<5x32xf32>
    %30 = arith.mulf %25, %29 : vector<5x32xf32>
    %c0_15 = arith.constant 0 : index
    %c0_16 = arith.constant 0 : index
    %31 = vector.load %arg6[%c0_15, %c0_16] : memref<1x32xf32, #tpu.memory_space<vmem>>, vector<1x32xf32>
    %32 = vector.broadcast %31 : vector<1x32xf32> to vector<5x32xf32>
    %33 = arith.mulf %30, %32 : vector<5x32xf32>
    %c0_17 = arith.constant 0 : index
    %c0_18 = arith.constant 0 : index
    %34 = vector.load %arg7[%c0_17, %c0_18] : memref<1x32xf32, #tpu.memory_space<vmem>>, vector<1x32xf32>
    %35 = vector.broadcast %34 : vector<1x32xf32> to vector<5x32xf32>
    %36 = arith.addf %33, %35 : vector<5x32xf32>
    %c0_19 = arith.constant 0 : index
    %c0_20 = arith.constant 0 : index
    %c0_21 = arith.constant 0 : index
    %37 = vector.load %arg8[%c0_19, %c0_20, %c0_21] : memref<1x5x32xf32, #tpu.memory_space<vmem>>, vector<1x5x32xf32>
    %38 = vector.shape_cast %37 : vector<1x5x32xf32> to vector<5x32xf32>
    %39 = vector.shape_cast %36 : vector<5x32xf32> to vector<1x5x32xf32>
    tpu.vector_store %arg8[%c0_19, %c0_20, %c0_21], %39 {strides = array<i32>} : memref<1x5x32xf32, #tpu.memory_space<vmem>>, vector<1x5x32xf32>,
    return
  }
  func.func @transform_0(%arg0: i32) -> (i32, i32, i32) {
    %c0_i32 = arith.constant 0 : i32
    %c0_i32_0 = arith.constant 0 : i32
    %c0_i32_1 = arith.constant 0 : i32
    return %arg0, %c0_i32, %c0_i32_0 : i32, i32, i32
  }
  func.func @transform_1(%arg0: i32) -> (i32, i32) {
    %c0_i32 = arith.constant 0 : i32
    %c0_i32_0 = arith.constant 0 : i32
    %c0_i32_1 = arith.constant 0 : i32
    return %c0_i32, %c0_i32_0 : i32, i32
  }
  func.func @transform_2(%arg0: i32) -> (i32, i32) {
    %c0_i32 = arith.constant 0 : i32
    %c0_i32_0 = arith.constant 0 : i32
    %c0_i32_1 = arith.constant 0 : i32
    return %c0_i32, %c0_i32_0 : i32, i32
  }
  func.func @transform_3(%arg0: i32) -> (i32, i32) {
    %c0_i32 = arith.constant 0 : i32
    %c0_i32_0 = arith.constant 0 : i32
    %c0_i32_1 = arith.constant 0 : i32
    return %c0_i32, %c0_i32_0 : i32, i32
  }
  func.func @transform_4(%arg0: i32) -> (i32, i32) {
    %c0_i32 = arith.constant 0 : i32
    %c0_i32_0 = arith.constant 0 : i32
    %c0_i32_1 = arith.constant 0 : i32
    return %c0_i32, %c0_i32_0 : i32, i32
  }
  func.func @transform_5(%arg0: i32) -> (i32, i32) {
    %c0_i32 = arith.constant 0 : i32
    %c0_i32_0 = arith.constant 0 : i32
    %c0_i32_1 = arith.constant 0 : i32
    return %c0_i32, %c0_i32_0 : i32, i32
  }
  func.func @transform_6(%arg0: i32) -> (i32, i32) {
    %c0_i32 = arith.constant 0 : i32
    %c0_i32_0 = arith.constant 0 : i32
    %c0_i32_1 = arith.constant 0 : i32
    return %c0_i32, %c0_i32_0 : i32, i32
  }
  func.func @transform_7(%arg0: i32) -> (i32, i32, i32) {
    %c0_i32 = arith.constant 0 : i32
    %c0_i32_0 = arith.constant 0 : i32
    %c0_i32_1 = arith.constant 0 : i32
    return %arg0, %c0_i32, %c0_i32_0 : i32, i32, i32
  }
}

module attributes {stable_mosaic.version = 11 : i64} {
  func.func @_encoder_layer_kernel(%arg0: i32, %arg1: memref<1x5x32xf32, #tpu.memory_space<vmem>>, %arg2: memref<1x5x5xf32, #tpu.memory_space<vmem>>, %arg3: memref<1x32xf32, #tpu.memory_space<vmem>>, %arg4: memref<1x32xf32, #tpu.memory_space<vmem>>, %arg5: memref<32x96xf32, #tpu.memory_space<vmem>>, %arg6: memref<1x96xf32, #tpu.memory_space<vmem>>, %arg7: memref<32x32xf32, #tpu.memory_space<vmem>>, %arg8: memref<1x32xf32, #tpu.memory_space<vmem>>, %arg9: memref<1x32xf32, #tpu.memory_space<vmem>>, %arg10: memref<1x32xf32, #tpu.memory_space<vmem>>, %arg11: memref<32x128xf32, #tpu.memory_space<vmem>>, %arg12: memref<1x128xf32, #tpu.memory_space<vmem>>, %arg13: memref<128x32xf32, #tpu.memory_space<vmem>>, %arg14: memref<1x32xf32, #tpu.memory_space<vmem>>, %arg15: memref<1x5x32xf32, #tpu.memory_space<vmem>>) attributes {dimension_semantics = [#tpu.dimension_semantics<parallel>], iteration_bounds = array<i64: 2>, scalar_prefetch = 0 : i64, scratch_operands = 0 : i64, tpu.core_type = #tpu.core_type<tc>, window_params = [{transform_indices = @transform_0, window_bounds = array<i64: 1, 5, 32>}, {transform_indices = @transform_1, window_bounds = array<i64: 1, 5, 5>}, {pipeline_mode = #tpu.pipeline_mode<synchronous>, transform_indices = @transform_2, window_bounds = array<i64: 1, 32>}, {pipeline_mode = #tpu.pipeline_mode<synchronous>, transform_indices = @transform_3, window_bounds = array<i64: 1, 32>}, {pipeline_mode = #tpu.pipeline_mode<synchronous>, transform_indices = @transform_4, window_bounds = array<i64: 32, 96>}, {pipeline_mode = #tpu.pipeline_mode<synchronous>, transform_indices = @transform_5, window_bounds = array<i64: 1, 96>}, {pipeline_mode = #tpu.pipeline_mode<synchronous>, transform_indices = @transform_6, window_bounds = array<i64: 32, 32>}, {pipeline_mode = #tpu.pipeline_mode<synchronous>, transform_indices = @transform_7, window_bounds = array<i64: 1, 32>}, {pipeline_mode = #tpu.pipeline_mode<synchronous>, transform_indices = @transform_8, window_bounds = array<i64: 1, 32>}, {pipeline_mode = #tpu.pipeline_mode<synchronous>, transform_indices = @transform_9, window_bounds = array<i64: 1, 32>}, {pipeline_mode = #tpu.pipeline_mode<synchronous>, transform_indices = @transform_10, window_bounds = array<i64: 32, 128>}, {pipeline_mode = #tpu.pipeline_mode<synchronous>, transform_indices = @transform_11, window_bounds = array<i64: 1, 128>}, {pipeline_mode = #tpu.pipeline_mode<synchronous>, transform_indices = @transform_12, window_bounds = array<i64: 128, 32>}, {pipeline_mode = #tpu.pipeline_mode<synchronous>, transform_indices = @transform_13, window_bounds = array<i64: 1, 32>}, {transform_indices = @transform_14, window_bounds = array<i64: 1, 5, 32>}]} {
    %c0 = arith.constant 0 : index
    %c0_0 = arith.constant 0 : index
    %c0_1 = arith.constant 0 : index
    %0 = vector.load %arg1[%c0, %c0_0, %c0_1] : memref<1x5x32xf32, #tpu.memory_space<vmem>>, vector<1x5x32xf32>
    %1 = vector.shape_cast %0 : vector<1x5x32xf32> to vector<5x32xf32>
    %c0_2 = arith.constant 0 : index
    %c0_3 = arith.constant 0 : index
    %c0_4 = arith.constant 0 : index
    %2 = vector.load %arg2[%c0_2, %c0_3, %c0_4] : memref<1x5x5xf32, #tpu.memory_space<vmem>>, vector<1x5x5xf32>
    %3 = vector.shape_cast %2 : vector<1x5x5xf32> to vector<5x5xf32>
    %cst = arith.constant dense<0.000000e+00> : vector<5xf32>
    %4 = vector.multi_reduction <add>, %1, %cst [1] : vector<5x32xf32> to vector<5xf32>
    %5 = vector.shape_cast %4 : vector<5xf32> to vector<5x1xf32>
    %cst_5 = arith.constant 3.200000e+01 : f32
    %6 = vector.broadcast %cst_5 : f32 to vector<5x1xf32>
    %7 = arith.divf %5, %6 : vector<5x1xf32>
    %8 = vector.broadcast %7 : vector<5x1xf32> to vector<5x32xf32>
    %9 = arith.subf %1, %8 : vector<5x32xf32>
    %10 = vector.broadcast %7 : vector<5x1xf32> to vector<5x32xf32>
    %11 = arith.subf %1, %10 : vector<5x32xf32>
    %12 = arith.mulf %9, %11 : vector<5x32xf32>
    %cst_6 = arith.constant dense<0.000000e+00> : vector<5xf32>
    %13 = vector.multi_reduction <add>, %12, %cst_6 [1] : vector<5x32xf32> to vector<5xf32>
    %14 = vector.shape_cast %13 : vector<5xf32> to vector<5x1xf32>
    %cst_7 = arith.constant 3.200000e+01 : f32
    %15 = vector.broadcast %cst_7 : f32 to vector<5x1xf32>
    %16 = arith.divf %14, %15 : vector<5x1xf32>
    %17 = vector.broadcast %7 : vector<5x1xf32> to vector<5x32xf32>
    %18 = arith.subf %1, %17 : vector<5x32xf32>
    %cst_8 = arith.constant 9.99999974E-6 : f32
    %19 = vector.broadcast %cst_8 : f32 to vector<5x1xf32>
    %20 = arith.addf %16, %19 : vector<5x1xf32>
    %21 = math.rsqrt %20 : vector<5x1xf32>
    %22 = vector.broadcast %21 : vector<5x1xf32> to vector<5x32xf32>
    %23 = arith.mulf %18, %22 : vector<5x32xf32>
    %c0_9 = arith.constant 0 : index
    %c0_10 = arith.constant 0 : index
    %24 = vector.load %arg3[%c0_9, %c0_10] : memref<1x32xf32, #tpu.memory_space<vmem>>, vector<1x32xf32>
    %25 = vector.broadcast %24 : vector<1x32xf32> to vector<5x32xf32>
    %26 = arith.mulf %23, %25 : vector<5x32xf32>
    %c0_11 = arith.constant 0 : index
    %c0_12 = arith.constant 0 : index
    %27 = vector.load %arg4[%c0_11, %c0_12] : memref<1x32xf32, #tpu.memory_space<vmem>>, vector<1x32xf32>
    %28 = vector.broadcast %27 : vector<1x32xf32> to vector<5x32xf32>
    %29 = arith.addf %26, %28 : vector<5x32xf32>
    %c0_13 = arith.constant 0 : index
    %c0_14 = arith.constant 0 : index
    %30 = vector.load %arg5[%c0_13, %c0_14] : memref<32x96xf32, #tpu.memory_space<vmem>>, vector<32x96xf32>
    %cst_15 = arith.constant dense<0.000000e+00> : vector<5x96xf32>
    %31 = tpu.matmul %29, %30, %cst_15 {dimension_numbers = #tpu.dot_dimension_numbers<[1], [0], [0], [1], [0, 0, 1, 1], [], []>} : vector<5x32xf32>, vector<32x96xf32>, vector<5x96xf32> -> vector<5x96xf32>
    %c0_16 = arith.constant 0 : index
    %c0_17 = arith.constant 0 : index
    %32 = vector.load %arg6[%c0_16, %c0_17] : memref<1x96xf32, #tpu.memory_space<vmem>>, vector<1x96xf32>
    %33 = vector.broadcast %32 : vector<1x96xf32> to vector<5x96xf32>
    %34 = arith.addf %31, %33 : vector<5x96xf32>
    %35 = vector.extract_strided_slice %34 {offsets = [0, 0], sizes = [5, 32], strides = [1, 1]} : vector<5x96xf32> to vector<5x32xf32>
    %36 = vector.extract_strided_slice %34 {offsets = [0, 32], sizes = [5, 32], strides = [1, 1]} : vector<5x96xf32> to vector<5x32xf32>
    %37 = vector.extract_strided_slice %34 {offsets = [0, 64], sizes = [5, 32], strides = [1, 1]} : vector<5x96xf32> to vector<5x32xf32>
    %38 = vector.extract_strided_slice %35 {offsets = [0, 0], sizes = [5, 8], strides = [1, 1]} : vector<5x32xf32> to vector<5x8xf32>
    %cst_18 = arith.constant 0.353553385 : f32
    %39 = vector.broadcast %cst_18 : f32 to vector<5x8xf32>
    %40 = arith.mulf %38, %39 : vector<5x8xf32>
    %41 = vector.extract_strided_slice %36 {offsets = [0, 0], sizes = [5, 8], strides = [1, 1]} : vector<5x32xf32> to vector<5x8xf32>
    %42 = vector.extract_strided_slice %37 {offsets = [0, 0], sizes = [5, 8], strides = [1, 1]} : vector<5x32xf32> to vector<5x8xf32>
    %cst_19 = arith.constant dense<0.000000e+00> : vector<5x5xf32>
    %43 = tpu.matmul %40, %41, %cst_19 {dimension_numbers = #tpu.dot_dimension_numbers<[1], [1], [0], [0], [0, 0, 1, 0], [], []>} : vector<5x8xf32>, vector<5x8xf32>, vector<5x5xf32> -> vector<5x5xf32>
    %44 = arith.addf %43, %3 : vector<5x5xf32>
    %cst_20 = arith.constant dense<0xFF800000> : vector<5xf32>
    %45 = vector.multi_reduction <maximumf>, %44, %cst_20 [1] : vector<5x5xf32> to vector<5xf32>
    %46 = vector.shape_cast %45 : vector<5xf32> to vector<5x1xf32>
    %47 = vector.broadcast %46 : vector<5x1xf32> to vector<5x5xf32>
    %48 = arith.subf %44, %47 : vector<5x5xf32>
    %49 = math.exp %48 : vector<5x5xf32>
    %cst_21 = arith.constant dense<0.000000e+00> : vector<5xf32>
    %50 = vector.multi_reduction <add>, %49, %cst_21 [1] : vector<5x5xf32> to vector<5xf32>
    %51 = vector.shape_cast %50 : vector<5xf32> to vector<5x1xf32>
    %52 = tpu.reciprocal %51 {approx = true} : vector<5x1xf32> -> vector<5x1xf32>
    %53 = vector.broadcast %52 : vector<5x1xf32> to vector<5x5xf32>
    %54 = arith.mulf %49, %53 : vector<5x5xf32>
    %cst_22 = arith.constant dense<0.000000e+00> : vector<5x8xf32>
    %55 = tpu.matmul %54, %42, %cst_22 {dimension_numbers = #tpu.dot_dimension_numbers<[1], [0], [0], [1], [0, 0, 1, 1], [], []>} : vector<5x5xf32>, vector<5x8xf32>, vector<5x8xf32> -> vector<5x8xf32>
    %56 = vector.extract_strided_slice %35 {offsets = [0, 8], sizes = [5, 8], strides = [1, 1]} : vector<5x32xf32> to vector<5x8xf32>
    %cst_23 = arith.constant 0.353553385 : f32
    %57 = vector.broadcast %cst_23 : f32 to vector<5x8xf32>
    %58 = arith.mulf %56, %57 : vector<5x8xf32>
    %59 = vector.extract_strided_slice %36 {offsets = [0, 8], sizes = [5, 8], strides = [1, 1]} : vector<5x32xf32> to vector<5x8xf32>
    %60 = vector.extract_strided_slice %37 {offsets = [0, 8], sizes = [5, 8], strides = [1, 1]} : vector<5x32xf32> to vector<5x8xf32>
    %cst_24 = arith.constant dense<0.000000e+00> : vector<5x5xf32>
    %61 = tpu.matmul %58, %59, %cst_24 {dimension_numbers = #tpu.dot_dimension_numbers<[1], [1], [0], [0], [0, 0, 1, 0], [], []>} : vector<5x8xf32>, vector<5x8xf32>, vector<5x5xf32> -> vector<5x5xf32>
    %62 = arith.addf %61, %3 : vector<5x5xf32>
    %cst_25 = arith.constant dense<0xFF800000> : vector<5xf32>
    %63 = vector.multi_reduction <maximumf>, %62, %cst_25 [1] : vector<5x5xf32> to vector<5xf32>
    %64 = vector.shape_cast %63 : vector<5xf32> to vector<5x1xf32>
    %65 = vector.broadcast %64 : vector<5x1xf32> to vector<5x5xf32>
    %66 = arith.subf %62, %65 : vector<5x5xf32>
    %67 = math.exp %66 : vector<5x5xf32>
    %cst_26 = arith.constant dense<0.000000e+00> : vector<5xf32>
    %68 = vector.multi_reduction <add>, %67, %cst_26 [1] : vector<5x5xf32> to vector<5xf32>
    %69 = vector.shape_cast %68 : vector<5xf32> to vector<5x1xf32>
    %70 = tpu.reciprocal %69 {approx = true} : vector<5x1xf32> -> vector<5x1xf32>
    %71 = vector.broadcast %70 : vector<5x1xf32> to vector<5x5xf32>
    %72 = arith.mulf %67, %71 : vector<5x5xf32>
    %cst_27 = arith.constant dense<0.000000e+00> : vector<5x8xf32>
    %73 = tpu.matmul %72, %60, %cst_27 {dimension_numbers = #tpu.dot_dimension_numbers<[1], [0], [0], [1], [0, 0, 1, 1], [], []>} : vector<5x5xf32>, vector<5x8xf32>, vector<5x8xf32> -> vector<5x8xf32>
    %74 = vector.extract_strided_slice %35 {offsets = [0, 16], sizes = [5, 8], strides = [1, 1]} : vector<5x32xf32> to vector<5x8xf32>
    %cst_28 = arith.constant 0.353553385 : f32
    %75 = vector.broadcast %cst_28 : f32 to vector<5x8xf32>
    %76 = arith.mulf %74, %75 : vector<5x8xf32>
    %77 = vector.extract_strided_slice %36 {offsets = [0, 16], sizes = [5, 8], strides = [1, 1]} : vector<5x32xf32> to vector<5x8xf32>
    %78 = vector.extract_strided_slice %37 {offsets = [0, 16], sizes = [5, 8], strides = [1, 1]} : vector<5x32xf32> to vector<5x8xf32>
    %cst_29 = arith.constant dense<0.000000e+00> : vector<5x5xf32>
    %79 = tpu.matmul %76, %77, %cst_29 {dimension_numbers = #tpu.dot_dimension_numbers<[1], [1], [0], [0], [0, 0, 1, 0], [], []>} : vector<5x8xf32>, vector<5x8xf32>, vector<5x5xf32> -> vector<5x5xf32>
    %80 = arith.addf %79, %3 : vector<5x5xf32>
    %cst_30 = arith.constant dense<0xFF800000> : vector<5xf32>
    %81 = vector.multi_reduction <maximumf>, %80, %cst_30 [1] : vector<5x5xf32> to vector<5xf32>
    %82 = vector.shape_cast %81 : vector<5xf32> to vector<5x1xf32>
    %83 = vector.broadcast %82 : vector<5x1xf32> to vector<5x5xf32>
    %84 = arith.subf %80, %83 : vector<5x5xf32>
    %85 = math.exp %84 : vector<5x5xf32>
    %cst_31 = arith.constant dense<0.000000e+00> : vector<5xf32>
    %86 = vector.multi_reduction <add>, %85, %cst_31 [1] : vector<5x5xf32> to vector<5xf32>
    %87 = vector.shape_cast %86 : vector<5xf32> to vector<5x1xf32>
    %88 = tpu.reciprocal %87 {approx = true} : vector<5x1xf32> -> vector<5x1xf32>
    %89 = vector.broadcast %88 : vector<5x1xf32> to vector<5x5xf32>
    %90 = arith.mulf %85, %89 : vector<5x5xf32>
    %cst_32 = arith.constant dense<0.000000e+00> : vector<5x8xf32>
    %91 = tpu.matmul %90, %78, %cst_32 {dimension_numbers = #tpu.dot_dimension_numbers<[1], [0], [0], [1], [0, 0, 1, 1], [], []>} : vector<5x5xf32>, vector<5x8xf32>, vector<5x8xf32> -> vector<5x8xf32>
    %92 = vector.extract_strided_slice %35 {offsets = [0, 24], sizes = [5, 8], strides = [1, 1]} : vector<5x32xf32> to vector<5x8xf32>
    %cst_33 = arith.constant 0.353553385 : f32
    %93 = vector.broadcast %cst_33 : f32 to vector<5x8xf32>
    %94 = arith.mulf %92, %93 : vector<5x8xf32>
    %95 = vector.extract_strided_slice %36 {offsets = [0, 24], sizes = [5, 8], strides = [1, 1]} : vector<5x32xf32> to vector<5x8xf32>
    %96 = vector.extract_strided_slice %37 {offsets = [0, 24], sizes = [5, 8], strides = [1, 1]} : vector<5x32xf32> to vector<5x8xf32>
    %cst_34 = arith.constant dense<0.000000e+00> : vector<5x5xf32>
    %97 = tpu.matmul %94, %95, %cst_34 {dimension_numbers = #tpu.dot_dimension_numbers<[1], [1], [0], [0], [0, 0, 1, 0], [], []>} : vector<5x8xf32>, vector<5x8xf32>, vector<5x5xf32> -> vector<5x5xf32>
    %98 = arith.addf %97, %3 : vector<5x5xf32>
    %cst_35 = arith.constant dense<0xFF800000> : vector<5xf32>
    %99 = vector.multi_reduction <maximumf>, %98, %cst_35 [1] : vector<5x5xf32> to vector<5xf32>
    %100 = vector.shape_cast %99 : vector<5xf32> to vector<5x1xf32>
    %101 = vector.broadcast %100 : vector<5x1xf32> to vector<5x5xf32>
    %102 = arith.subf %98, %101 : vector<5x5xf32>
    %103 = math.exp %102 : vector<5x5xf32>
    %cst_36 = arith.constant dense<0.000000e+00> : vector<5xf32>
    %104 = vector.multi_reduction <add>, %103, %cst_36 [1] : vector<5x5xf32> to vector<5xf32>
    %105 = vector.shape_cast %104 : vector<5xf32> to vector<5x1xf32>
    %106 = tpu.reciprocal %105 {approx = true} : vector<5x1xf32> -> vector<5x1xf32>
    %107 = vector.broadcast %106 : vector<5x1xf32> to vector<5x5xf32>
    %108 = arith.mulf %103, %107 : vector<5x5xf32>
    %cst_37 = arith.constant dense<0.000000e+00> : vector<5x8xf32>
    %109 = tpu.matmul %108, %96, %cst_37 {dimension_numbers = #tpu.dot_dimension_numbers<[1], [0], [0], [1], [0, 0, 1, 1], [], []>} : vector<5x5xf32>, vector<5x8xf32>, vector<5x8xf32> -> vector<5x8xf32>
    %110 = tpu.concatenate %55, %73, %91, %109 in 1 : vector<5x8xf32>, vector<5x8xf32>, vector<5x8xf32>, vector<5x8xf32> -> vector<5x32xf32>
    %c0_38 = arith.constant 0 : index
    %c0_39 = arith.constant 0 : index
    %111 = vector.load %arg7[%c0_38, %c0_39] : memref<32x32xf32, #tpu.memory_space<vmem>>, vector<32x32xf32>
    %cst_40 = arith.constant dense<0.000000e+00> : vector<5x32xf32>
    %112 = tpu.matmul %110, %111, %cst_40 {dimension_numbers = #tpu.dot_dimension_numbers<[1], [0], [0], [1], [0, 0, 1, 1], [], []>} : vector<5x32xf32>, vector<32x32xf32>, vector<5x32xf32> -> vector<5x32xf32>
    %c0_41 = arith.constant 0 : index
    %c0_42 = arith.constant 0 : index
    %113 = vector.load %arg8[%c0_41, %c0_42] : memref<1x32xf32, #tpu.memory_space<vmem>>, vector<1x32xf32>
    %114 = vector.broadcast %113 : vector<1x32xf32> to vector<5x32xf32>
    %115 = arith.addf %112, %114 : vector<5x32xf32>
    %116 = arith.addf %1, %115 : vector<5x32xf32>
    %cst_43 = arith.constant dense<0.000000e+00> : vector<5xf32>
    %117 = vector.multi_reduction <add>, %116, %cst_43 [1] : vector<5x32xf32> to vector<5xf32>
    %118 = vector.shape_cast %117 : vector<5xf32> to vector<5x1xf32>
    %cst_44 = arith.constant 3.200000e+01 : f32
    %119 = vector.broadcast %cst_44 : f32 to vector<5x1xf32>
    %120 = arith.divf %118, %119 : vector<5x1xf32>
    %121 = vector.broadcast %120 : vector<5x1xf32> to vector<5x32xf32>
    %122 = arith.subf %116, %121 : vector<5x32xf32>
    %123 = vector.broadcast %120 : vector<5x1xf32> to vector<5x32xf32>
    %124 = arith.subf %116, %123 : vector<5x32xf32>
    %125 = arith.mulf %122, %124 : vector<5x32xf32>
    %cst_45 = arith.constant dense<0.000000e+00> : vector<5xf32>
    %126 = vector.multi_reduction <add>, %125, %cst_45 [1] : vector<5x32xf32> to vector<5xf32>
    %127 = vector.shape_cast %126 : vector<5xf32> to vector<5x1xf32>
    %cst_46 = arith.constant 3.200000e+01 : f32
    %128 = vector.broadcast %cst_46 : f32 to vector<5x1xf32>
    %129 = arith.divf %127, %128 : vector<5x1xf32>
    %130 = vector.broadcast %120 : vector<5x1xf32> to vector<5x32xf32>
    %131 = arith.subf %116, %130 : vector<5x32xf32>
    %cst_47 = arith.constant 9.99999974E-6 : f32
    %132 = vector.broadcast %cst_47 : f32 to vector<5x1xf32>
    %133 = arith.addf %129, %132 : vector<5x1xf32>
    %134 = math.rsqrt %133 : vector<5x1xf32>
    %135 = vector.broadcast %134 : vector<5x1xf32> to vector<5x32xf32>
    %136 = arith.mulf %131, %135 : vector<5x32xf32>
    %c0_48 = arith.constant 0 : index
    %c0_49 = arith.constant 0 : index
    %137 = vector.load %arg9[%c0_48, %c0_49] : memref<1x32xf32, #tpu.memory_space<vmem>>, vector<1x32xf32>
    %138 = vector.broadcast %137 : vector<1x32xf32> to vector<5x32xf32>
    %139 = arith.mulf %136, %138 : vector<5x32xf32>
    %c0_50 = arith.constant 0 : index
    %c0_51 = arith.constant 0 : index
    %140 = vector.load %arg10[%c0_50, %c0_51] : memref<1x32xf32, #tpu.memory_space<vmem>>, vector<1x32xf32>
    %141 = vector.broadcast %140 : vector<1x32xf32> to vector<5x32xf32>
    %142 = arith.addf %139, %141 : vector<5x32xf32>
    %c0_52 = arith.constant 0 : index
    %c0_53 = arith.constant 0 : index
    %143 = vector.load %arg11[%c0_52, %c0_53] : memref<32x128xf32, #tpu.memory_space<vmem>>, vector<32x128xf32>
    %cst_54 = arith.constant dense<0.000000e+00> : vector<5x128xf32>
    %144 = tpu.matmul %142, %143, %cst_54 {dimension_numbers = #tpu.dot_dimension_numbers<[1], [0], [0], [1], [0, 0, 1, 1], [], []>} : vector<5x32xf32>, vector<32x128xf32>, vector<5x128xf32> -> vector<5x128xf32>
    %c0_55 = arith.constant 0 : index
    %c0_56 = arith.constant 0 : index
    %145 = vector.load %arg12[%c0_55, %c0_56] : memref<1x128xf32, #tpu.memory_space<vmem>>, vector<1x128xf32>
    %146 = vector.broadcast %145 : vector<1x128xf32> to vector<5x128xf32>
    %147 = arith.addf %144, %146 : vector<5x128xf32>
    %cst_57 = arith.constant 1.702000e+00 : f32
    %148 = vector.broadcast %cst_57 : f32 to vector<5x128xf32>
    %149 = arith.mulf %148, %147 : vector<5x128xf32>
    %150 = arith.negf %149 : vector<5x128xf32>
    %151 = math.exp %150 : vector<5x128xf32>
    %cst_58 = arith.constant 1.000000e+00 : f32
    %152 = vector.broadcast %cst_58 : f32 to vector<5x128xf32>
    %153 = arith.addf %152, %151 : vector<5x128xf32>
    %154 = arith.divf %152, %153 : vector<5x128xf32>
    %155 = arith.mulf %147, %154 : vector<5x128xf32>
    %c0_59 = arith.constant 0 : index
    %c0_60 = arith.constant 0 : index
    %156 = vector.load %arg13[%c0_59, %c0_60] : memref<128x32xf32, #tpu.memory_space<vmem>>, vector<128x32xf32>
    %cst_61 = arith.constant dense<0.000000e+00> : vector<5x32xf32>
    %157 = tpu.matmul %155, %156, %cst_61 {dimension_numbers = #tpu.dot_dimension_numbers<[1], [0], [0], [1], [0, 0, 1, 1], [], []>} : vector<5x128xf32>, vector<128x32xf32>, vector<5x32xf32> -> vector<5x32xf32>
    %c0_62 = arith.constant 0 : index
    %c0_63 = arith.constant 0 : index
    %158 = vector.load %arg14[%c0_62, %c0_63] : memref<1x32xf32, #tpu.memory_space<vmem>>, vector<1x32xf32>
    %159 = vector.broadcast %158 : vector<1x32xf32> to vector<5x32xf32>
    %160 = arith.addf %157, %159 : vector<5x32xf32>
    %161 = arith.addf %116, %160 : vector<5x32xf32>
    %c0_64 = arith.constant 0 : index
    %c0_65 = arith.constant 0 : index
    %c0_66 = arith.constant 0 : index
    %162 = vector.load %arg15[%c0_64, %c0_65, %c0_66] : memref<1x5x32xf32, #tpu.memory_space<vmem>>, vector<1x5x32xf32>
    %163 = vector.shape_cast %162 : vector<1x5x32xf32> to vector<5x32xf32>
    %164 = vector.shape_cast %161 : vector<5x32xf32> to vector<1x5x32xf32>
    tpu.vector_store %arg15[%c0_64, %c0_65, %c0_66], %164 {strides = array<i32>} : memref<1x5x32xf32, #tpu.memory_space<vmem>>, vector<1x5x32xf32>,
    return
  }
  func.func @transform_0(%arg0: i32) -> (i32, i32, i32) {
    %c0_i32 = arith.constant 0 : i32
    %c0_i32_0 = arith.constant 0 : i32
    %c0_i32_1 = arith.constant 0 : i32
    return %arg0, %c0_i32, %c0_i32_0 : i32, i32, i32
  }
  func.func @transform_1(%arg0: i32) -> (i32, i32, i32) {
    %c0_i32 = arith.constant 0 : i32
    %c0_i32_0 = arith.constant 0 : i32
    %c0_i32_1 = arith.constant 0 : i32
    return %arg0, %c0_i32, %c0_i32_0 : i32, i32, i32
  }
  func.func @transform_2(%arg0: i32) -> (i32, i32) {
    %c0_i32 = arith.constant 0 : i32
    %c0_i32_0 = arith.constant 0 : i32
    %c0_i32_1 = arith.constant 0 : i32
    return %c0_i32, %c0_i32_0 : i32, i32
  }
  func.func @transform_3(%arg0: i32) -> (i32, i32) {
    %c0_i32 = arith.constant 0 : i32
    %c0_i32_0 = arith.constant 0 : i32
    %c0_i32_1 = arith.constant 0 : i32
    return %c0_i32, %c0_i32_0 : i32, i32
  }
  func.func @transform_4(%arg0: i32) -> (i32, i32) {
    %c0_i32 = arith.constant 0 : i32
    %c0_i32_0 = arith.constant 0 : i32
    %c0_i32_1 = arith.constant 0 : i32
    return %c0_i32, %c0_i32_0 : i32, i32
  }
  func.func @transform_5(%arg0: i32) -> (i32, i32) {
    %c0_i32 = arith.constant 0 : i32
    %c0_i32_0 = arith.constant 0 : i32
    %c0_i32_1 = arith.constant 0 : i32
    return %c0_i32, %c0_i32_0 : i32, i32
  }
  func.func @transform_6(%arg0: i32) -> (i32, i32) {
    %c0_i32 = arith.constant 0 : i32
    %c0_i32_0 = arith.constant 0 : i32
    %c0_i32_1 = arith.constant 0 : i32
    return %c0_i32, %c0_i32_0 : i32, i32
  }
  func.func @transform_7(%arg0: i32) -> (i32, i32) {
    %c0_i32 = arith.constant 0 : i32
    %c0_i32_0 = arith.constant 0 : i32
    %c0_i32_1 = arith.constant 0 : i32
    return %c0_i32, %c0_i32_0 : i32, i32
  }
  func.func @transform_8(%arg0: i32) -> (i32, i32) {
    %c0_i32 = arith.constant 0 : i32
    %c0_i32_0 = arith.constant 0 : i32
    %c0_i32_1 = arith.constant 0 : i32
    return %c0_i32, %c0_i32_0 : i32, i32
  }
  func.func @transform_9(%arg0: i32) -> (i32, i32) {
    %c0_i32 = arith.constant 0 : i32
    %c0_i32_0 = arith.constant 0 : i32
    %c0_i32_1 = arith.constant 0 : i32
    return %c0_i32, %c0_i32_0 : i32, i32
  }
  func.func @transform_10(%arg0: i32) -> (i32, i32) {
    %c0_i32 = arith.constant 0 : i32
    %c0_i32_0 = arith.constant 0 : i32
    %c0_i32_1 = arith.constant 0 : i32
    return %c0_i32, %c0_i32_0 : i32, i32
  }
  func.func @transform_11(%arg0: i32) -> (i32, i32) {
    %c0_i32 = arith.constant 0 : i32
    %c0_i32_0 = arith.constant 0 : i32
    %c0_i32_1 = arith.constant 0 : i32
    return %c0_i32, %c0_i32_0 : i32, i32
  }
  func.func @transform_12(%arg0: i32) -> (i32, i32) {
    %c0_i32 = arith.constant 0 : i32
    %c0_i32_0 = arith.constant 0 : i32
    %c0_i32_1 = arith.constant 0 : i32
    return %c0_i32, %c0_i32_0 : i32, i32
  }
  func.func @transform_13(%arg0: i32) -> (i32, i32) {
    %c0_i32 = arith.constant 0 : i32
    %c0_i32_0 = arith.constant 0 : i32
    %c0_i32_1 = arith.constant 0 : i32
    return %c0_i32, %c0_i32_0 : i32, i32
  }
  func.func @transform_14(%arg0: i32) -> (i32, i32, i32) {
    %c0_i32 = arith.constant 0 : i32
    %c0_i32_0 = arith.constant 0 : i32
    %c0_i32_1 = arith.constant 0 : i32
    return %arg0, %c0_i32, %c0_i32_0 : i32, i32, i32
  }
}

module attributes {stable_mosaic.version = 11 : i64} {
  func.func @_encoder_layer_kernel(%arg0: i32, %arg1: memref<1x8x32xf32, #tpu.memory_space<vmem>>, %arg2: memref<1x8x8xf32, #tpu.memory_space<vmem>>, %arg3: memref<1x32xf32, #tpu.memory_space<vmem>>, %arg4: memref<1x32xf32, #tpu.memory_space<vmem>>, %arg5: memref<32x96xf32, #tpu.memory_space<vmem>>, %arg6: memref<1x96xf32, #tpu.memory_space<vmem>>, %arg7: memref<32x32xf32, #tpu.memory_space<vmem>>, %arg8: memref<1x32xf32, #tpu.memory_space<vmem>>, %arg9: memref<1x32xf32, #tpu.memory_space<vmem>>, %arg10: memref<1x32xf32, #tpu.memory_space<vmem>>, %arg11: memref<32x128xf32, #tpu.memory_space<vmem>>, %arg12: memref<1x128xf32, #tpu.memory_space<vmem>>, %arg13: memref<128x32xf32, #tpu.memory_space<vmem>>, %arg14: memref<1x32xf32, #tpu.memory_space<vmem>>, %arg15: memref<1x8x32xf32, #tpu.memory_space<vmem>>) attributes {dimension_semantics = [#tpu.dimension_semantics<parallel>], iteration_bounds = array<i64: 4>, scalar_prefetch = 0 : i64, scratch_operands = 0 : i64, tpu.core_type = #tpu.core_type<tc>, window_params = [{transform_indices = @transform_0, window_bounds = array<i64: 1, 8, 32>}, {transform_indices = @transform_1, window_bounds = array<i64: 1, 8, 8>}, {pipeline_mode = #tpu.pipeline_mode<synchronous>, transform_indices = @transform_2, window_bounds = array<i64: 1, 32>}, {pipeline_mode = #tpu.pipeline_mode<synchronous>, transform_indices = @transform_3, window_bounds = array<i64: 1, 32>}, {pipeline_mode = #tpu.pipeline_mode<synchronous>, transform_indices = @transform_4, window_bounds = array<i64: 32, 96>}, {pipeline_mode = #tpu.pipeline_mode<synchronous>, transform_indices = @transform_5, window_bounds = array<i64: 1, 96>}, {pipeline_mode = #tpu.pipeline_mode<synchronous>, transform_indices = @transform_6, window_bounds = array<i64: 32, 32>}, {pipeline_mode = #tpu.pipeline_mode<synchronous>, transform_indices = @transform_7, window_bounds = array<i64: 1, 32>}, {pipeline_mode = #tpu.pipeline_mode<synchronous>, transform_indices = @transform_8, window_bounds = array<i64: 1, 32>}, {pipeline_mode = #tpu.pipeline_mode<synchronous>, transform_indices = @transform_9, window_bounds = array<i64: 1, 32>}, {pipeline_mode = #tpu.pipeline_mode<synchronous>, transform_indices = @transform_10, window_bounds = array<i64: 32, 128>}, {pipeline_mode = #tpu.pipeline_mode<synchronous>, transform_indices = @transform_11, window_bounds = array<i64: 1, 128>}, {pipeline_mode = #tpu.pipeline_mode<synchronous>, transform_indices = @transform_12, window_bounds = array<i64: 128, 32>}, {pipeline_mode = #tpu.pipeline_mode<synchronous>, transform_indices = @transform_13, window_bounds = array<i64: 1, 32>}, {transform_indices = @transform_14, window_bounds = array<i64: 1, 8, 32>}]} {
    %c0 = arith.constant 0 : index
    %c0_0 = arith.constant 0 : index
    %c0_1 = arith.constant 0 : index
    %0 = vector.load %arg1[%c0, %c0_0, %c0_1] : memref<1x8x32xf32, #tpu.memory_space<vmem>>, vector<1x8x32xf32>
    %1 = vector.shape_cast %0 : vector<1x8x32xf32> to vector<8x32xf32>
    %c0_2 = arith.constant 0 : index
    %c0_3 = arith.constant 0 : index
    %c0_4 = arith.constant 0 : index
    %2 = vector.load %arg2[%c0_2, %c0_3, %c0_4] : memref<1x8x8xf32, #tpu.memory_space<vmem>>, vector<1x8x8xf32>
    %3 = vector.shape_cast %2 : vector<1x8x8xf32> to vector<8x8xf32>
    %cst = arith.constant dense<0.000000e+00> : vector<8xf32>
    %4 = vector.multi_reduction <add>, %1, %cst [1] : vector<8x32xf32> to vector<8xf32>
    %5 = vector.shape_cast %4 : vector<8xf32> to vector<8x1xf32>
    %cst_5 = arith.constant 3.200000e+01 : f32
    %6 = vector.broadcast %cst_5 : f32 to vector<8x1xf32>
    %7 = arith.divf %5, %6 : vector<8x1xf32>
    %8 = vector.broadcast %7 : vector<8x1xf32> to vector<8x32xf32>
    %9 = arith.subf %1, %8 : vector<8x32xf32>
    %10 = vector.broadcast %7 : vector<8x1xf32> to vector<8x32xf32>
    %11 = arith.subf %1, %10 : vector<8x32xf32>
    %12 = arith.mulf %9, %11 : vector<8x32xf32>
    %cst_6 = arith.constant dense<0.000000e+00> : vector<8xf32>
    %13 = vector.multi_reduction <add>, %12, %cst_6 [1] : vector<8x32xf32> to vector<8xf32>
    %14 = vector.shape_cast %13 : vector<8xf32> to vector<8x1xf32>
    %cst_7 = arith.constant 3.200000e+01 : f32
    %15 = vector.broadcast %cst_7 : f32 to vector<8x1xf32>
    %16 = arith.divf %14, %15 : vector<8x1xf32>
    %17 = vector.broadcast %7 : vector<8x1xf32> to vector<8x32xf32>
    %18 = arith.subf %1, %17 : vector<8x32xf32>
    %cst_8 = arith.constant 9.99999974E-6 : f32
    %19 = vector.broadcast %cst_8 : f32 to vector<8x1xf32>
    %20 = arith.addf %16, %19 : vector<8x1xf32>
    %21 = math.rsqrt %20 : vector<8x1xf32>
    %22 = vector.broadcast %21 : vector<8x1xf32> to vector<8x32xf32>
    %23 = arith.mulf %18, %22 : vector<8x32xf32>
    %c0_9 = arith.constant 0 : index
    %c0_10 = arith.constant 0 : index
    %24 = vector.load %arg3[%c0_9, %c0_10] : memref<1x32xf32, #tpu.memory_space<vmem>>, vector<1x32xf32>
    %25 = vector.broadcast %24 : vector<1x32xf32> to vector<8x32xf32>
    %26 = arith.mulf %23, %25 : vector<8x32xf32>
    %c0_11 = arith.constant 0 : index
    %c0_12 = arith.constant 0 : index
    %27 = vector.load %arg4[%c0_11, %c0_12] : memref<1x32xf32, #tpu.memory_space<vmem>>, vector<1x32xf32>
    %28 = vector.broadcast %27 : vector<1x32xf32> to vector<8x32xf32>
    %29 = arith.addf %26, %28 : vector<8x32xf32>
    %c0_13 = arith.constant 0 : index
    %c0_14 = arith.constant 0 : index
    %30 = vector.load %arg5[%c0_13, %c0_14] : memref<32x96xf32, #tpu.memory_space<vmem>>, vector<32x96xf32>
    %cst_15 = arith.constant dense<0.000000e+00> : vector<8x96xf32>
    %31 = tpu.matmul %29, %30, %cst_15 {dimension_numbers = #tpu.dot_dimension_numbers<[1], [0], [0], [1], [0, 0, 1, 1], [], []>} : vector<8x32xf32>, vector<32x96xf32>, vector<8x96xf32> -> vector<8x96xf32>
    %c0_16 = arith.constant 0 : index
    %c0_17 = arith.constant 0 : index
    %32 = vector.load %arg6[%c0_16, %c0_17] : memref<1x96xf32, #tpu.memory_space<vmem>>, vector<1x96xf32>
    %33 = vector.broadcast %32 : vector<1x96xf32> to vector<8x96xf32>
    %34 = arith.addf %31, %33 : vector<8x96xf32>
    %35 = vector.extract_strided_slice %34 {offsets = [0, 0], sizes = [8, 32], strides = [1, 1]} : vector<8x96xf32> to vector<8x32xf32>
    %36 = vector.extract_strided_slice %34 {offsets = [0, 32], sizes = [8, 32], strides = [1, 1]} : vector<8x96xf32> to vector<8x32xf32>
    %37 = vector.extract_strided_slice %34 {offsets = [0, 64], sizes = [8, 32], strides = [1, 1]} : vector<8x96xf32> to vector<8x32xf32>
    %38 = vector.extract_strided_slice %35 {offsets = [0, 0], sizes = [8, 8], strides = [1, 1]} : vector<8x32xf32> to vector<8x8xf32>
    %cst_18 = arith.constant 0.353553385 : f32
    %39 = vector.broadcast %cst_18 : f32 to vector<8x8xf32>
    %40 = arith.mulf %38, %39 : vector<8x8xf32>
    %41 = vector.extract_strided_slice %36 {offsets = [0, 0], sizes = [8, 8], strides = [1, 1]} : vector<8x32xf32> to vector<8x8xf32>
    %42 = vector.extract_strided_slice %37 {offsets = [0, 0], sizes = [8, 8], strides = [1, 1]} : vector<8x32xf32> to vector<8x8xf32>
    %cst_19 = arith.constant dense<0.000000e+00> : vector<8x8xf32>
    %43 = tpu.matmul %40, %41, %cst_19 {dimension_numbers = #tpu.dot_dimension_numbers<[1], [1], [0], [0], [0, 0, 1, 0], [], []>} : vector<8x8xf32>, vector<8x8xf32>, vector<8x8xf32> -> vector<8x8xf32>
    %44 = arith.addf %43, %3 : vector<8x8xf32>
    %cst_20 = arith.constant dense<0xFF800000> : vector<8xf32>
    %45 = vector.multi_reduction <maximumf>, %44, %cst_20 [1] : vector<8x8xf32> to vector<8xf32>
    %46 = vector.shape_cast %45 : vector<8xf32> to vector<8x1xf32>
    %47 = vector.broadcast %46 : vector<8x1xf32> to vector<8x8xf32>
    %48 = arith.subf %44, %47 : vector<8x8xf32>
    %49 = math.exp %48 : vector<8x8xf32>
    %cst_21 = arith.constant dense<0.000000e+00> : vector<8xf32>
    %50 = vector.multi_reduction <add>, %49, %cst_21 [1] : vector<8x8xf32> to vector<8xf32>
    %51 = vector.shape_cast %50 : vector<8xf32> to vector<8x1xf32>
    %52 = tpu.reciprocal %51 {approx = true} : vector<8x1xf32> -> vector<8x1xf32>
    %53 = vector.broadcast %52 : vector<8x1xf32> to vector<8x8xf32>
    %54 = arith.mulf %49, %53 : vector<8x8xf32>
    %cst_22 = arith.constant dense<0.000000e+00> : vector<8x8xf32>
    %55 = tpu.matmul %54, %42, %cst_22 {dimension_numbers = #tpu.dot_dimension_numbers<[1], [0], [0], [1], [0, 0, 1, 1], [], []>} : vector<8x8xf32>, vector<8x8xf32>, vector<8x8xf32> -> vector<8x8xf32>
    %56 = vector.extract_strided_slice %35 {offsets = [0, 8], sizes = [8, 8], strides = [1, 1]} : vector<8x32xf32> to vector<8x8xf32>
    %cst_23 = arith.constant 0.353553385 : f32
    %57 = vector.broadcast %cst_23 : f32 to vector<8x8xf32>
    %58 = arith.mulf %56, %57 : vector<8x8xf32>
    %59 = vector.extract_strided_slice %36 {offsets = [0, 8], sizes = [8, 8], strides = [1, 1]} : vector<8x32xf32> to vector<8x8xf32>
    %60 = vector.extract_strided_slice %37 {offsets = [0, 8], sizes = [8, 8], strides = [1, 1]} : vector<8x32xf32> to vector<8x8xf32>
    %cst_24 = arith.constant dense<0.000000e+00> : vector<8x8xf32>
    %61 = tpu.matmul %58, %59, %cst_24 {dimension_numbers = #tpu.dot_dimension_numbers<[1], [1], [0], [0], [0, 0, 1, 0], [], []>} : vector<8x8xf32>, vector<8x8xf32>, vector<8x8xf32> -> vector<8x8xf32>
    %62 = arith.addf %61, %3 : vector<8x8xf32>
    %cst_25 = arith.constant dense<0xFF800000> : vector<8xf32>
    %63 = vector.multi_reduction <maximumf>, %62, %cst_25 [1] : vector<8x8xf32> to vector<8xf32>
    %64 = vector.shape_cast %63 : vector<8xf32> to vector<8x1xf32>
    %65 = vector.broadcast %64 : vector<8x1xf32> to vector<8x8xf32>
    %66 = arith.subf %62, %65 : vector<8x8xf32>
    %67 = math.exp %66 : vector<8x8xf32>
    %cst_26 = arith.constant dense<0.000000e+00> : vector<8xf32>
    %68 = vector.multi_reduction <add>, %67, %cst_26 [1] : vector<8x8xf32> to vector<8xf32>
    %69 = vector.shape_cast %68 : vector<8xf32> to vector<8x1xf32>
    %70 = tpu.reciprocal %69 {approx = true} : vector<8x1xf32> -> vector<8x1xf32>
    %71 = vector.broadcast %70 : vector<8x1xf32> to vector<8x8xf32>
    %72 = arith.mulf %67, %71 : vector<8x8xf32>
    %cst_27 = arith.constant dense<0.000000e+00> : vector<8x8xf32>
    %73 = tpu.matmul %72, %60, %cst_27 {dimension_numbers = #tpu.dot_dimension_numbers<[1], [0], [0], [1], [0, 0, 1, 1], [], []>} : vector<8x8xf32>, vector<8x8xf32>, vector<8x8xf32> -> vector<8x8xf32>
    %74 = vector.extract_strided_slice %35 {offsets = [0, 16], sizes = [8, 8], strides = [1, 1]} : vector<8x32xf32> to vector<8x8xf32>
    %cst_28 = arith.constant 0.353553385 : f32
    %75 = vector.broadcast %cst_28 : f32 to vector<8x8xf32>
    %76 = arith.mulf %74, %75 : vector<8x8xf32>
    %77 = vector.extract_strided_slice %36 {offsets = [0, 16], sizes = [8, 8], strides = [1, 1]} : vector<8x32xf32> to vector<8x8xf32>
    %78 = vector.extract_strided_slice %37 {offsets = [0, 16], sizes = [8, 8], strides = [1, 1]} : vector<8x32xf32> to vector<8x8xf32>
    %cst_29 = arith.constant dense<0.000000e+00> : vector<8x8xf32>
    %79 = tpu.matmul %76, %77, %cst_29 {dimension_numbers = #tpu.dot_dimension_numbers<[1], [1], [0], [0], [0, 0, 1, 0], [], []>} : vector<8x8xf32>, vector<8x8xf32>, vector<8x8xf32> -> vector<8x8xf32>
    %80 = arith.addf %79, %3 : vector<8x8xf32>
    %cst_30 = arith.constant dense<0xFF800000> : vector<8xf32>
    %81 = vector.multi_reduction <maximumf>, %80, %cst_30 [1] : vector<8x8xf32> to vector<8xf32>
    %82 = vector.shape_cast %81 : vector<8xf32> to vector<8x1xf32>
    %83 = vector.broadcast %82 : vector<8x1xf32> to vector<8x8xf32>
    %84 = arith.subf %80, %83 : vector<8x8xf32>
    %85 = math.exp %84 : vector<8x8xf32>
    %cst_31 = arith.constant dense<0.000000e+00> : vector<8xf32>
    %86 = vector.multi_reduction <add>, %85, %cst_31 [1] : vector<8x8xf32> to vector<8xf32>
    %87 = vector.shape_cast %86 : vector<8xf32> to vector<8x1xf32>
    %88 = tpu.reciprocal %87 {approx = true} : vector<8x1xf32> -> vector<8x1xf32>
    %89 = vector.broadcast %88 : vector<8x1xf32> to vector<8x8xf32>
    %90 = arith.mulf %85, %89 : vector<8x8xf32>
    %cst_32 = arith.constant dense<0.000000e+00> : vector<8x8xf32>
    %91 = tpu.matmul %90, %78, %cst_32 {dimension_numbers = #tpu.dot_dimension_numbers<[1], [0], [0], [1], [0, 0, 1, 1], [], []>} : vector<8x8xf32>, vector<8x8xf32>, vector<8x8xf32> -> vector<8x8xf32>
    %92 = vector.extract_strided_slice %35 {offsets = [0, 24], sizes = [8, 8], strides = [1, 1]} : vector<8x32xf32> to vector<8x8xf32>
    %cst_33 = arith.constant 0.353553385 : f32
    %93 = vector.broadcast %cst_33 : f32 to vector<8x8xf32>
    %94 = arith.mulf %92, %93 : vector<8x8xf32>
    %95 = vector.extract_strided_slice %36 {offsets = [0, 24], sizes = [8, 8], strides = [1, 1]} : vector<8x32xf32> to vector<8x8xf32>
    %96 = vector.extract_strided_slice %37 {offsets = [0, 24], sizes = [8, 8], strides = [1, 1]} : vector<8x32xf32> to vector<8x8xf32>
    %cst_34 = arith.constant dense<0.000000e+00> : vector<8x8xf32>
    %97 = tpu.matmul %94, %95, %cst_34 {dimension_numbers = #tpu.dot_dimension_numbers<[1], [1], [0], [0], [0, 0, 1, 0], [], []>} : vector<8x8xf32>, vector<8x8xf32>, vector<8x8xf32> -> vector<8x8xf32>
    %98 = arith.addf %97, %3 : vector<8x8xf32>
    %cst_35 = arith.constant dense<0xFF800000> : vector<8xf32>
    %99 = vector.multi_reduction <maximumf>, %98, %cst_35 [1] : vector<8x8xf32> to vector<8xf32>
    %100 = vector.shape_cast %99 : vector<8xf32> to vector<8x1xf32>
    %101 = vector.broadcast %100 : vector<8x1xf32> to vector<8x8xf32>
    %102 = arith.subf %98, %101 : vector<8x8xf32>
    %103 = math.exp %102 : vector<8x8xf32>
    %cst_36 = arith.constant dense<0.000000e+00> : vector<8xf32>
    %104 = vector.multi_reduction <add>, %103, %cst_36 [1] : vector<8x8xf32> to vector<8xf32>
    %105 = vector.shape_cast %104 : vector<8xf32> to vector<8x1xf32>
    %106 = tpu.reciprocal %105 {approx = true} : vector<8x1xf32> -> vector<8x1xf32>
    %107 = vector.broadcast %106 : vector<8x1xf32> to vector<8x8xf32>
    %108 = arith.mulf %103, %107 : vector<8x8xf32>
    %cst_37 = arith.constant dense<0.000000e+00> : vector<8x8xf32>
    %109 = tpu.matmul %108, %96, %cst_37 {dimension_numbers = #tpu.dot_dimension_numbers<[1], [0], [0], [1], [0, 0, 1, 1], [], []>} : vector<8x8xf32>, vector<8x8xf32>, vector<8x8xf32> -> vector<8x8xf32>
    %110 = tpu.concatenate %55, %73, %91, %109 in 1 : vector<8x8xf32>, vector<8x8xf32>, vector<8x8xf32>, vector<8x8xf32> -> vector<8x32xf32>
    %c0_38 = arith.constant 0 : index
    %c0_39 = arith.constant 0 : index
    %111 = vector.load %arg7[%c0_38, %c0_39] : memref<32x32xf32, #tpu.memory_space<vmem>>, vector<32x32xf32>
    %cst_40 = arith.constant dense<0.000000e+00> : vector<8x32xf32>
    %112 = tpu.matmul %110, %111, %cst_40 {dimension_numbers = #tpu.dot_dimension_numbers<[1], [0], [0], [1], [0, 0, 1, 1], [], []>} : vector<8x32xf32>, vector<32x32xf32>, vector<8x32xf32> -> vector<8x32xf32>
    %c0_41 = arith.constant 0 : index
    %c0_42 = arith.constant 0 : index
    %113 = vector.load %arg8[%c0_41, %c0_42] : memref<1x32xf32, #tpu.memory_space<vmem>>, vector<1x32xf32>
    %114 = vector.broadcast %113 : vector<1x32xf32> to vector<8x32xf32>
    %115 = arith.addf %112, %114 : vector<8x32xf32>
    %116 = arith.addf %1, %115 : vector<8x32xf32>
    %cst_43 = arith.constant dense<0.000000e+00> : vector<8xf32>
    %117 = vector.multi_reduction <add>, %116, %cst_43 [1] : vector<8x32xf32> to vector<8xf32>
    %118 = vector.shape_cast %117 : vector<8xf32> to vector<8x1xf32>
    %cst_44 = arith.constant 3.200000e+01 : f32
    %119 = vector.broadcast %cst_44 : f32 to vector<8x1xf32>
    %120 = arith.divf %118, %119 : vector<8x1xf32>
    %121 = vector.broadcast %120 : vector<8x1xf32> to vector<8x32xf32>
    %122 = arith.subf %116, %121 : vector<8x32xf32>
    %123 = vector.broadcast %120 : vector<8x1xf32> to vector<8x32xf32>
    %124 = arith.subf %116, %123 : vector<8x32xf32>
    %125 = arith.mulf %122, %124 : vector<8x32xf32>
    %cst_45 = arith.constant dense<0.000000e+00> : vector<8xf32>
    %126 = vector.multi_reduction <add>, %125, %cst_45 [1] : vector<8x32xf32> to vector<8xf32>
    %127 = vector.shape_cast %126 : vector<8xf32> to vector<8x1xf32>
    %cst_46 = arith.constant 3.200000e+01 : f32
    %128 = vector.broadcast %cst_46 : f32 to vector<8x1xf32>
    %129 = arith.divf %127, %128 : vector<8x1xf32>
    %130 = vector.broadcast %120 : vector<8x1xf32> to vector<8x32xf32>
    %131 = arith.subf %116, %130 : vector<8x32xf32>
    %cst_47 = arith.constant 9.99999974E-6 : f32
    %132 = vector.broadcast %cst_47 : f32 to vector<8x1xf32>
    %133 = arith.addf %129, %132 : vector<8x1xf32>
    %134 = math.rsqrt %133 : vector<8x1xf32>
    %135 = vector.broadcast %134 : vector<8x1xf32> to vector<8x32xf32>
    %136 = arith.mulf %131, %135 : vector<8x32xf32>
    %c0_48 = arith.constant 0 : index
    %c0_49 = arith.constant 0 : index
    %137 = vector.load %arg9[%c0_48, %c0_49] : memref<1x32xf32, #tpu.memory_space<vmem>>, vector<1x32xf32>
    %138 = vector.broadcast %137 : vector<1x32xf32> to vector<8x32xf32>
    %139 = arith.mulf %136, %138 : vector<8x32xf32>
    %c0_50 = arith.constant 0 : index
    %c0_51 = arith.constant 0 : index
    %140 = vector.load %arg10[%c0_50, %c0_51] : memref<1x32xf32, #tpu.memory_space<vmem>>, vector<1x32xf32>
    %141 = vector.broadcast %140 : vector<1x32xf32> to vector<8x32xf32>
    %142 = arith.addf %139, %141 : vector<8x32xf32>
    %c0_52 = arith.constant 0 : index
    %c0_53 = arith.constant 0 : index
    %143 = vector.load %arg11[%c0_52, %c0_53] : memref<32x128xf32, #tpu.memory_space<vmem>>, vector<32x128xf32>
    %cst_54 = arith.constant dense<0.000000e+00> : vector<8x128xf32>
    %144 = tpu.matmul %142, %143, %cst_54 {dimension_numbers = #tpu.dot_dimension_numbers<[1], [0], [0], [1], [0, 0, 1, 1], [], []>} : vector<8x32xf32>, vector<32x128xf32>, vector<8x128xf32> -> vector<8x128xf32>
    %c0_55 = arith.constant 0 : index
    %c0_56 = arith.constant 0 : index
    %145 = vector.load %arg12[%c0_55, %c0_56] : memref<1x128xf32, #tpu.memory_space<vmem>>, vector<1x128xf32>
    %146 = vector.broadcast %145 : vector<1x128xf32> to vector<8x128xf32>
    %147 = arith.addf %144, %146 : vector<8x128xf32>
    %cst_57 = arith.constant 1.702000e+00 : f32
    %148 = vector.broadcast %cst_57 : f32 to vector<8x128xf32>
    %149 = arith.mulf %148, %147 : vector<8x128xf32>
    %150 = arith.negf %149 : vector<8x128xf32>
    %151 = math.exp %150 : vector<8x128xf32>
    %cst_58 = arith.constant 1.000000e+00 : f32
    %152 = vector.broadcast %cst_58 : f32 to vector<8x128xf32>
    %153 = arith.addf %152, %151 : vector<8x128xf32>
    %154 = arith.divf %152, %153 : vector<8x128xf32>
    %155 = arith.mulf %147, %154 : vector<8x128xf32>
    %c0_59 = arith.constant 0 : index
    %c0_60 = arith.constant 0 : index
    %156 = vector.load %arg13[%c0_59, %c0_60] : memref<128x32xf32, #tpu.memory_space<vmem>>, vector<128x32xf32>
    %cst_61 = arith.constant dense<0.000000e+00> : vector<8x32xf32>
    %157 = tpu.matmul %155, %156, %cst_61 {dimension_numbers = #tpu.dot_dimension_numbers<[1], [0], [0], [1], [0, 0, 1, 1], [], []>} : vector<8x128xf32>, vector<128x32xf32>, vector<8x32xf32> -> vector<8x32xf32>
    %c0_62 = arith.constant 0 : index
    %c0_63 = arith.constant 0 : index
    %158 = vector.load %arg14[%c0_62, %c0_63] : memref<1x32xf32, #tpu.memory_space<vmem>>, vector<1x32xf32>
    %159 = vector.broadcast %158 : vector<1x32xf32> to vector<8x32xf32>
    %160 = arith.addf %157, %159 : vector<8x32xf32>
    %161 = arith.addf %116, %160 : vector<8x32xf32>
    %c0_64 = arith.constant 0 : index
    %c0_65 = arith.constant 0 : index
    %c0_66 = arith.constant 0 : index
    %162 = vector.load %arg15[%c0_64, %c0_65, %c0_66] : memref<1x8x32xf32, #tpu.memory_space<vmem>>, vector<1x8x32xf32>
    %163 = vector.shape_cast %162 : vector<1x8x32xf32> to vector<8x32xf32>
    %164 = vector.shape_cast %161 : vector<8x32xf32> to vector<1x8x32xf32>
    tpu.vector_store %arg15[%c0_64, %c0_65, %c0_66], %164 {strides = array<i32>} : memref<1x8x32xf32, #tpu.memory_space<vmem>>, vector<1x8x32xf32>,
    return
  }
  func.func @transform_0(%arg0: i32) -> (i32, i32, i32) {
    %c0_i32 = arith.constant 0 : i32
    %c0_i32_0 = arith.constant 0 : i32
    %c0_i32_1 = arith.constant 0 : i32
    return %arg0, %c0_i32, %c0_i32_0 : i32, i32, i32
  }
  func.func @transform_1(%arg0: i32) -> (i32, i32, i32) {
    %c0_i32 = arith.constant 0 : i32
    %c0_i32_0 = arith.constant 0 : i32
    %c0_i32_1 = arith.constant 0 : i32
    return %arg0, %c0_i32, %c0_i32_0 : i32, i32, i32
  }
  func.func @transform_2(%arg0: i32) -> (i32, i32) {
    %c0_i32 = arith.constant 0 : i32
    %c0_i32_0 = arith.constant 0 : i32
    %c0_i32_1 = arith.constant 0 : i32
    return %c0_i32, %c0_i32_0 : i32, i32
  }
  func.func @transform_3(%arg0: i32) -> (i32, i32) {
    %c0_i32 = arith.constant 0 : i32
    %c0_i32_0 = arith.constant 0 : i32
    %c0_i32_1 = arith.constant 0 : i32
    return %c0_i32, %c0_i32_0 : i32, i32
  }
  func.func @transform_4(%arg0: i32) -> (i32, i32) {
    %c0_i32 = arith.constant 0 : i32
    %c0_i32_0 = arith.constant 0 : i32
    %c0_i32_1 = arith.constant 0 : i32
    return %c0_i32, %c0_i32_0 : i32, i32
  }
  func.func @transform_5(%arg0: i32) -> (i32, i32) {
    %c0_i32 = arith.constant 0 : i32
    %c0_i32_0 = arith.constant 0 : i32
    %c0_i32_1 = arith.constant 0 : i32
    return %c0_i32, %c0_i32_0 : i32, i32
  }
  func.func @transform_6(%arg0: i32) -> (i32, i32) {
    %c0_i32 = arith.constant 0 : i32
    %c0_i32_0 = arith.constant 0 : i32
    %c0_i32_1 = arith.constant 0 : i32
    return %c0_i32, %c0_i32_0 : i32, i32
  }
  func.func @transform_7(%arg0: i32) -> (i32, i32) {
    %c0_i32 = arith.constant 0 : i32
    %c0_i32_0 = arith.constant 0 : i32
    %c0_i32_1 = arith.constant 0 : i32
    return %c0_i32, %c0_i32_0 : i32, i32
  }
  func.func @transform_8(%arg0: i32) -> (i32, i32) {
    %c0_i32 = arith.constant 0 : i32
    %c0_i32_0 = arith.constant 0 : i32
    %c0_i32_1 = arith.constant 0 : i32
    return %c0_i32, %c0_i32_0 : i32, i32
  }
  func.func @transform_9(%arg0: i32) -> (i32, i32) {
    %c0_i32 = arith.constant 0 : i32
    %c0_i32_0 = arith.constant 0 : i32
    %c0_i32_1 = arith.constant 0 : i32
    return %c0_i32, %c0_i32_0 : i32, i32
  }
  func.func @transform_10(%arg0: i32) -> (i32, i32) {
    %c0_i32 = arith.constant 0 : i32
    %c0_i32_0 = arith.constant 0 : i32
    %c0_i32_1 = arith.constant 0 : i32
    return %c0_i32, %c0_i32_0 : i32, i32
  }
  func.func @transform_11(%arg0: i32) -> (i32, i32) {
    %c0_i32 = arith.constant 0 : i32
    %c0_i32_0 = arith.constant 0 : i32
    %c0_i32_1 = arith.constant 0 : i32
    return %c0_i32, %c0_i32_0 : i32, i32
  }
  func.func @transform_12(%arg0: i32) -> (i32, i32) {
    %c0_i32 = arith.constant 0 : i32
    %c0_i32_0 = arith.constant 0 : i32
    %c0_i32_1 = arith.constant 0 : i32
    return %c0_i32, %c0_i32_0 : i32, i32
  }
  func.func @transform_13(%arg0: i32) -> (i32, i32) {
    %c0_i32 = arith.constant 0 : i32
    %c0_i32_0 = arith.constant 0 : i32
    %c0_i32_1 = arith.constant 0 : i32
    return %c0_i32, %c0_i32_0 : i32, i32
  }
  func.func @transform_14(%arg0: i32) -> (i32, i32, i32) {
    %c0_i32 = arith.constant 0 : i32
    %c0_i32_0 = arith.constant 0 : i32
    %c0_i32_1 = arith.constant 0 : i32
    return %arg0, %c0_i32, %c0_i32_0 : i32, i32, i32
  }
}

module attributes {stable_mosaic.version = 11 : i64} {
  func.func @_text_project_kernel(%arg0: memref<4x32xf32, #tpu.memory_space<vmem>>, %arg1: memref<1x32xf32, #tpu.memory_space<vmem>>, %arg2: memref<1x32xf32, #tpu.memory_space<vmem>>, %arg3: memref<32x16xf32, #tpu.memory_space<vmem>>, %arg4: memref<4x16xf32, #tpu.memory_space<vmem>>) attributes {dimension_semantics = [], scalar_prefetch = 0 : i64, scratch_operands = 0 : i64, tpu.core_type = #tpu.core_type<tc>} {
    %c0 = arith.constant 0 : index
    %c0_0 = arith.constant 0 : index
    %0 = vector.load %arg0[%c0, %c0_0] : memref<4x32xf32, #tpu.memory_space<vmem>>, vector<4x32xf32>
    %cst = arith.constant dense<0.000000e+00> : vector<4xf32>
    %1 = vector.multi_reduction <add>, %0, %cst [1] : vector<4x32xf32> to vector<4xf32>
    %2 = vector.shape_cast %1 : vector<4xf32> to vector<4x1xf32>
    %cst_1 = arith.constant 3.200000e+01 : f32
    %3 = vector.broadcast %cst_1 : f32 to vector<4x1xf32>
    %4 = arith.divf %2, %3 : vector<4x1xf32>
    %5 = vector.broadcast %4 : vector<4x1xf32> to vector<4x32xf32>
    %6 = arith.subf %0, %5 : vector<4x32xf32>
    %7 = vector.broadcast %4 : vector<4x1xf32> to vector<4x32xf32>
    %8 = arith.subf %0, %7 : vector<4x32xf32>
    %9 = arith.mulf %6, %8 : vector<4x32xf32>
    %cst_2 = arith.constant dense<0.000000e+00> : vector<4xf32>
    %10 = vector.multi_reduction <add>, %9, %cst_2 [1] : vector<4x32xf32> to vector<4xf32>
    %11 = vector.shape_cast %10 : vector<4xf32> to vector<4x1xf32>
    %cst_3 = arith.constant 3.200000e+01 : f32
    %12 = vector.broadcast %cst_3 : f32 to vector<4x1xf32>
    %13 = arith.divf %11, %12 : vector<4x1xf32>
    %14 = vector.broadcast %4 : vector<4x1xf32> to vector<4x32xf32>
    %15 = arith.subf %0, %14 : vector<4x32xf32>
    %cst_4 = arith.constant 9.99999974E-6 : f32
    %16 = vector.broadcast %cst_4 : f32 to vector<4x1xf32>
    %17 = arith.addf %13, %16 : vector<4x1xf32>
    %18 = math.rsqrt %17 : vector<4x1xf32>
    %19 = vector.broadcast %18 : vector<4x1xf32> to vector<4x32xf32>
    %20 = arith.mulf %15, %19 : vector<4x32xf32>
    %c0_5 = arith.constant 0 : index
    %c0_6 = arith.constant 0 : index
    %21 = vector.load %arg1[%c0_5, %c0_6] : memref<1x32xf32, #tpu.memory_space<vmem>>, vector<1x32xf32>
    %22 = vector.broadcast %21 : vector<1x32xf32> to vector<4x32xf32>
    %23 = arith.mulf %20, %22 : vector<4x32xf32>
    %c0_7 = arith.constant 0 : index
    %c0_8 = arith.constant 0 : index
    %24 = vector.load %arg2[%c0_7, %c0_8] : memref<1x32xf32, #tpu.memory_space<vmem>>, vector<1x32xf32>
    %25 = vector.broadcast %24 : vector<1x32xf32> to vector<4x32xf32>
    %26 = arith.addf %23, %25 : vector<4x32xf32>
    %c0_9 = arith.constant 0 : index
    %c0_10 = arith.constant 0 : index
    %27 = vector.load %arg3[%c0_9, %c0_10] : memref<32x16xf32, #tpu.memory_space<vmem>>, vector<32x16xf32>
    %cst_11 = arith.constant dense<0.000000e+00> : vector<4x16xf32>
    %28 = tpu.matmul %26, %27, %cst_11 {dimension_numbers = #tpu.dot_dimension_numbers<[1], [0], [0], [1], [0, 0, 1, 1], [], []>} : vector<4x32xf32>, vector<32x16xf32>, vector<4x16xf32> -> vector<4x16xf32>
    %29 = arith.mulf %28, %28 : vector<4x16xf32>
    %cst_12 = arith.constant dense<0.000000e+00> : vector<4xf32>
    %30 = vector.multi_reduction <add>, %29, %cst_12 [1] : vector<4x16xf32> to vector<4xf32>
    %31 = vector.shape_cast %30 : vector<4xf32> to vector<4x1xf32>
    %32 = math.sqrt %31 : vector<4x1xf32>
    %cst_13 = arith.constant 9.99999997E-7 : f32
    %33 = vector.broadcast %cst_13 : f32 to vector<4x1xf32>
    %34 = arith.addf %32, %33 : vector<4x1xf32>
    %35 = vector.broadcast %34 : vector<4x1xf32> to vector<4x16xf32>
    %36 = arith.divf %28, %35 : vector<4x16xf32>
    %c0_14 = arith.constant 0 : index
    %c0_15 = arith.constant 0 : index
    %37 = vector.load %arg4[%c0_14, %c0_15] : memref<4x16xf32, #tpu.memory_space<vmem>>, vector<4x16xf32>
    tpu.vector_store %arg4[%c0_14, %c0_15], %36 {strides = array<i32>} : memref<4x16xf32, #tpu.memory_space<vmem>>, vector<4x16xf32>,
    return
  }
}

module attributes {stable_mosaic.version = 11 : i64} {
  func.func @_detection_head_kernel(%arg0: i32, %arg1: memref<1x5x32xf32, #tpu.memory_space<vmem>>, %arg2: memref<1x2x16xf32, #tpu.memory_space<vmem>>, %arg3: memref<1x1x2xf32, #tpu.memory_space<vmem>>, %arg4: memref<1x32xf32, #tpu.memory_space<vmem>>, %arg5: memref<1x32xf32, #tpu.memory_space<vmem>>, %arg6: memref<1x32xf32, #tpu.memory_space<vmem>>, %arg7: memref<1x32xf32, #tpu.memory_space<vmem>>, %arg8: memref<32x51xf32, #tpu.memory_space<vmem>>, %arg9: memref<1x51xf32, #tpu.memory_space<vmem>>, %arg10: memref<32x32xf32, #tpu.memory_space<vmem>>, %arg11: memref<1x32xf32, #tpu.memory_space<vmem>>, %arg12: memref<32x4xf32, #tpu.memory_space<vmem>>, %arg13: memref<1x4xf32, #tpu.memory_space<vmem>>, %arg14: memref<4x4xf32, #tpu.memory_space<vmem>>, %arg15: memref<1x4x2xf32, #tpu.memory_space<vmem>>, %arg16: memref<1x4x1xf32, #tpu.memory_space<vmem>>, %arg17: memref<1x4x4xf32, #tpu.memory_space<vmem>>, %arg18: memref<1x4x32xf32, #tpu.memory_space<vmem>>, %arg19: memref<1x4x16xf32, #tpu.memory_space<vmem>>) attributes {dimension_semantics = [#tpu.dimension_semantics<parallel>], iteration_bounds = array<i64: 2>, scalar_prefetch = 0 : i64, scratch_operands = 0 : i64, tpu.core_type = #tpu.core_type<tc>, window_params = [{transform_indices = @transform_0, window_bounds = array<i64: 1, 5, 32>}, {transform_indices = @transform_1, window_bounds = array<i64: 1, 2, 16>}, {transform_indices = @transform_2, window_bounds = array<i64: 1, 1, 2>}, {pipeline_mode = #tpu.pipeline_mode<synchronous>, transform_indices = @transform_3, window_bounds = array<i64: 1, 32>}, {pipeline_mode = #tpu.pipeline_mode<synchronous>, transform_indices = @transform_4, window_bounds = array<i64: 1, 32>}, {pipeline_mode = #tpu.pipeline_mode<synchronous>, transform_indices = @transform_5, window_bounds = array<i64: 1, 32>}, {pipeline_mode = #tpu.pipeline_mode<synchronous>, transform_indices = @transform_6, window_bounds = array<i64: 1, 32>}, {pipeline_mode = #tpu.pipeline_mode<synchronous>, transform_indices = @transform_7, window_bounds = array<i64: 32, 51>}, {pipeline_mode = #tpu.pipeline_mode<synchronous>, transform_indices = @transform_8, window_bounds = array<i64: 1, 51>}, {pipeline_mode = #tpu.pipeline_mode<synchronous>, transform_indices = @transform_9, window_bounds = array<i64: 32, 32>}, {pipeline_mode = #tpu.pipeline_mode<synchronous>, transform_indices = @transform_10, window_bounds = array<i64: 1, 32>}, {pipeline_mode = #tpu.pipeline_mode<synchronous>, transform_indices = @transform_11, window_bounds = array<i64: 32, 4>}, {pipeline_mode = #tpu.pipeline_mode<synchronous>, transform_indices = @transform_12, window_bounds = array<i64: 1, 4>}, {pipeline_mode = #tpu.pipeline_mode<synchronous>, transform_indices = @transform_13, window_bounds = array<i64: 4, 4>}, {transform_indices = @transform_14, window_bounds = array<i64: 1, 4, 2>}, {transform_indices = @transform_15, window_bounds = array<i64: 1, 4, 1>}, {transform_indices = @transform_16, window_bounds = array<i64: 1, 4, 4>}, {transform_indices = @transform_17, window_bounds = array<i64: 1, 4, 32>}, {transform_indices = @transform_18, window_bounds = array<i64: 1, 4, 16>}]} {
    %c0 = arith.constant 0 : index
    %c0_0 = arith.constant 0 : index
    %c0_1 = arith.constant 0 : index
    %0 = vector.load %arg1[%c0, %c0_0, %c0_1] : memref<1x5x32xf32, #tpu.memory_space<vmem>>, vector<1x5x32xf32>
    %1 = vector.shape_cast %0 : vector<1x5x32xf32> to vector<5x32xf32>
    %cst = arith.constant dense<0.000000e+00> : vector<5xf32>
    %2 = vector.multi_reduction <add>, %1, %cst [1] : vector<5x32xf32> to vector<5xf32>
    %3 = vector.shape_cast %2 : vector<5xf32> to vector<5x1xf32>
    %cst_2 = arith.constant 3.200000e+01 : f32
    %4 = vector.broadcast %cst_2 : f32 to vector<5x1xf32>
    %5 = arith.divf %3, %4 : vector<5x1xf32>
    %6 = vector.broadcast %5 : vector<5x1xf32> to vector<5x32xf32>
    %7 = arith.subf %1, %6 : vector<5x32xf32>
    %8 = vector.broadcast %5 : vector<5x1xf32> to vector<5x32xf32>
    %9 = arith.subf %1, %8 : vector<5x32xf32>
    %10 = arith.mulf %7, %9 : vector<5x32xf32>
    %cst_3 = arith.constant dense<0.000000e+00> : vector<5xf32>
    %11 = vector.multi_reduction <add>, %10, %cst_3 [1] : vector<5x32xf32> to vector<5xf32>
    %12 = vector.shape_cast %11 : vector<5xf32> to vector<5x1xf32>
    %cst_4 = arith.constant 3.200000e+01 : f32
    %13 = vector.broadcast %cst_4 : f32 to vector<5x1xf32>
    %14 = arith.divf %12, %13 : vector<5x1xf32>
    %15 = vector.broadcast %5 : vector<5x1xf32> to vector<5x32xf32>
    %16 = arith.subf %1, %15 : vector<5x32xf32>
    %cst_5 = arith.constant 9.99999974E-6 : f32
    %17 = vector.broadcast %cst_5 : f32 to vector<5x1xf32>
    %18 = arith.addf %14, %17 : vector<5x1xf32>
    %19 = math.rsqrt %18 : vector<5x1xf32>
    %20 = vector.broadcast %19 : vector<5x1xf32> to vector<5x32xf32>
    %21 = arith.mulf %16, %20 : vector<5x32xf32>
    %c0_6 = arith.constant 0 : index
    %c0_7 = arith.constant 0 : index
    %22 = vector.load %arg4[%c0_6, %c0_7] : memref<1x32xf32, #tpu.memory_space<vmem>>, vector<1x32xf32>
    %23 = vector.broadcast %22 : vector<1x32xf32> to vector<5x32xf32>
    %24 = arith.mulf %21, %23 : vector<5x32xf32>
    %c0_8 = arith.constant 0 : index
    %c0_9 = arith.constant 0 : index
    %25 = vector.load %arg5[%c0_8, %c0_9] : memref<1x32xf32, #tpu.memory_space<vmem>>, vector<1x32xf32>
    %26 = vector.broadcast %25 : vector<1x32xf32> to vector<5x32xf32>
    %27 = arith.addf %24, %26 : vector<5x32xf32>
    %28 = vector.extract_strided_slice %27 {offsets = [0, 0], sizes = [1, 32], strides = [1, 1]} : vector<5x32xf32> to vector<1x32xf32>
    %29 = vector.extract_strided_slice %27 {offsets = [1, 0], sizes = [4, 32], strides = [1, 1]} : vector<5x32xf32> to vector<4x32xf32>
    %30 = vector.broadcast %28 : vector<1x32xf32> to vector<4x32xf32>
    %31 = arith.mulf %29, %30 : vector<4x32xf32>
    %cst_10 = arith.constant dense<0.000000e+00> : vector<4xf32>
    %32 = vector.multi_reduction <add>, %31, %cst_10 [1] : vector<4x32xf32> to vector<4xf32>
    %33 = vector.shape_cast %32 : vector<4xf32> to vector<4x1xf32>
    %cst_11 = arith.constant 3.200000e+01 : f32
    %34 = vector.broadcast %cst_11 : f32 to vector<4x1xf32>
    %35 = arith.divf %33, %34 : vector<4x1xf32>
    %36 = vector.broadcast %35 : vector<4x1xf32> to vector<4x32xf32>
    %37 = arith.subf %31, %36 : vector<4x32xf32>
    %38 = vector.broadcast %35 : vector<4x1xf32> to vector<4x32xf32>
    %39 = arith.subf %31, %38 : vector<4x32xf32>
    %40 = arith.mulf %37, %39 : vector<4x32xf32>
    %cst_12 = arith.constant dense<0.000000e+00> : vector<4xf32>
    %41 = vector.multi_reduction <add>, %40, %cst_12 [1] : vector<4x32xf32> to vector<4xf32>
    %42 = vector.shape_cast %41 : vector<4xf32> to vector<4x1xf32>
    %cst_13 = arith.constant 3.200000e+01 : f32
    %43 = vector.broadcast %cst_13 : f32 to vector<4x1xf32>
    %44 = arith.divf %42, %43 : vector<4x1xf32>
    %45 = vector.broadcast %35 : vector<4x1xf32> to vector<4x32xf32>
    %46 = arith.subf %31, %45 : vector<4x32xf32>
    %cst_14 = arith.constant 9.99999974E-6 : f32
    %47 = vector.broadcast %cst_14 : f32 to vector<4x1xf32>
    %48 = arith.addf %44, %47 : vector<4x1xf32>
    %49 = math.rsqrt %48 : vector<4x1xf32>
    %50 = vector.broadcast %49 : vector<4x1xf32> to vector<4x32xf32>
    %51 = arith.mulf %46, %50 : vector<4x32xf32>
    %c0_15 = arith.constant 0 : index
    %c0_16 = arith.constant 0 : index
    %52 = vector.load %arg6[%c0_15, %c0_16] : memref<1x32xf32, #tpu.memory_space<vmem>>, vector<1x32xf32>
    %53 = vector.broadcast %52 : vector<1x32xf32> to vector<4x32xf32>
    %54 = arith.mulf %51, %53 : vector<4x32xf32>
    %c0_17 = arith.constant 0 : index
    %c0_18 = arith.constant 0 : index
    %55 = vector.load %arg7[%c0_17, %c0_18] : memref<1x32xf32, #tpu.memory_space<vmem>>, vector<1x32xf32>
    %56 = vector.broadcast %55 : vector<1x32xf32> to vector<4x32xf32>
    %57 = arith.addf %54, %56 : vector<4x32xf32>
    %c0_19 = arith.constant 0 : index
    %c0_20 = arith.constant 0 : index
    %58 = vector.load %arg8[%c0_19, %c0_20] : memref<32x51xf32, #tpu.memory_space<vmem>>, vector<32x51xf32>
    %cst_21 = arith.constant dense<0.000000e+00> : vector<4x51xf32>
    %59 = tpu.matmul %57, %58, %cst_21 {dimension_numbers = #tpu.dot_dimension_numbers<[1], [0], [0], [1], [0, 0, 1, 1], [], []>} : vector<4x32xf32>, vector<32x51xf32>, vector<4x51xf32> -> vector<4x51xf32>
    %c0_22 = arith.constant 0 : index
    %c0_23 = arith.constant 0 : index
    %60 = vector.load %arg9[%c0_22, %c0_23] : memref<1x51xf32, #tpu.memory_space<vmem>>, vector<1x51xf32>
    %61 = vector.broadcast %60 : vector<1x51xf32> to vector<4x51xf32>
    %62 = arith.addf %59, %61 : vector<4x51xf32>
    %63 = vector.extract_strided_slice %62 {offsets = [0, 0], sizes = [4, 16], strides = [1, 1]} : vector<4x51xf32> to vector<4x16xf32>
    %64 = vector.extract_strided_slice %62 {offsets = [0, 16], sizes = [4, 1], strides = [1, 1]} : vector<4x51xf32> to vector<4x1xf32>
    %65 = vector.extract_strided_slice %62 {offsets = [0, 17], sizes = [4, 1], strides = [1, 1]} : vector<4x51xf32> to vector<4x1xf32>
    %66 = vector.extract_strided_slice %62 {offsets = [0, 18], sizes = [4, 1], strides = [1, 1]} : vector<4x51xf32> to vector<4x1xf32>
    %67 = vector.extract_strided_slice %62 {offsets = [0, 19], sizes = [4, 32], strides = [1, 1]} : vector<4x51xf32> to vector<4x32xf32>
    %cst_24 = arith.constant 0.000000e+00 : f32
    %68 = vector.broadcast %cst_24 : f32 to vector<4x1xf32>
    %69 = arith.cmpf ogt, %65, %68 : vector<4x1xf32>
    %cst_25 = arith.constant 1.000000e+00 : f32
    %70 = vector.broadcast %cst_25 : f32 to vector<4x1xf32>
    %71 = arith.addf %65, %70 : vector<4x1xf32>
    %cst_26 = arith.constant 0.000000e+00 : f32
    %72 = vector.broadcast %cst_26 : f32 to vector<4x1xf32>
    %73 = arith.minimumf %65, %72 : vector<4x1xf32>
    %74 = math.exp %73 : vector<4x1xf32>
    %75 = arith.select %69, %71, %74 : vector<4x1xi1>, vector<4x1xf32>
    %76 = arith.mulf %67, %67 : vector<4x32xf32>
    %77 = arith.mulf %67, %76 : vector<4x32xf32>
    %cst_27 = arith.constant 4.471500e-02 : f32
    %78 = vector.broadcast %cst_27 : f32 to vector<4x32xf32>
    %79 = arith.mulf %78, %77 : vector<4x32xf32>
    %80 = arith.addf %67, %79 : vector<4x32xf32>
    %cst_28 = arith.constant 0.797884583 : f32
    %81 = vector.broadcast %cst_28 : f32 to vector<4x32xf32>
    %82 = arith.mulf %81, %80 : vector<4x32xf32>
    %83 = math.tanh %82 : vector<4x32xf32>
    %cst_29 = arith.constant 1.000000e+00 : f32
    %84 = vector.broadcast %cst_29 : f32 to vector<4x32xf32>
    %85 = arith.addf %84, %83 : vector<4x32xf32>
    %cst_30 = arith.constant 5.000000e-01 : f32
    %86 = vector.broadcast %cst_30 : f32 to vector<4x32xf32>
    %87 = arith.mulf %86, %85 : vector<4x32xf32>
    %88 = arith.mulf %67, %87 : vector<4x32xf32>
    %c0_31 = arith.constant 0 : index
    %c0_32 = arith.constant 0 : index
    %89 = vector.load %arg10[%c0_31, %c0_32] : memref<32x32xf32, #tpu.memory_space<vmem>>, vector<32x32xf32>
    %cst_33 = arith.constant dense<0.000000e+00> : vector<4x32xf32>
    %90 = tpu.matmul %88, %89, %cst_33 {dimension_numbers = #tpu.dot_dimension_numbers<[1], [0], [0], [1], [0, 0, 1, 1], [], []>} : vector<4x32xf32>, vector<32x32xf32>, vector<4x32xf32> -> vector<4x32xf32>
    %c0_34 = arith.constant 0 : index
    %c0_35 = arith.constant 0 : index
    %91 = vector.load %arg11[%c0_34, %c0_35] : memref<1x32xf32, #tpu.memory_space<vmem>>, vector<1x32xf32>
    %92 = vector.broadcast %91 : vector<1x32xf32> to vector<4x32xf32>
    %93 = arith.addf %90, %92 : vector<4x32xf32>
    %94 = arith.mulf %93, %93 : vector<4x32xf32>
    %95 = arith.mulf %93, %94 : vector<4x32xf32>
    %cst_36 = arith.constant 4.471500e-02 : f32
    %96 = vector.broadcast %cst_36 : f32 to vector<4x32xf32>
    %97 = arith.mulf %96, %95 : vector<4x32xf32>
    %98 = arith.addf %93, %97 : vector<4x32xf32>
    %cst_37 = arith.constant 0.797884583 : f32
    %99 = vector.broadcast %cst_37 : f32 to vector<4x32xf32>
    %100 = arith.mulf %99, %98 : vector<4x32xf32>
    %101 = math.tanh %100 : vector<4x32xf32>
    %cst_38 = arith.constant 1.000000e+00 : f32
    %102 = vector.broadcast %cst_38 : f32 to vector<4x32xf32>
    %103 = arith.addf %102, %101 : vector<4x32xf32>
    %cst_39 = arith.constant 5.000000e-01 : f32
    %104 = vector.broadcast %cst_39 : f32 to vector<4x32xf32>
    %105 = arith.mulf %104, %103 : vector<4x32xf32>
    %106 = arith.mulf %93, %105 : vector<4x32xf32>
    %c0_40 = arith.constant 0 : index
    %c0_41 = arith.constant 0 : index
    %107 = vector.load %arg12[%c0_40, %c0_41] : memref<32x4xf32, #tpu.memory_space<vmem>>, vector<32x4xf32>
    %cst_42 = arith.constant dense<0.000000e+00> : vector<4x4xf32>
    %108 = tpu.matmul %106, %107, %cst_42 {dimension_numbers = #tpu.dot_dimension_numbers<[1], [0], [0], [1], [0, 0, 1, 1], [], []>} : vector<4x32xf32>, vector<32x4xf32>, vector<4x4xf32> -> vector<4x4xf32>
    %c0_43 = arith.constant 0 : index
    %c0_44 = arith.constant 0 : index
    %109 = vector.load %arg13[%c0_43, %c0_44] : memref<1x4xf32, #tpu.memory_space<vmem>>, vector<1x4xf32>
    %110 = vector.broadcast %109 : vector<1x4xf32> to vector<4x4xf32>
    %111 = arith.addf %108, %110 : vector<4x4xf32>
    %c0_45 = arith.constant 0 : index
    %c0_46 = arith.constant 0 : index
    %112 = vector.load %arg14[%c0_45, %c0_46] : memref<4x4xf32, #tpu.memory_space<vmem>>, vector<4x4xf32>
    %113 = arith.addf %111, %112 : vector<4x4xf32>
    %114 = arith.negf %113 : vector<4x4xf32>
    %115 = math.exp %114 : vector<4x4xf32>
    %cst_47 = arith.constant 1.000000e+00 : f32
    %116 = vector.broadcast %cst_47 : f32 to vector<4x4xf32>
    %117 = arith.addf %116, %115 : vector<4x4xf32>
    %118 = arith.divf %116, %117 : vector<4x4xf32>
    %c0_48 = arith.constant 0 : index
    %c0_49 = arith.constant 0 : index
    %c0_50 = arith.constant 0 : index
    %119 = vector.load %arg2[%c0_48, %c0_49, %c0_50] : memref<1x2x16xf32, #tpu.memory_space<vmem>>, vector<1x2x16xf32>
    %120 = vector.shape_cast %119 : vector<1x2x16xf32> to vector<2x16xf32>
    %121 = arith.mulf %63, %63 : vector<4x16xf32>
    %cst_51 = arith.constant dense<0.000000e+00> : vector<4xf32>
    %122 = vector.multi_reduction <add>, %121, %cst_51 [1] : vector<4x16xf32> to vector<4xf32>
    %123 = vector.shape_cast %122 : vector<4xf32> to vector<4x1xf32>
    %124 = math.sqrt %123 : vector<4x1xf32>
    %cst_52 = arith.constant 9.99999997E-7 : f32
    %125 = vector.broadcast %cst_52 : f32 to vector<4x1xf32>
    %126 = arith.addf %124, %125 : vector<4x1xf32>
    %127 = vector.broadcast %126 : vector<4x1xf32> to vector<4x16xf32>
    %128 = arith.divf %63, %127 : vector<4x16xf32>
    %129 = arith.mulf %120, %120 : vector<2x16xf32>
    %cst_53 = arith.constant dense<0.000000e+00> : vector<2xf32>
    %130 = vector.multi_reduction <add>, %129, %cst_53 [1] : vector<2x16xf32> to vector<2xf32>
    %131 = vector.shape_cast %130 : vector<2xf32> to vector<2x1xf32>
    %132 = math.sqrt %131 : vector<2x1xf32>
    %cst_54 = arith.constant 9.99999997E-7 : f32
    %133 = vector.broadcast %cst_54 : f32 to vector<2x1xf32>
    %134 = arith.addf %132, %133 : vector<2x1xf32>
    %135 = vector.broadcast %134 : vector<2x1xf32> to vector<2x16xf32>
    %136 = arith.divf %120, %135 : vector<2x16xf32>
    %cst_55 = arith.constant dense<0.000000e+00> : vector<4x2xf32>
    %137 = tpu.matmul %128, %136, %cst_55 {dimension_numbers = #tpu.dot_dimension_numbers<[1], [1], [0], [0], [0, 0, 1, 0], [], []>} : vector<4x16xf32>, vector<2x16xf32>, vector<4x2xf32> -> vector<4x2xf32>
    %138 = vector.broadcast %64 : vector<4x1xf32> to vector<4x2xf32>
    %139 = arith.addf %137, %138 : vector<4x2xf32>
    %140 = vector.broadcast %75 : vector<4x1xf32> to vector<4x2xf32>
    %141 = arith.mulf %139, %140 : vector<4x2xf32>
    %c0_56 = arith.constant 0 : index
    %c0_57 = arith.constant 0 : index
    %c0_58 = arith.constant 0 : index
    %142 = vector.load %arg3[%c0_56, %c0_57, %c0_58] : memref<1x1x2xf32, #tpu.memory_space<vmem>>, vector<1x1x2xf32>
    %143 = vector.shape_cast %142 : vector<1x1x2xf32> to vector<1x2xf32>
    %cst_59 = arith.constant 0.000000e+00 : f32
    %144 = vector.broadcast %cst_59 : f32 to vector<1x2xf32>
    %145 = arith.cmpf oeq, %143, %144 : vector<1x2xf32>
    %cst_60 = arith.constant -1.000000e+06 : f32
    %146 = vector.shape_cast %145 : vector<1x2xi1> to vector<1x2xi1>
    %147 = vector.broadcast %146 : vector<1x2xi1> to vector<4x2xi1>
    %148 = vector.broadcast %cst_60 : f32 to vector<4x2xf32>
    %149 = arith.select %147, %148, %141 : vector<4x2xi1>, vector<4x2xf32>
    %c0_61 = arith.constant 0 : index
    %c0_62 = arith.constant 0 : index
    %c0_63 = arith.constant 0 : index
    %150 = vector.load %arg15[%c0_61, %c0_62, %c0_63] : memref<1x4x2xf32, #tpu.memory_space<vmem>>, vector<1x4x2xf32>
    %151 = vector.shape_cast %150 : vector<1x4x2xf32> to vector<4x2xf32>
    %152 = vector.shape_cast %149 : vector<4x2xf32> to vector<1x4x2xf32>
    tpu.vector_store %arg15[%c0_61, %c0_62, %c0_63], %152 {strides = array<i32>} : memref<1x4x2xf32, #tpu.memory_space<vmem>>, vector<1x4x2xf32>,
    %c0_64 = arith.constant 0 : index
    %c0_65 = arith.constant 0 : index
    %c0_66 = arith.constant 0 : index
    %153 = vector.load %arg16[%c0_64, %c0_65, %c0_66] : memref<1x4x1xf32, #tpu.memory_space<vmem>>, vector<1x4x1xf32>
    %154 = vector.shape_cast %153 : vector<1x4x1xf32> to vector<4x1xf32>
    %155 = vector.shape_cast %66 : vector<4x1xf32> to vector<1x4x1xf32>
    tpu.vector_store %arg16[%c0_64, %c0_65, %c0_66], %155 {strides = array<i32>} : memref<1x4x1xf32, #tpu.memory_space<vmem>>, vector<1x4x1xf32>,
    %c0_67 = arith.constant 0 : index
    %c0_68 = arith.constant 0 : index
    %c0_69 = arith.constant 0 : index
    %156 = vector.load %arg17[%c0_67, %c0_68, %c0_69] : memref<1x4x4xf32, #tpu.memory_space<vmem>>, vector<1x4x4xf32>
    %157 = vector.shape_cast %156 : vector<1x4x4xf32> to vector<4x4xf32>
    %158 = vector.shape_cast %118 : vector<4x4xf32> to vector<1x4x4xf32>
    tpu.vector_store %arg17[%c0_67, %c0_68, %c0_69], %158 {strides = array<i32>} : memref<1x4x4xf32, #tpu.memory_space<vmem>>, vector<1x4x4xf32>,
    %c0_70 = arith.constant 0 : index
    %c0_71 = arith.constant 0 : index
    %c0_72 = arith.constant 0 : index
    %159 = vector.load %arg18[%c0_70, %c0_71, %c0_72] : memref<1x4x32xf32, #tpu.memory_space<vmem>>, vector<1x4x32xf32>
    %160 = vector.shape_cast %159 : vector<1x4x32xf32> to vector<4x32xf32>
    %161 = vector.shape_cast %57 : vector<4x32xf32> to vector<1x4x32xf32>
    tpu.vector_store %arg18[%c0_70, %c0_71, %c0_72], %161 {strides = array<i32>} : memref<1x4x32xf32, #tpu.memory_space<vmem>>, vector<1x4x32xf32>,
    %c0_73 = arith.constant 0 : index
    %c0_74 = arith.constant 0 : index
    %c0_75 = arith.constant 0 : index
    %162 = vector.load %arg19[%c0_73, %c0_74, %c0_75] : memref<1x4x16xf32, #tpu.memory_space<vmem>>, vector<1x4x16xf32>
    %163 = vector.shape_cast %162 : vector<1x4x16xf32> to vector<4x16xf32>
    %164 = vector.shape_cast %63 : vector<4x16xf32> to vector<1x4x16xf32>
    tpu.vector_store %arg19[%c0_73, %c0_74, %c0_75], %164 {strides = array<i32>} : memref<1x4x16xf32, #tpu.memory_space<vmem>>, vector<1x4x16xf32>,
    return
  }
  func.func @transform_0(%arg0: i32) -> (i32, i32, i32) {
    %c0_i32 = arith.constant 0 : i32
    %c0_i32_0 = arith.constant 0 : i32
    %c0_i32_1 = arith.constant 0 : i32
    return %arg0, %c0_i32, %c0_i32_0 : i32, i32, i32
  }
  func.func @transform_1(%arg0: i32) -> (i32, i32, i32) {
    %c0_i32 = arith.constant 0 : i32
    %c0_i32_0 = arith.constant 0 : i32
    %c0_i32_1 = arith.constant 0 : i32
    return %arg0, %c0_i32, %c0_i32_0 : i32, i32, i32
  }
  func.func @transform_2(%arg0: i32) -> (i32, i32, i32) {
    %c0_i32 = arith.constant 0 : i32
    %c0_i32_0 = arith.constant 0 : i32
    %c0_i32_1 = arith.constant 0 : i32
    return %arg0, %c0_i32, %c0_i32_0 : i32, i32, i32
  }
  func.func @transform_3(%arg0: i32) -> (i32, i32) {
    %c0_i32 = arith.constant 0 : i32
    %c0_i32_0 = arith.constant 0 : i32
    %c0_i32_1 = arith.constant 0 : i32
    return %c0_i32, %c0_i32_0 : i32, i32
  }
  func.func @transform_4(%arg0: i32) -> (i32, i32) {
    %c0_i32 = arith.constant 0 : i32
    %c0_i32_0 = arith.constant 0 : i32
    %c0_i32_1 = arith.constant 0 : i32
    return %c0_i32, %c0_i32_0 : i32, i32
  }
  func.func @transform_5(%arg0: i32) -> (i32, i32) {
    %c0_i32 = arith.constant 0 : i32
    %c0_i32_0 = arith.constant 0 : i32
    %c0_i32_1 = arith.constant 0 : i32
    return %c0_i32, %c0_i32_0 : i32, i32
  }
  func.func @transform_6(%arg0: i32) -> (i32, i32) {
    %c0_i32 = arith.constant 0 : i32
    %c0_i32_0 = arith.constant 0 : i32
    %c0_i32_1 = arith.constant 0 : i32
    return %c0_i32, %c0_i32_0 : i32, i32
  }
  func.func @transform_7(%arg0: i32) -> (i32, i32) {
    %c0_i32 = arith.constant 0 : i32
    %c0_i32_0 = arith.constant 0 : i32
    %c0_i32_1 = arith.constant 0 : i32
    return %c0_i32, %c0_i32_0 : i32, i32
  }
  func.func @transform_8(%arg0: i32) -> (i32, i32) {
    %c0_i32 = arith.constant 0 : i32
    %c0_i32_0 = arith.constant 0 : i32
    %c0_i32_1 = arith.constant 0 : i32
    return %c0_i32, %c0_i32_0 : i32, i32
  }
  func.func @transform_9(%arg0: i32) -> (i32, i32) {
    %c0_i32 = arith.constant 0 : i32
    %c0_i32_0 = arith.constant 0 : i32
    %c0_i32_1 = arith.constant 0 : i32
    return %c0_i32, %c0_i32_0 : i32, i32
  }
  func.func @transform_10(%arg0: i32) -> (i32, i32) {
    %c0_i32 = arith.constant 0 : i32
    %c0_i32_0 = arith.constant 0 : i32
    %c0_i32_1 = arith.constant 0 : i32
    return %c0_i32, %c0_i32_0 : i32, i32
  }
  func.func @transform_11(%arg0: i32) -> (i32, i32) {
    %c0_i32 = arith.constant 0 : i32
    %c0_i32_0 = arith.constant 0 : i32
    %c0_i32_1 = arith.constant 0 : i32
    return %c0_i32, %c0_i32_0 : i32, i32
  }
  func.func @transform_12(%arg0: i32) -> (i32, i32) {
    %c0_i32 = arith.constant 0 : i32
    %c0_i32_0 = arith.constant 0 : i32
    %c0_i32_1 = arith.constant 0 : i32
    return %c0_i32, %c0_i32_0 : i32, i32
  }
  func.func @transform_13(%arg0: i32) -> (i32, i32) {
    %c0_i32 = arith.constant 0 : i32
    %c0_i32_0 = arith.constant 0 : i32
    %c0_i32_1 = arith.constant 0 : i32
    return %c0_i32, %c0_i32_0 : i32, i32
  }
  func.func @transform_14(%arg0: i32) -> (i32, i32, i32) {
    %c0_i32 = arith.constant 0 : i32
    %c0_i32_0 = arith.constant 0 : i32
    %c0_i32_1 = arith.constant 0 : i32
    return %arg0, %c0_i32, %c0_i32_0 : i32, i32, i32
  }
  func.func @transform_15(%arg0: i32) -> (i32, i32, i32) {
    %c0_i32 = arith.constant 0 : i32
    %c0_i32_0 = arith.constant 0 : i32
    %c0_i32_1 = arith.constant 0 : i32
    return %arg0, %c0_i32, %c0_i32_0 : i32, i32, i32
  }
  func.func @transform_16(%arg0: i32) -> (i32, i32, i32) {
    %c0_i32 = arith.constant 0 : i32
    %c0_i32_0 = arith.constant 0 : i32
    %c0_i32_1 = arith.constant 0 : i32
    return %arg0, %c0_i32, %c0_i32_0 : i32, i32, i32
  }
  func.func @transform_17(%arg0: i32) -> (i32, i32, i32) {
    %c0_i32 = arith.constant 0 : i32
    %c0_i32_0 = arith.constant 0 : i32
    %c0_i32_1 = arith.constant 0 : i32
    return %arg0, %c0_i32, %c0_i32_0 : i32, i32, i32
  }
  func.func @transform_18(%arg0: i32) -> (i32, i32, i32) {
    %c0_i32 = arith.constant 0 : i32
    %c0_i32_0 = arith.constant 0 : i32
    %c0_i32_1 = arith.constant 0 : i32
    return %arg0, %c0_i32, %c0_i32_0 : i32, i32, i32
  }
}

</mosaic_0001>

<bundles_post_ra>
// kernel: forward.10
= control target key start
LH: loop header
LB: loop body
LE: loop exit
PB: predicated region body
PF: predicated region fallthrough
CT: control target
= control target key end

     0   :  { %s970_s24 = smov 0   ;;  %s1312_s0 = inlined_call_operand.vmem [shape: f32[2,4,768], index: 0, kind: input, shape index: {}]   ;;  %s1313_s1 = inlined_call_operand.vmem [shape: f32[768,32], index: 1, kind: input, shape index: {}]   ;;  %s1314_s2 = inlined_call_operand.vmem [shape: f32[1,32], index: 2, kind: input, shape index: {}]   ;;  %s1315_s3 = inlined_call_operand.vmem [shape: f32[1,32], index: 3, kind: input, shape index: {}]   ;;  %s1316_s4 = inlined_call_operand.vmem [shape: f32[5,32], index: 4, kind: input, shape index: {}]   ;;  %s1317_s5 = inlined_call_operand.vmem [shape: f32[1,32], index: 5, kind: input, shape index: {}]   ;;  %s1318_s6 = inlined_call_operand.vmem [shape: f32[1,32], index: 6, kind: input, shape index: {}]   ;;  %s1319_s7 = inlined_call_operand.vmem [shape: f32[2,5,32], index: 7, kind: output, shape index: {}]  }
   0x1 LB: > { %s695_s25 = sadd.s32 4294967295, %s928_s24   ;;  %p699_p0 = scmp.ge.s32.totalorder %s928_s24, 1  ;;  %s928_s24 = sphi %s970_s24, %s17_s24  }
   0x2   : > { %p237_p1 = scmp.lt.s32.totalorder %s928_s24, 3 }
   0x4   : > { %p238_p2 = pnand %p699_p0, %p237_p1 }
   0x5   : > { %v296_v0 = vld [vmem:[%s1313_s1 + $0x80] sm:$0xff] (!%p238_p2)  ;;  %v297_v1 = vld [vmem:[%s1313_s1 + $0x88] sm:$0xff] (!%p238_p2)  ;;  %v298_v11 = vld [vmem:[%s1313_s1 + $0x90] sm:$0xff] (!%p238_p2)  ;;  %p1034_p3 = scmp.lt.s32.totalorder (!%p238_p2), %s695_s25, 1  ;;  %vm606_vm0 = vcmask (!%p238_p2), 1040384   ;;  %vm610_vm1 = vcmask (!%p238_p2), 258048  }
   0x6   : > { %241 = sbr.rel (%p238_p2) target bundleno = 608 (0x260), region = 48  ;;  %v280_v2 = vld [vmem:[%s1313_s1] sm:$0xff] (!%p238_p2)  ;;  %v812_v3 = vpack.c.bf16 (!%p238_p2), %v297_v1, %v296_v0  ;;  %v281_v4 = vld [vmem:[%s1313_s1 + $0x8] sm:$0xff] (!%p238_p2)  ;;  %v299_v13 = vld [vmem:[%s1313_s1 + $0x98] sm:$0xff] (!%p238_p2) }
   0x7   : > { %v328_v5 = vld [vmem:[%s1313_s1 + $0x180] sm:$0xff] (!%p238_p2)  ;;  %v329_v6 = vld [vmem:[%s1313_s1 + $0x188] sm:$0xff] (!%p238_p2)  ;;  %v814_v7 = vpack.c.bf16 (!%p238_p2), %v281_v4, %v280_v2  ;;  %v282_v14 = vld [vmem:[%s1313_s1 + $0x10] sm:$0xff] (!%p238_p2)  ;;  %v816_v16 = vpack.c.bf16 (!%p238_p2), %v299_v13, %v298_v11 }
   0x8   : > { %v844_v8 = vpack.c.bf16 (!%p238_p2), %v329_v6, %v328_v5  ;;  %v312_v9 = vld [vmem:[%s1313_s1 + $0x100] sm:$0xff] (!%p238_p2)  ;;  %v313_v10 = vld [vmem:[%s1313_s1 + $0x108] sm:$0xff] (!%p238_p2)  ;;  %813 = vmatprep.subr.bf16.mxu0 (!%p238_p2), %v812_v3  ;;  %v283_v15 = vld [vmem:[%s1313_s1 + $0x18] sm:$0xff] (!%p238_p2) }
   0x9   : > { %v846_v12 = vpack.c.bf16 (!%p238_p2), %v313_v10, %v312_v9  ;;  %815 = vmatpush3.bf16.msra.mxu0 (!%p238_p2), %v814_v7  ;;  %v818_v17 = vpack.c.bf16 (!%p238_p2), %v283_v15, %v282_v14  ;;  %v330_v18 = vld [vmem:[%s1313_s1 + $0x190] sm:$0xff] (!%p238_p2)  ;;  %v331_v19 = vld [vmem:[%s1313_s1 + $0x198] sm:$0xff] (!%p238_p2)  ;;  %v300_v23 = vld [vmem:[%s1313_s1 + $0xa0] sm:$0xff] (!%p238_p2) }
   0xa   : > { %845 = vmatprep.subr.bf16.mxu1 (!%p238_p2), %v844_v8  ;;  %v314_v20 = vld [vmem:[%s1313_s1 + $0x110] sm:$0xff] (!%p238_p2)  ;;  %v848_v21 = vpack.c.bf16 (!%p238_p2), %v331_v19, %v330_v18  ;;  %v315_v22 = vld [vmem:[%s1313_s1 + $0x118] sm:$0xff] (!%p238_p2)  ;;  %v301_v24 = vld [vmem:[%s1313_s1 + $0xa8] sm:$0xff] (!%p238_p2)  ;;  %817 = vmatprep.subr.bf16.mxu0 (!%p238_p2), %v816_v16 }
   0xb   : > { %847 = vmatpush3.bf16.msra.mxu1 (!%p238_p2), %v846_v12  ;;  %v850_v25 = vpack.c.bf16 (!%p238_p2), %v315_v22, %v314_v20  ;;  %v820_v26 = vpack.c.bf16 (!%p238_p2), %v301_v24, %v300_v23  ;;  %v284_v27 = vld [vmem:[%s1313_s1 + $0x20] sm:$0xff] (!%p238_p2)  ;;  %v285_v28 = vld [vmem:[%s1313_s1 + $0x28] sm:$0xff] (!%p238_p2)  ;;  %v302_v35 = vld [vmem:[%s1313_s1 + $0xb0] sm:$0xff] (!%p238_p2) }
   0xc   : > { %v332_v29 = vld [vmem:[%s1313_s1 + $0x1a0] sm:$0xff] (!%p238_p2)  ;;  %849 = vmatprep.subr.bf16.mxu1 (!%p238_p2), %v848_v21  ;;  %v333_v30 = vld [vmem:[%s1313_s1 + $0x1a8] sm:$0xff] (!%p238_p2)  ;;  %v822_v33 = vpack.c.bf16 (!%p238_p2), %v285_v28, %v284_v27  ;;  %v303_v36 = vld [vmem:[%s1313_s1 + $0xb8] sm:$0xff] (!%p238_p2) }
   0xd   : > { %v316_v31 = vld [vmem:[%s1313_s1 + $0x120] sm:$0xff]  ;;  %v317_v32 = vld [vmem:[%s1313_s1 + $0x128] sm:$0xff]  ;;  %819 = vmatpush3.bf16.msra.mxu0 %v818_v17  ;;  %v852_v34 = vpack.c.bf16 %v333_v30, %v332_v29  ;;  %v286_v37 = vld [vmem:[%s1313_s1 + $0x30] sm:$0xff]  ;;  %v824_v39 = vpack.c.bf16 %v303_v36, %v302_v35  ;;  %s1322_s25 = smov (!%p1034_p3, %s695_s25), 1 }
   0xe   : > { %821 = vmatprep.subr.bf16.mxu0 %v820_v26  ;;  %v854_v38 = vpack.c.bf16 %v317_v32, %v316_v31  ;;  %v287_v40 = vld [vmem:[%s1313_s1 + $0x38] sm:$0xff]  ;;  %v334_v41 = vld [vmem:[%s1313_s1 + $0x1b0] sm:$0xff]  ;;  %v304_v46 = vld [vmem:[%s1313_s1 + $0xc0] sm:$0xff]  ;;  %s908_s20 = smul.u32 24, %s1322_s25  ;;  %s701_s23 = sshll.u32 %s1322_s25, 3 }
   0xf   : > { %851 = vmatpush3.bf16.msra.mxu1 %v850_v25  ;;  %v335_v42 = vld [vmem:[%s1313_s1 + $0x1b8] sm:$0xff]  ;;  %v318_v44 = vld [vmem:[%s1313_s1 + $0x130] sm:$0xff]  ;;  %v305_v47 = vld [vmem:[%s1313_s1 + $0xc8] sm:$0xff]  ;;  %v826_v48 = vpack.c.bf16 %v287_v40, %v286_v37 }
  0x10   : > { %853 = vmatprep.subr.bf16.mxu1 %v852_v34  ;;  %v856_v43 = vpack.c.bf16 %v335_v42, %v334_v41  ;;  %v319_v45 = vld [vmem:[%s1313_s1 + $0x138] sm:$0xff]  ;;  %v336_v49 = vld [vmem:[%s1313_s1 + $0x1c0] sm:$0xff]  ;;  %v337_v50 = vld [vmem:[%s1313_s1 + $0x1c8] sm:$0xff]  ;;  %v828_v52 = vpack.c.bf16 %v305_v47, %v304_v46  ;;  %s1135_s17 = scalar_lea.vmem %s1312_s0, %s908_s20  ;;  %s276_s20 = scalar_lea.vmem %s1319_s7, %s701_s23 }
  0x11   : > { %823 = vmatpush3.bf16.msra.mxu0 %v822_v33  ;;  %v858_v51 = vpack.c.bf16 %v319_v45, %v318_v44  ;;  %v288_v53 = vld [vmem:[%s1313_s1 + $0x40] sm:$0xff]  ;;  %v289_v54 = vld [vmem:[%s1313_s1 + $0x48] sm:$0xff]  ;;  %v860_v56 = vpack.c.bf16 %v337_v50, %v336_v49  ;;  %v306_v58 = vld [vmem:[%s1313_s1 + $0xd0] sm:$0xff] }
  0x12   : > { %825 = vmatprep.subr.bf16.mxu0 %v824_v39  ;;  %v320_v55 = vld [vmem:[%s1313_s1 + $0x140] sm:$0xff]  ;;  %v321_v57 = vld [vmem:[%s1313_s1 + $0x148] sm:$0xff]  ;;  %v307_v59 = vld [vmem:[%s1313_s1 + $0xd8] sm:$0xff]  ;;  %v830_v62 = vpack.c.bf16 %v289_v54, %v288_v53 }
  0x13   : > { %855 = vmatpush3.bf16.msra.mxu1 %v854_v38  ;;  %v338_v60 = vld [vmem:[%s1313_s1 + $0x1d0] sm:$0xff]  ;;  %v339_v61 = vld [vmem:[%s1313_s1 + $0x1d8] sm:$0xff]  ;;  %v862_v63 = vpack.c.bf16 %v321_v57, %v320_v55  ;;  %v832_v0 = vpack.c.bf16 %v307_v59, %v306_v58  ;;  %v308_v6 = vld [vmem:[%s1313_s1 + $0xe0] sm:$0xff] }
  0x14   : > { %857 = vmatprep.subr.bf16.mxu1 %v856_v43  ;;  %v290_v1 = vld [vmem:[%s1313_s1 + $0x50] sm:$0xff]  ;;  %v291_v2 = vld [vmem:[%s1313_s1 + $0x58] sm:$0xff]  ;;  %v864_v4 = vpack.c.bf16 %v339_v61, %v338_v60  ;;  %v309_v7 = vld [vmem:[%s1313_s1 + $0xe8] sm:$0xff] }
  0x15   : > { %827 = vmatpush3.bf16.msra.mxu0 %v826_v48  ;;  %v322_v3 = vld [vmem:[%s1313_s1 + $0x150] sm:$0xff]  ;;  %v323_v5 = vld [vmem:[%s1313_s1 + $0x158] sm:$0xff]  ;;  %v340_v8 = vld [vmem:[%s1313_s1 + $0x1e0] sm:$0xff]  ;;  %v834_v10 = vpack.c.bf16 %v291_v2, %v290_v1  ;;  %v836_v14 = vpack.c.bf16 %v309_v7, %v308_v6 }
  0x16   : > { %829 = vmatprep.subr.bf16.mxu0 %v828_v52  ;;  %v341_v9 = vld [vmem:[%s1313_s1 + $0x1e8] sm:$0xff]  ;;  %v292_v11 = vld [vmem:[%s1313_s1 + $0x60] sm:$0xff]  ;;  %v866_v13 = vpack.c.bf16 %v323_v5, %v322_v3  ;;  %v310_v20 = vld [vmem:[%s1313_s1 + $0xf0] sm:$0xff] }
  0x17   : > { %859 = vmatpush3.bf16.msra.mxu1 %v858_v51  ;;  %v277_v12 = vld [vmem:[%s1135_s17] sm:$0xff]  ;;  %v293_v15 = vld [vmem:[%s1313_s1 + $0x68] sm:$0xff]  ;;  %v868_v19 = vpack.c.bf16 %v341_v9, %v340_v8  ;;  %v311_v21 = vld [vmem:[%s1313_s1 + $0xf8] sm:$0xff] }
  0x18   : > { %861 = vmatprep.subr.bf16.mxu1 %v860_v56  ;;  %v324_v16 = vld [vmem:[%s1313_s1 + $0x160] sm:$0xff]  ;;  %v325_v17 = vld [vmem:[%s1313_s1 + $0x168] sm:$0xff]  ;;  %v386_v18 = vcombine.high %v277_v12, %v277_v12  ;;  %v342_v23 = vld [vmem:[%s1313_s1 + $0x1f0] sm:$0xff]  ;;  %v838_v26 = vpack.c.bf16 %v293_v15, %v292_v11  ;;  %v840_v28 = vpack.c.bf16 %v311_v21, %v310_v20 }
  0x19   : > { %831 = vmatpush3.bf16.msra.mxu0 %v830_v62  ;;  %v278_v22 = vld [vmem:[%s1135_s17 + $0x8] sm:$0xff]  ;;  %v343_v24 = vld [vmem:[%s1313_s1 + $0x1f8] sm:$0xff]  ;;  %v870_v27 = vpack.c.bf16 %v325_v17, %v324_v16  ;;  %v294_v29 = vld [vmem:[%s1313_s1 + $0x70] sm:$0xff] }
  0x1a   : > { %833 = vmatprep.subr.bf16.mxu0 %v832_v0  ;;  %456 = vmatprep.mubr.f32.mxu0 %v386_v18  ;;  %v387_v25 = vcombine.high %v278_v22, %v278_v22  ;;  %v295_v30 = vld [vmem:[%s1313_s1 + $0x78] sm:$0xff]  ;;  %v326_v31 = vld [vmem:[%s1313_s1 + $0x170] sm:$0xff]  ;;  %v872_v32 = vpack.c.bf16 %v343_v24, %v342_v23  ;;  %v360_v34 = vld [vmem:[%s1313_s1 + $0x280] sm:$0xff] }
  0x1b   : > { %863 = vmatpush3.bf16.msra.mxu1 %v862_v63  ;;  %v327_v33 = vld [vmem:[%s1313_s1 + $0x178] sm:$0xff]  ;;  %v361_v35 = vld [vmem:[%s1313_s1 + $0x288] sm:$0xff]  ;;  %v842_v36 = vpack.c.bf16 %v295_v30, %v294_v29  ;;  %v344_v39 = vld [vmem:[%s1313_s1 + $0x200] sm:$0xff] }
  0x1c   : > { %865 = vmatprep.subr.bf16.mxu1 %v864_v4  ;;  %526 = vmatprep.mubr.f32.mxu1 %v387_v25  ;;  %v874_v37 = vpack.c.bf16 %v327_v33, %v326_v31  ;;  %v876_v38 = vpack.c.bf16 %v361_v35, %v360_v34  ;;  %v345_v40 = vld [vmem:[%s1313_s1 + $0x208] sm:$0xff]  ;;  %v362_v41 = vld [vmem:[%s1313_s1 + $0x290] sm:$0xff]  ;;  %v363_v42 = vld [vmem:[%s1313_s1 + $0x298] sm:$0xff] }
  0x1d   : > { %835 = vmatpush3.bf16.msra.mxu0 %v834_v10  ;;  %v878_v43 = vpack.c.bf16 %v345_v40, %v344_v39  ;;  %v279_v44 = vld [vmem:[%s1135_s17 + $0x10] sm:$0xff]  ;;  %v880_v45 = vpack.c.bf16 %v363_v42, %v362_v41  ;;  %v347_v47 = vld [vmem:[%s1313_s1 + $0x218] sm:$0xff]  ;;  %v364_v49 = vld [vmem:[%s1313_s1 + $0x2a0] sm:$0xff] }
  0x1e   : > { %837 = vmatprep.subr.bf16.mxu0 %v836_v14  ;;  %v346_v46 = vld [vmem:[%s1313_s1 + $0x210] sm:$0xff]  ;;  %v388_v48 = vcombine.high %v279_v44, %v279_v44  ;;  %v365_v50 = vld [vmem:[%s1313_s1 + $0x2a8] sm:$0xff]  ;;  %v348_v53 = vld [vmem:[%s1313_s1 + $0x220] sm:$0xff] }
  0x1f   : > { %867 = vmatpush3.bf16.msra.mxu1 %v866_v13  ;;  %v882_v51 = vpack.c.bf16 %v347_v47, %v346_v46  ;;  %v884_v52 = vpack.c.bf16 %v365_v50, %v364_v49  ;;  %v349_v54 = vld [vmem:[%s1313_s1 + $0x228] sm:$0xff]  ;;  %v366_v55 = vld [vmem:[%s1313_s1 + $0x2b0] sm:$0xff]  ;;  %v367_v56 = vld [vmem:[%s1313_s1 + $0x2b8] sm:$0xff] }
  0x20   : > { %869 = vmatprep.subr.bf16.mxu1 %v868_v19  ;;  %v886_v57 = vpack.c.bf16 %v349_v54, %v348_v53  ;;  %v888_v58 = vpack.c.bf16 %v367_v56, %v366_v55  ;;  %v350_v59 = vld [vmem:[%s1313_s1 + $0x230] sm:$0xff]  ;;  %v351_v60 = vld [vmem:[%s1313_s1 + $0x238] sm:$0xff]  ;;  %v368_v61 = vld [vmem:[%s1313_s1 + $0x2c0] sm:$0xff] }
  0x21   : > { %839 = vmatpush3.bf16.msra.mxu0 %v838_v26  ;;  %v369_v62 = vld [vmem:[%s1313_s1 + $0x2c8] sm:$0xff]  ;;  %v890_v63 = vpack.c.bf16 %v351_v60, %v350_v59  ;;  %v352_v1 = vld [vmem:[%s1313_s1 + $0x240] sm:$0xff]  ;;  %v370_v3 = vld [vmem:[%s1313_s1 + $0x2d0] sm:$0xff] }
  0x22   : > { %841 = vmatprep.subr.bf16.mxu0 %v840_v28  ;;  %v892_v0 = vpack.c.bf16 %v369_v62, %v368_v61  ;;  %v353_v2 = vld [vmem:[%s1313_s1 + $0x248] sm:$0xff]  ;;  %v371_v4 = vld [vmem:[%s1313_s1 + $0x2d8] sm:$0xff]  ;;  %v354_v7 = vld [vmem:[%s1313_s1 + $0x250] sm:$0xff] }
  0x23   : > { %871 = vmatpush3.bf16.msra.mxu1 %v870_v27  ;;  %v894_v5 = vpack.c.bf16 %v353_v2, %v352_v1  ;;  %v896_v6 = vpack.c.bf16 %v371_v4, %v370_v3  ;;  %v355_v8 = vld [vmem:[%s1313_s1 + $0x258] sm:$0xff]  ;;  %v372_v9 = vld [vmem:[%s1313_s1 + $0x2e0] sm:$0xff]  ;;  %v373_v10 = vld [vmem:[%s1313_s1 + $0x2e8] sm:$0xff] }
  0x24   : > { %873 = vmatprep.subr.bf16.mxu1 %v872_v32  ;;  %v898_v11 = vpack.c.bf16 %v355_v8, %v354_v7  ;;  %v356_v13 = vld [vmem:[%s1313_s1 + $0x260] sm:$0xff]  ;;  %v357_v14 = vld [vmem:[%s1313_s1 + $0x268] sm:$0xff]  ;;  %v374_v15 = vld [vmem:[%s1313_s1 + $0x2f0] sm:$0xff] }
  0x25   : > { %843 = vmatpush3.bf16.msra.mxu0 %v842_v36  ;;  %v375_v16 = vld [vmem:[%s1313_s1 + $0x2f8] sm:$0xff]  ;;  %v902_v17 = vpack.c.bf16 %v357_v14, %v356_v13  ;;  %v358_v19 = vld [vmem:[%s1313_s1 + $0x270] sm:$0xff]  ;;  %v702_v23 = vld [vmem:[%s1314_s2] ss:$0 sm:$0xff] }
  0x26   : > { %877 = vmatprep.subr.bf16.mxu0 %v876_v38  ;;  %v904_v18 = vpack.c.bf16 %v375_v16, %v374_v15  ;;  %v359_v20 = vld [vmem:[%s1313_s1 + $0x278] sm:$0xff]  ;;  %v602_v35 = vld [vmem:[%s1315_s3] sm:$0x1] }
  0x27   : > { %875 = vmatpush3.bf16.msra.mxu1 %v874_v37  ;;  %v906_v21 = vpack.c.bf16 %v359_v20, %v358_v19  ;;  %v608_v37 = vld [vmem:[%s1316_s4] sm:$0x1f] }
  0x28   : > { %457 = vmatmul.mubr.f32.vlgmr.msra.gmra.mrb[0].mxu0 %v277_v12  ;;  %v900_v12 = vpack.c.bf16 %v373_v10, %v372_v9  ;;  %v703_v50 = vld [vmem:[%s1317_s5] ss:$0 sm:$0xff] }
  0x29   : > { %879 = vmatpush3.bf16.msra.mxu0 %v878_v43  ;;  %596 = vmatprep.mubr.f32.mxu0 %v388_v48 }
  0x2a   : > { %527 = vmatmul.mubr.f32.vlgmr.msra.gmra.mrb[0].mxu1 %v278_v22  ;;  %881 = vmatprep.subr.bf16.mxu0 %v880_v45 }
  0x2d   : > { %883 = vmatpush3.bf16.msra.mxu0 %v882_v51 }
  0x2e   : > { %885 = vmatprep.subr.bf16.mxu0 %v884_v52  ;;  %v704_v52 = vld [vmem:[%s1318_s6] ss:$0 sm:$0xff] }
  0x31   : > { %887 = vmatpush3.bf16.msra.mxu0 %v886_v57 }
  0x32   : > { %889 = vmatprep.subr.bf16.mxu0 %v888_v58 }
  0x35   : > { %891 = vmatpush3.bf16.msra.mxu0 %v890_v63 }
  0x36   : > { %893 = vmatprep.subr.bf16.mxu0 %v892_v0 }
  0x39   : > { %895 = vmatpush3.bf16.msra.mxu0 %v894_v5 }
  0x3a   : > { %897 = vmatprep.subr.bf16.mxu0 %v896_v6 }
  0x3d   : > { %899 = vmatpush3.bf16.msra.mxu0 %v898_v11 }
  0x3e   : > { %901 = vmatprep.subr.bf16.mxu0 %v900_v12 }
  0x41   : > { %903 = vmatpush3.bf16.msra.mxu0 %v902_v17 }
  0x42   : > { %905 = vmatprep.subr.bf16.mxu0 %v904_v18 }
  0x45   : > { %907 = vmatpush3.bf16.msra.mxu0 %v906_v21 }
  0x48   : > { %597 = vmatmul.mubr.f32.vlgmr.msra.gmra.mrb[2].mxu0 %v279_v44 }
  0xfb   : > { %v739_v22 = vpop.f32.mrb[0].mxu0 }
  0xfc   : > { %v740_v24 = vpop.f32.mrb[1].mxu0 }
  0xfd   : > { %v774_v25 = vpop.f32.mrb[0].mxu1  ;;  %v741_v26 = vadd.f32 %v740_v24, %v739_v22 }
  0xfe   : > { %v775_v27 = vpop.f32.mrb[1].mxu1 }
  0xff   : > { %v776_v28 = vadd.f32 %v775_v27, %v774_v25  ;;  %v459_v29 = vadd.f32 %v741_v26, %v702_v23 }
 0x101   : > { %v529_v30 = vadd.f32 %v776_v28, %v459_v29 }
 0x11b   : > { %v809_v31 = vpop.f32.mrb[2].mxu0 }
 0x11c   : > { %v810_v32 = vpop.f32.mrb[3].mxu0 }
 0x11d   : > { %v811_v33 = vadd.f32 %v810_v32, %v809_v31 }
 0x11f   : > { %v599_v34 = vadd.f32 %v811_v33, %v529_v30 }
 0x121   : > { %v604_v36 = vrot.slane %v599_v34, 7 }
 0x123   : > { %v607_v38 = vsel %vm606_vm0, %v602_v35, %v604_v36 }
 0x124   : > { %v609_v39 = vadd.f32 %v608_v37, %v607_v38 }
 0x126   : > { %v611_v40 = vsel %vm610_vm1, %v609_v39, 0.0 }
 0x127   : > { %612 = vadd.xlane.f32.xlu0 %v611_v40 }
 0x1b4   : > { %v613_v41 = vpop.xlane.xlu0 %612 }
 0x1b5   : > { %v615_v42 = vmul.f32 0.03125, %v613_v41 }
 0x1b7   : > { %v616_v43 = vsub.f32 %v609_v39, %v615_v42 }
 0x1b9   : > { %v617_v44 = vmul.f32 %v616_v43, %v616_v43 }
 0x1bb   : > { %v618_v45 = vsel %vm610_vm1, %v617_v44, 0.0 }
 0x1bc   : > { %619 = vadd.xlane.f32.xlu0 %v618_v45 }
 0x249   : > { %v620_v46 = vpop.xlane.xlu0 %619 }
 0x24a   : > { %v621_v47 = vmul.f32 0.03125, %v620_v46 }
 0x24c   : > { %v622_v48 = vadd.f32 1e-05, %v621_v47 }
 0x24e   : > { %920 = vrsqrt.f32 %v622_v48 }
 0x258   : > { %v921_v49 = vpop.eup %920 }
 0x259   : > { %v624_v51 = vmul.f32 %v921_v49, %v616_v43 }
 0x25b   : > { %v632_v53 = vmul.f32 %v703_v50, %v624_v51 }
 0x25d   : > { %v640_v54 = vadd.f32 %v704_v52, %v632_v53 }
 0x25f   : > { %641 = vst.msk [vmem:[%s276_s20] sm:$0x1f] %vm610_vm1, %v640_v54 }
 0x260 PF: > { %s17_s24 = sadd.s32 1, %s928_s24  }
 0x261   : > { %p14_p4 = scmp.ge.s32.totalorder %s17_s24, 4  }
 0x263   :  { %16 = sbr.rel (!%p14_p4) target bundleno = 1 (0x1), region = 78 }

// kernel: forward.11
= control target key start
LH: loop header
LB: loop body
LE: loop exit
PB: predicated region body
PF: predicated region fallthrough
CT: control target
= control target key end

     0   :  { %s2035_s29 = smov 0   ;;  %s2268_s0 = inlined_call_operand.vmem [shape: f32[2,5,32], index: 0, kind: input, shape index: {}]   ;;  %s2269_s1 = inlined_call_operand.vmem [shape: f32[2,5,5], index: 1, kind: input, shape index: {}]   ;;  %s2270_s2 = inlined_call_operand.vmem [shape: f32[1,32], index: 2, kind: input, shape index: {}]   ;;  %s2271_s3 = inlined_call_operand.vmem [shape: f32[1,32], index: 3, kind: input, shape index: {}]   ;;  %s2272_s4 = inlined_call_operand.vmem [shape: f32[32,96], index: 4, kind: input, shape index: {}]   ;;  %s2273_s5 = inlined_call_operand.vmem [shape: f32[1,96], index: 5, kind: input, shape index: {}]   ;;  %s2274_s6 = inlined_call_operand.vmem [shape: f32[32,32], index: 6, kind: input, shape index: {}]   ;;  %s2275_s7 = inlined_call_operand.vmem [shape: f32[1,32], index: 7, kind: input, shape index: {}]   ;;  %s2276_s8 = inlined_call_operand.vmem [shape: f32[1,32], index: 8, kind: input, shape index: {}]   ;;  %s2277_s9 = inlined_call_operand.vmem [shape: f32[1,32], index: 9, kind: input, shape index: {}]   ;;  %s2278_s10 = inlined_call_operand.vmem [shape: f32[32,128], index: 10, kind: input, shape index: {}]   ;;  %s2279_s11 = inlined_call_operand.vmem [shape: f32[1,128], index: 11, kind: input, shape index: {}]   ;;  %s2280_s12 = inlined_call_operand.vmem [shape: f32[128,32], index: 12, kind: input, shape index: {}]   ;;  %s2281_s13 = inlined_call_operand.vmem [shape: f32[1,32], index: 13, kind: input, shape index: {}]   ;;  %s2282_s14 = inlined_call_operand.vmem [shape: f32[2,5,32], index: 14, kind: output, shape index: {}]  }
   0x1 LB: > { %s1650_s30 = sadd.s32 4294967295, %s1941_s29   ;;  %p1654_p0 = scmp.ge.s32.totalorder %s1941_s29, 1  ;;  %s1941_s29 = sphi %s2035_s29, %s24_s29  }
   0x2   : > { %p420_p1 = scmp.lt.s32.totalorder %s1941_s29, 3 }
   0x4   : > { %p421_p2 = pnand %p1654_p0, %p420_p1 }
   0x5   : > { %p468_p3 = scmp.lt.s32.totalorder (!%p421_p2), %s1650_s30, 1  ;;  %vm482_vm0 = vcmask (!%p421_p2), 258048   ;;  %v513_v7 = vld [vmem:[%s2272_s4] sm:$0xff] (!%p421_p2)  ;;  %v514_v8 = vld [vmem:[%s2272_s4 + $0x8] sm:$0xff] (!%p421_p2)  ;;  %v515_v9 = vld [vmem:[%s2272_s4 + $0x10] sm:$0xff] (!%p421_p2)  ;;  %v1943_v10 = vmov (!%p421_p2), 0.0|0.0  }
   0x6   : > { %424 = sbr.rel (%p421_p2) target bundleno = 2525 (0x9dd), region = 76  ;;  %1844 = vmatprep.subr.bf16.mxu1 (!%p421_p2), %v1943_v10  ;;  %v1845_v11 = vpack.c.bf16 (!%p421_p2), %v514_v8, %v513_v7  ;;  %v516_v12 = vld [vmem:[%s2272_s4 + $0x18] sm:$0xff] (!%p421_p2)  ;;  %vm1944_vm1 = vmmov (!%p421_p2), 0   ;;  %v1945_v13 = vmov (!%p421_p2), 0.0   ;;  %v1658_v19 = vld [vmem:[%s2270_s2] ss:$0 sm:$0xff] (!%p421_p2) }
   0x7   : > { %1744 = vmatprep.mubr.msk.f32.mxu1 (!%p421_p2), %vm1944_vm1, %v1945_v13  ;;  %1757 = vmatprep.subr.mxu0 (!%p421_p2), %v1945_v13  ;;  %v1848_v14 = vpack.c.bf16 (!%p421_p2), %v516_v12, %v515_v9  ;;  %v1659_v21 = vld [vmem:[%s2271_s3] ss:$0 sm:$0xff] (!%p421_p2)  ;;  %vm524_vm2 = vcmask (!%p421_p2), 261120   ;;  %s1946_s19 = smov (!%p421_p2), 96   ;;  %s1947_s20 = smov (!%p421_p2), 120   ;;  %vm602_vm3 = vcmask (!%p421_p2), 64512  }
   0x8   : > { %1759 = vmatprep.mubr.msk.f32.mxu0 (!%p421_p2), %vm1944_vm1, %v1945_v13  ;;  %1846 = vmatpush3.bf16.msra.mxu1 (!%p421_p2), %v1845_v11  ;;  %v1660_v24 = vld [vmem:[%s2273_s5] ss:$0 sm:$0xff] (!%p421_p2)  ;;  %s1948_s21 = smov (!%p421_p2), 88   ;;  %s1949_s22 = smov (!%p421_p2), 80   ;;  %vm678_vm4 = vcmask (!%p421_p2), 36864   ;;  %vm696_vm5 = vcmask (!%p421_p2), 1044480  }
   0x9   : > { %1847 = vmatprep.subr.bf16.mxu1 (!%p421_p2), %v1943_v10  ;;  %s1950_s23 = smov (!%p421_p2), 72   ;;  %s1951_s24 = smov (!%p421_p2), 112   ;;  %vm692_vm6 = vcmask (!%p421_p2), 39936   ;;  %vm1280_vm7 = vcmask (!%p421_p2), 130048   ;;  %vm1282_vm8 = vcmask (!%p421_p2), 195584  }
   0xa   : > { %s1952_s25 = smov (!%p421_p2), 104   ;;  %s1954_s16 = smov (!%p421_p2), 48  }
   0xb   : > { %s1955_s17 = smov (!%p421_p2), 40   ;;  %s1957_s27 = smov (!%p421_p2), 8  }
   0xc   : > { %1849 = vmatpush3.bf16.msra.mxu1 (!%p421_p2), %v1848_v14 }
   0xd   : > { %s2284_s30 = smov (!%p468_p3, %s1650_s30), 1  ;;  %1747 = vmatprep.subr.mxu1 %v1945_v13 }
   0xe   : > { %s2043_s15 = sshll.u32 %s2284_s30, 3  ;;  %s1953_s30 = smov 64  }
   0xf   : > { %s471_s18 = scalar_lea.vmem %s2268_s0, %s2043_s15  ;;  %s475_s28 = scalar_lea.vmem %s2269_s1, %s2043_s15 }
  0x10   : > { %v2049_v0 = vld [vmem:[%s471_s18] sm:$0x1f]  ;;  %s1956_s18 = smov 56   ;;  %s479_s26 = scalar_lea.vmem %s2282_s14, %s2043_s15 }
  0x11   : > { %v483_v1 = vsel %vm482_vm0, %v2049_v0, 0.0  ;;  %v481_v36 = vld [vmem:[%s475_s28] sm:$0x1f]  ;;  %s1958_s28 = smov 16  }
  0x12   : > { %484 = vadd.xlane.f32.xlu0 %v483_v1 }
  0x9f   : > { %v485_v2 = vpop.xlane.xlu0 %484 }
  0xa0   : > { %v487_v3 = vmul.f32 0.03125, %v485_v2 }
  0xa2   : > { %v488_v4 = vsub.f32 %v2049_v0, %v487_v3 }
  0xa4   : > { %v489_v5 = vmul.f32 %v488_v4, %v488_v4 }
  0xa6   : > { %v490_v6 = vsel %vm482_vm0, %v489_v5, 0.0 }
  0xa7   : > { %491 = vadd.xlane.f32.xlu0 %v490_v6 }
 0x134   : > { %v492_v15 = vpop.xlane.xlu0 %491 }
 0x135   : > { %v493_v16 = vmul.f32 0.03125, %v492_v15 }
 0x137   : > { %v494_v17 = vadd.f32 1e-05, %v493_v16 }
 0x139   : > { %1911 = vrsqrt.f32 %v494_v17 }
 0x143   : > { %v1912_v18 = vpop.eup %1911 }
 0x144   : > { %v496_v20 = vmul.f32 %v1912_v18, %v488_v4 }
 0x146   : > { %v504_v22 = vmul.f32 %v1658_v19, %v496_v20 }
 0x148   : > { %v512_v23 = vadd.f32 %v1659_v21, %v504_v22 }
 0x14a   : > { %1745 = vmatmul.mubr.msk.f32.vlgmr.msra.gmra.mrb[0].mxu1 %vm524_vm2, %v512_v23 }
 0x14b   : > { %1749 = vmatprep.mubr.msk.f32.mxu1 %vm1944_vm1, %v1945_v13 }
 0x21d   : > { %v594_v25 = vpop.f32.mrb[0].mxu1 }
 0x21e   : > { %v2087_v26 = vadd.f32 %v1660_v24, %v594_v25  ;;  %v1746_v27 = vpop.f32.mrb[1].mxu1 }
 0x220   : > { %600 = vrot.lane.b32.xlu1 %v2087_v26, %s1946_s19  ;;  %v598_v28 = vmul.f32 0.35355338, %v2087_v26 }
 0x222   : > { %769 = vrot.lane.b32.xlu0 %v598_v28, %s1947_s20 }
 0x224   : > { %771 = vrot.lane.b32.xlu1 %v2087_v26, %s1948_s21 }
 0x228   : > { %937 = vrot.lane.b32.xlu1 %v2087_v26, %s1949_s22 }
 0x22c   : > { %1103 = vrot.lane.b32.xlu1 %v2087_v26, %s1950_s23 }
 0x230   : > { %935 = vrot.lane.b32.xlu1 %v598_v28, %s1951_s24 }
 0x234   : > { %1101 = vrot.lane.b32.xlu1 %v598_v28, %s1952_s25 }
 0x292   : > { %v601_v29 = vpop.permute.xlu1 %600 }
 0x293   : > { %1748 = vmatpush3.xpose.msk.msra.mxu1 %vm602_vm3, %v601_v29  ;;  %v1285_v29 = vld [vmem:[%s2274_s6 + $0x8] sm:$0xff] }
 0x294   : > { %1752 = vmatprep.subr.mxu1 %v1945_v13  ;;  %v770_v31 = vpop.permute.xlu0 %769 }
 0x296   : > { %v772_v30 = vpop.permute.xlu1 %771  ;;  %1750 = vmatmul.mubr.msk.f32.vlgmr.msra.gmra.mrb[2].mxu1 %vm602_vm3, %v598_v28  ;;  %v1284_v28 = vld [vmem:[%s2274_s6] sm:$0xff] }
 0x297   : > { %1758 = vmatpush3.xpose.msk.msra.mxu0 %vm602_vm3, %v772_v30  ;;  %1754 = vmatprep.mubr.msk.f32.mxu1 %vm1944_vm1, %v1945_v13  ;;  %v1851_v30 = vpack.c.bf16 %v1285_v29, %v1284_v28  ;;  %v1502_v29 = vld [vmem:[%s2280_s12 + $0x60] sm:$0xff] }
 0x298   : > { %1767 = vmatprep.subr.mxu0 %v1945_v13 }
 0x29a   : > { %v938_v32 = vpop.permute.xlu1 %937  ;;  %1760 = vmatmul.mubr.msk.f32.vlgmr.msra.gmra.mrb[0].mxu0 %vm602_vm3, %v770_v31 }
 0x29b   : > { %1768 = vmatpush3.xpose.msk.msra.mxu0 %vm602_vm3, %v938_v32  ;;  %1769 = vmatprep.mubr.msk.f32.mxu0 %vm1944_vm1, %v1945_v13 }
 0x29c   : > { %1777 = vmatprep.subr.mxu0 %v1945_v13 }
 0x29e   : > { %v1104_v33 = vpop.permute.xlu1 %1103 }
 0x2a2   : > { %v936_v34 = vpop.permute.xlu1 %935 }
 0x2a3   : > { %1770 = vmatmul.mubr.msk.f32.vlgmr.msra.gmra.mrb[2].mxu0 %vm602_vm3, %v936_v34  ;;  %v1287_v34 = vld [vmem:[%s2274_s6 + $0x18] sm:$0xff] }
 0x2a4   : > { %1778 = vmatpush3.xpose.msk.msra.mxu0 %vm602_vm3, %v1104_v33  ;;  %1779 = vmatprep.mubr.msk.f32.mxu0 %vm1944_vm1, %v1945_v13  ;;  %v1286_v33 = vld [vmem:[%s2274_s6 + $0x10] sm:$0xff] }
 0x2a5   : > { %1862 = vmatprep.subr.bf16.mxu0 %v1943_v10 }
 0x2a6   : > { %v1102_v35 = vpop.permute.xlu1 %1101 }
 0x2a7   : > { %1780 = vmatmul.mubr.msk.f32.vlgmr.msra.gmra.mrb[4].mxu0 %vm602_vm3, %v1102_v35  ;;  %v1854_v35 = vpack.c.bf16 %v1287_v34, %v1286_v33  ;;  %v1505_v33 = vld [vmem:[%s2280_s12 + $0x78] sm:$0xff] }
 0x2a8   : > { %1841 = vmatprep.mubr.msk.f32.mxu0 %vm1944_vm1, %v1945_v13 }
 0x369   : > { %v674_v37 = vpop.f32.mrb[2].mxu1 }
 0x36a   : > { %v675_v38 = vadd.f32 %v674_v37, %v481_v36  ;;  %v1751_v39 = vpop.f32.mrb[3].mxu1 }
 0x36c   : > { %v679_v40 = vsel %vm678_vm4, %v675_v38, -inf }
 0x36d   : > { %v843_v41 = vpop.f32.mrb[0].mxu0  ;;  %680 = vmax.xlane.f32.xlu1 %v679_v40 }
 0x36e   : > { %v844_v42 = vadd.f32 %v843_v41, %v481_v36  ;;  %v1761_v43 = vpop.f32.mrb[1].mxu0 }
 0x370   : > { %v847_v44 = vsel %vm678_vm4, %v844_v42, -inf }
 0x371   : > { %848 = vmax.xlane.f32.xlu0 %v847_v44 }
 0x376   : > { %v1009_v45 = vpop.f32.mrb[2].mxu0 }
 0x377   : > { %v1010_v46 = vadd.f32 %v1009_v45, %v481_v36  ;;  %v1771_v47 = vpop.f32.mrb[3].mxu0 }
 0x379   : > { %v1013_v48 = vsel %vm678_vm4, %v1010_v46, -inf }
 0x37a   : > { %v1175_v49 = vpop.f32.mrb[4].mxu0  ;;  %1014 = vmax.xlane.f32.xlu1 %v1013_v48  ;;  %v1678_v48 = vld [vmem:[%s2275_s7] ss:$0 sm:$0xff] }
 0x37b   : > { %v1176_v50 = vadd.f32 %v1175_v49, %v481_v36  ;;  %v1781_v51 = vpop.f32.mrb[5].mxu0 }
 0x37d   : > { %v1179_v52 = vsel %vm678_vm4, %v1176_v50, -inf }
 0x37e   : > { %1180 = vmax.xlane.f32.xlu0 %v1179_v52 }
 0x38b   : > { %690 = vrot.lane.b32.xlu1 %v2087_v26, %s1953_s30  ;;  %s1959_s30 = smov 24  }
 0x3fa   : > { %v681_v53 = vpop.xlane.xlu1 %680 }
 0x3fb   : > { %v682_v54 = vsub.f32 %v675_v38, %v681_v53 }
 0x3fd   : > { %v683_v55 = vmul.f32 1.442695, %v682_v54 }
 0x3fe   : > { %v849_v56 = vpop.xlane.xlu0 %848 }
 0x3ff   : > { %1913 = vpow2.f32 %v683_v55  ;;  %v850_v57 = vsub.f32 %v844_v42, %v849_v56 }
 0x401   : > { %v851_v58 = vmul.f32 1.442695, %v850_v57 }
 0x403   : > { %1915 = vpow2.f32 %v851_v58  ;;  %v1398_v58 = vld [vmem:[%s2278_s10] sm:$0xff] }
 0x407   : > { %v1015_v59 = vpop.xlane.xlu1 %1014 }
 0x408   : > { %v1016_v60 = vsub.f32 %v1010_v46, %v1015_v59 }
 0x409   : > { %v1914_v61 = vpop.eup %1913 }
 0x40a   : > { %v1017_v62 = vmul.f32 1.442695, %v1016_v60  ;;  %v685_v63 = vsel %vm678_vm4, %v1914_v61, 0.0  ;;  %v1400_v60 = vld [vmem:[%s2278_s10 + $0x10] sm:$0xff] }
 0x40b   : > { %v1181_v1 = vpop.xlane.xlu0 %1180  ;;  %686 = vadd.xlane.f32.xlu1 %v685_v63  ;;  %v691_v2 = vpop.permute.xlu1 %690 }
 0x40c   : > { %1917 = vpow2.f32 %v1017_v62  ;;  %v1182_v3 = vsub.f32 %v1176_v50, %v1181_v1  ;;  %1753 = vmatpush3.msk.msra.mxu1 %vm696_vm5, %v691_v2 }
 0x40d   : > { %v1916_v4 = vpop.eup %1915  ;;  %1762 = vmatprep.subr.mxu1 %v1945_v13 }
 0x40e   : > { %v1183_v5 = vmul.f32 1.442695, %v1182_v3  ;;  %v853_v6 = vsel %vm678_vm4, %v1916_v4, 0.0 }
 0x40f   : > { %854 = vadd.xlane.f32.xlu0 %v853_v6  ;;  %v1681_v6 = vld [vmem:[%s2277_s9] ss:$0 sm:$0xff] }
 0x410   : > { %1919 = vpow2.f32 %v1183_v5 }
 0x416   : > { %v1918_v7 = vpop.eup %1917 }
 0x417   : > { %v1019_v8 = vsel %vm678_vm4, %v1918_v7, 0.0 }
 0x418   : > { %1020 = vadd.xlane.f32.xlu1 %v1019_v8 }
 0x41a   : > { %v1920_v9 = vpop.eup %1919 }
 0x41b   : > { %v1185_v11 = vsel %vm678_vm4, %v1920_v9, 0.0 }
 0x41c   : > { %1186 = vadd.xlane.f32.xlu0 %v1185_v11  ;;  %v1491_v11 = vld [vmem:[%s2280_s12 + $0x8] sm:$0xff] }
 0x429   : > { %1024 = vrot.lane.b32.xlu1 %v2087_v26, %s1954_s16 }
 0x42d   : > { %1190 = vrot.lane.b32.xlu1 %v2087_v26, %s1955_s17 }
 0x432   : > { %858 = vrot.lane.b32.xlu0 %v2087_v26, %s1956_s18 }
 0x498   : > { %v687_v12 = vpop.xlane.xlu1 %686 }
 0x499   : > { %1921 = vrcp.f32 %v687_v12 }
 0x49c   : > { %v855_v14 = vpop.xlane.xlu0 %854 }
 0x49d   : > { %1923 = vrcp.f32 %v855_v14  ;;  %v1492_v14 = vld [vmem:[%s2280_s12 + $0x10] sm:$0xff] }
 0x4a3   : > { %v1922_v15 = vpop.eup %1921 }
 0x4a4   : > { %v689_v16 = vmul.f32 %v1922_v15, %v1914_v61  ;;  %v1401_v61 = vld [vmem:[%s2278_s10 + $0x18] sm:$0xff] }
 0x4a5   : > { %v1021_v17 = vpop.xlane.xlu1 %1020  ;;  %v1860_v62 = vpack.c.bf16 %v1401_v61, %v1400_v60  ;;  %v1493_v15 = vld [vmem:[%s2280_s12 + $0x18] sm:$0xff] }
 0x4a6   : > { %1925 = vrcp.f32 %v1021_v17  ;;  %1755 = vmatmul.mubr.msk.f32.vlgmr.msra.gmra.mrb[4].mxu1 %vm692_vm6, %v689_v16  ;;  %v1866_v16 = vpack.c.bf16 %v1493_v15, %v1492_v14  ;;  %v1494_v17 = vld [vmem:[%s2280_s12 + $0x20] sm:$0xff] }
 0x4a7   : > { %1764 = vmatprep.mubr.msk.f32.mxu1 %vm1944_vm1, %v1945_v13  ;;  %v1924_v19 = vpop.eup %1923 }
 0x4a8   : > { %v857_v20 = vmul.f32 %v1924_v19, %v1916_v4  ;;  %v1680_v4 = vld [vmem:[%s2276_s8] ss:$0 sm:$0xff] }
 0x4a9   : > { %v1187_v18 = vpop.xlane.xlu0 %1186  ;;  %v1025_v21 = vpop.permute.xlu1 %1024 }
 0x4aa   : > { %1927 = vrcp.f32 %v1187_v18  ;;  %v1495_v18 = vld [vmem:[%s2280_s12 + $0x28] sm:$0xff] }
 0x4ab   : > { %v1869_v19 = vpack.c.bf16 %v1495_v18, %v1494_v17 }
 0x4ad   : > { %v859_v22 = vpop.permute.xlu0 %858  ;;  %v1191_v25 = vpop.permute.xlu1 %1190 }
 0x4ae   : > { %1763 = vmatpush3.msk.msra.mxu1 %vm696_vm5, %v859_v22 }
 0x4af   : > { %1765 = vmatmul.mubr.msk.f32.vlgmr.msra.gmra.mrb[6].mxu1 %vm692_vm6, %v857_v20  ;;  %1772 = vmatprep.subr.mxu1 %v1945_v13  ;;  %v1496_v20 = vld [vmem:[%s2280_s12 + $0x30] sm:$0xff] }
 0x4b0   : > { %v1926_v23 = vpop.eup %1925  ;;  %1773 = vmatpush3.msk.msra.mxu1 %vm696_vm5, %v1025_v21  ;;  %1774 = vmatprep.mubr.msk.f32.mxu1 %vm1944_vm1, %v1945_v13  ;;  %v1497_v21 = vld [vmem:[%s2280_s12 + $0x38] sm:$0xff] }
 0x4b1   : > { %v1023_v24 = vmul.f32 %v1926_v23, %v1918_v7  ;;  %1782 = vmatprep.subr.mxu1 %v1945_v13  ;;  %v1872_v22 = vpack.c.bf16 %v1497_v21, %v1496_v20  ;;  %v1498_v23 = vld [vmem:[%s2280_s12 + $0x40] sm:$0xff] }
 0x4b3   : > { %1775 = vmatmul.mubr.msk.f32.vlgmr.msra.gmra.mrb[8].mxu1 %vm692_vm6, %v1023_v24  ;;  %v1499_v24 = vld [vmem:[%s2280_s12 + $0x48] sm:$0xff] }
 0x4b4   : > { %v1928_v26 = vpop.eup %1927  ;;  %1783 = vmatpush3.msk.msra.mxu1 %vm696_vm5, %v1191_v25  ;;  %1784 = vmatprep.mubr.msk.f32.mxu1 %vm1944_vm1, %v1945_v13  ;;  %v1875_v25 = vpack.c.bf16 %v1499_v24, %v1498_v23 }
 0x4b5   : > { %v1189_v27 = vmul.f32 %v1928_v26, %v1920_v9  ;;  %1850 = vmatprep.subr.bf16.mxu1 %v1943_v10  ;;  %v1490_v9 = vld [vmem:[%s2280_s12] sm:$0xff]  ;;  %v1500_v26 = vld [vmem:[%s2280_s12 + $0x50] sm:$0xff] }
 0x4b6   : > { %v1863_v12 = vpack.c.bf16 %v1491_v11, %v1490_v9 }
 0x4b7   : > { %1785 = vmatmul.mubr.msk.f32.vlgmr.msra.gmra.mrb[10].mxu1 %vm692_vm6, %v1189_v27  ;;  %v1501_v27 = vld [vmem:[%s2280_s12 + $0x58] sm:$0xff] }
 0x4b8   : > { %1795 = vmatprep.mubr.msk.f32.mxu1 %vm1944_vm1, %v1945_v13  ;;  %1852 = vmatpush3.bf16.msra.mxu1 %v1851_v30  ;;  %v1878_v28 = vpack.c.bf16 %v1501_v27, %v1500_v26  ;;  %v1503_v30 = vld [vmem:[%s2280_s12 + $0x68] sm:$0xff] }
 0x4b9   : > { %1853 = vmatprep.subr.bf16.mxu1 %v1943_v10  ;;  %1864 = vmatpush3.bf16.msra.mxu0 %v1863_v12 }
 0x4ba   : > { %1865 = vmatprep.subr.bf16.mxu0 %v1943_v10 }
 0x4bc   : > { %1855 = vmatpush3.bf16.msra.mxu1 %v1854_v35  ;;  %v1682_v35 = vld [vmem:[%s2279_s11] ss:$0 sm:$0xff] }
 0x4bd   : > { %1856 = vmatprep.subr.bf16.mxu1 %v1943_v10  ;;  %1867 = vmatpush3.bf16.msra.mxu0 %v1866_v16 }
 0x4be   : > { %1868 = vmatprep.subr.bf16.mxu0 %v1943_v10 }
 0x4c1   : > { %1870 = vmatpush3.bf16.msra.mxu0 %v1869_v19 }
 0x4c2   : > { %1871 = vmatprep.subr.bf16.mxu0 %v1943_v10 }
 0x4c5   : > { %1873 = vmatpush3.bf16.msra.mxu0 %v1872_v22 }
 0x4c6   : > { %1874 = vmatprep.subr.bf16.mxu0 %v1943_v10 }
 0x4c9   : > { %1876 = vmatpush3.bf16.msra.mxu0 %v1875_v25 }
 0x4ca   : > { %1877 = vmatprep.subr.bf16.mxu0 %v1943_v10 }
 0x4cd   : > { %1879 = vmatpush3.bf16.msra.mxu0 %v1878_v28 }
 0x4ce   : > { %1880 = vmatprep.subr.bf16.mxu0 %v1943_v10 }
 0x579   : > { %v765_v31 = vpop.f32.mrb[4].mxu1 }
 0x57a   : > { %v1756_v32 = vpop.f32.mrb[5].mxu1 }
 0x57b   : > { %v1504_v32 = vld [vmem:[%s2280_s12 + $0x70] sm:$0xff] }
 0x57c   : > { %v1884_v34 = vpack.c.bf16 %v1505_v33, %v1504_v32 }
 0x582   : > { %v931_v36 = vpop.f32.mrb[6].mxu1 }
 0x583   : > { %1268 = vrot.lane.b32.xlu0 %v931_v36, %s1957_s27  ;;  %v1766_v37 = vpop.f32.mrb[7].mxu1 }
 0x586   : > { %v1097_v38 = vpop.f32.mrb[8].mxu1 }
 0x587   : > { %1272 = vrot.lane.b32.xlu1 %v1097_v38, %s1958_s28  ;;  %v1776_v39 = vpop.f32.mrb[9].mxu1 }
 0x58a   : > { %v1263_v40 = vpop.f32.mrb[10].mxu1 }
 0x58b   : > { %1276 = vrot.lane.b32.xlu0 %v1263_v40, %s1959_s30  ;;  %v1786_v41 = vpop.f32.mrb[11].mxu1 }
 0x5f5   : > { %v1269_v42 = vpop.permute.xlu0 %1268 }
 0x5f6   : > { %v1279_v44 = vsel %vm602_vm3, %v765_v31, %v1269_v42  ;;  %v1881_v31 = vpack.c.bf16 %v1503_v30, %v1502_v29 }
 0x5f8   : > { %1882 = vmatpush3.bf16.msra.mxu0 %v1881_v31 }
 0x5f9   : > { %v1273_v43 = vpop.permute.xlu1 %1272  ;;  %1883 = vmatprep.subr.bf16.mxu0 %v1943_v10 }
 0x5fa   : > { %v1281_v45 = vsel %vm1280_vm7, %v1279_v44, %v1273_v43  ;;  %v1685_v44 = vld [vmem:[%s2281_s13] ss:$0 sm:$0xff] }
 0x5fc   : > { %1885 = vmatpush3.bf16.msra.mxu0 %v1884_v34 }
 0x5fd   : > { %v1277_v46 = vpop.permute.xlu0 %1276 }
 0x5fe   : > { %v1283_v47 = vsel %vm1282_vm8, %v1281_v45, %v1277_v46 }
 0x5ff   : > { %1796 = vmatmul.mubr.msk.f32.vlgmr.msra.gmra.mrb[12].mxu1 %vm524_vm2, %v1283_v47 }
 0x600   : > { %1806 = vmatprep.mubr.msk.f32.mxu1 %vm1944_vm1, %v1945_v13 }
 0x6d2   : > { %v1364_v49 = vpop.f32.mrb[12].mxu1 }
 0x6d3   : > { %v1365_v50 = vadd.f32 %v1678_v48, %v1364_v49  ;;  %v1797_v51 = vpop.f32.mrb[13].mxu1 }
 0x6d5   : > { %v2172_v52 = vadd.f32 %v1365_v50, %v2049_v0  ;;  %v1399_v0 = vld [vmem:[%s2278_s10 + $0x8] sm:$0xff] }
 0x6d6   : > { %v1857_v59 = vpack.c.bf16 %v1399_v0, %v1398_v58 }
 0x6d7   : > { %v1369_v53 = vsel %vm482_vm0, %v2172_v52, 0.0 }
 0x6d8   : > { %1370 = vadd.xlane.f32.xlu1 %v1369_v53  ;;  %1858 = vmatpush3.bf16.msra.mxu1 %v1857_v59 }
 0x6d9   : > { %1859 = vmatprep.subr.bf16.mxu1 %v1943_v10 }
 0x6dc   : > { %1861 = vmatpush3.bf16.msra.mxu1 %v1860_v62 }
 0x765   : > { %v1371_v54 = vpop.xlane.xlu1 %1370 }
 0x766   : > { %v1372_v55 = vmul.f32 0.03125, %v1371_v54 }
 0x768   : > { %v1373_v56 = vsub.f32 %v2172_v52, %v1372_v55 }
 0x76a   : > { %v1374_v57 = vmul.f32 %v1373_v56, %v1373_v56 }
 0x76c   : > { %v1375_v13 = vsel %vm482_vm0, %v1374_v57, 0.0 }
 0x76d   : > { %1376 = vadd.xlane.f32.xlu0 %v1375_v13 }
 0x7fa   : > { %v1377_v63 = vpop.xlane.xlu0 %1376 }
 0x7fb   : > { %v1378_v1 = vmul.f32 0.03125, %v1377_v63 }
 0x7fd   : > { %v1379_v2 = vadd.f32 1e-05, %v1378_v1 }
 0x7ff   : > { %1929 = vrsqrt.f32 %v1379_v2 }
 0x809   : > { %v1930_v3 = vpop.eup %1929 }
 0x80a   : > { %v1381_v5 = vmul.f32 %v1930_v3, %v1373_v56 }
 0x80c   : > { %v1389_v7 = vmul.f32 %v1680_v4, %v1381_v5 }
 0x80e   : > { %v1397_v8 = vadd.f32 %v1681_v6, %v1389_v7 }
 0x810   : > { %1807 = vmatmul.mubr.msk.f32.vlgmr.msra.gmra.mrb[14].mxu1 %vm524_vm2, %v1397_v8 }
 0x8e3   : > { %v1478_v36 = vpop.f32.mrb[14].mxu1 }
 0x8e4   : > { %v1479_v37 = vadd.f32 %v1682_v35, %v1478_v36  ;;  %v1808_v38 = vpop.f32.mrb[15].mxu1 }
 0x8e6   : > { %v1684_v39 = vmul.f32 -1.702, %v1479_v37 }
 0x8e8   : > { %v1484_v10 = vmul.f32 1.442695, %v1684_v39 }
 0x8ea   : > { %1931 = vpow2.f32 %v1484_v10 }
 0x8f4   : > { %v1932_v40 = vpop.eup %1931 }
 0x8f5   : > { %v1486_v41 = vadd.f32 1.0, %v1932_v40 }
 0x8f7   : > { %1933 = vrcp.f32 %v1486_v41 }
 0x901   : > { %v1934_v42 = vpop.eup %1933 }
 0x902   : > { %v1489_v43 = vmul.f32 %v1934_v42, %v1479_v37 }
 0x904   : > { %1842 = vmatmul.mubr.f32.vlgmr.msra.gmra.mrb[6].mxu0 %v1489_v43 }
 0x9d7   : > { %v1579_v45 = vpop.f32.mrb[6].mxu0 }
 0x9d8   : > { %v1580_v46 = vadd.f32 %v1685_v44, %v1579_v45  ;;  %v1843_v47 = vpop.f32.mrb[7].mxu0 }
 0x9da   : > { %v1583_v48 = vadd.f32 %v1580_v46, %v2172_v52 }
 0x9dc   : > { %1584 = vst.msk [vmem:[%s479_s26] sm:$0x1f] %vm482_vm0, %v1583_v48 }
 0x9dd PF: > { %s24_s29 = sadd.s32 1, %s1941_s29  }
 0x9de   : > { %p21_p4 = scmp.ge.s32.totalorder %s24_s29, 4  }
 0x9e0   :  { %23 = sbr.rel (!%p21_p4) target bundleno = 1 (0x1), region = 109 }

// kernel: forward.9
= control target key start
LH: loop header
LB: loop body
LE: loop exit
PB: predicated region body
PF: predicated region fallthrough
CT: control target
= control target key end

     0   :  { %vm18_vm0 = vcmask 257024   ;;  %v181_v7 = vmov 0.0|0.0   ;;  %vm182_vm1 = vmmov 0   ;;  %v183_v11 = vmov 0.0   ;;  %s235_s0 = inlined_call_operand.vmem [shape: f32[4,32], index: 0, kind: input, shape index: {}]   ;;  %s236_s3 = inlined_call_operand.vmem [shape: f32[32,16], index: 3, kind: input, shape index: {}]   ;;  %s237_s1 = inlined_call_operand.vmem [shape: f32[1,32], index: 1, kind: input, shape index: {}]   ;;  %s238_s2 = inlined_call_operand.vmem [shape: f32[1,32], index: 2, kind: input, shape index: {}]   ;;  %s239_s4 = inlined_call_operand.vmem [shape: f32[4,16], index: 4, kind: output, shape index: {}]  }
   0x1   :  { %v17_v0 = vld [vmem:[%s235_s0] sm:$0xf]  ;;  %166 = vmatprep.subr.bf16.mxu0 %v181_v7  ;;  %v50_v9 = vld [vmem:[%s236_s3 + $0x8] sm:$0xff]  ;;  %v51_v10 = vld [vmem:[%s236_s3 + $0x10] sm:$0xff]  ;;  %163 = vmatprep.mubr.msk.f32.mxu0 %vm182_vm1, %v183_v11  ;;  %vm53_vm2 = vcmask 261120   ;;  %vm128_vm3 = vcmask 125952  }
   0x2   :  { %v19_v1 = vsel %vm18_vm0, %v17_v0, 0.0  ;;  %v49_v8 = vld [vmem:[%s236_s3] sm:$0xff]  ;;  %v52_v13 = vld [vmem:[%s236_s3 + $0x18] sm:$0xff] }
   0x3   :  { %20 = vadd.xlane.f32.xlu0 %v19_v1  ;;  %v167_v12 = vpack.c.bf16 %v50_v9, %v49_v8  ;;  %v170_v14 = vpack.c.bf16 %v52_v13, %v51_v10  ;;  %v147_v19 = vld [vmem:[%s237_s1] ss:$0 sm:$0xff] }
   0x4   :  { %v148_v21 = vld [vmem:[%s238_s2] ss:$0 sm:$0xff] }
   0x5   :  { %168 = vmatpush3.bf16.msra.mxu0 %v167_v12 }
   0x6   :  { %169 = vmatprep.subr.bf16.mxu0 %v181_v7 }
   0x9   :  { %171 = vmatpush3.bf16.msra.mxu0 %v170_v14 }
  0x90   :  { %v21_v2 = vpop.xlane.xlu0 %20 }
  0x91   :  { %v23_v3 = vmul.f32 0.03125, %v21_v2 }
  0x93   :  { %v24_v4 = vsub.f32 %v17_v0, %v23_v3 }
  0x95   :  { %v25_v5 = vmul.f32 %v24_v4, %v24_v4 }
  0x97   :  { %v26_v6 = vsel %vm18_vm0, %v25_v5, 0.0 }
  0x98   :  { %27 = vadd.xlane.f32.xlu0 %v26_v6 }
 0x125   :  { %v28_v15 = vpop.xlane.xlu0 %27 }
 0x126   :  { %v29_v16 = vmul.f32 0.03125, %v28_v15 }
 0x128   :  { %v30_v17 = vadd.f32 1e-05, %v29_v16 }
 0x12a   :  { %175 = vrsqrt.f32 %v30_v17 }
 0x134   :  { %v176_v18 = vpop.eup %175 }
 0x135   :  { %v32_v20 = vmul.f32 %v176_v18, %v24_v4 }
 0x137   :  { %v40_v22 = vmul.f32 %v147_v19, %v32_v20 }
 0x139   :  { %v48_v23 = vadd.f32 %v148_v21, %v40_v22 }
 0x13b   :  { %164 = vmatmul.mubr.msk.f32.vlgmr.msra.gmra.mrb[0].mxu0 %vm53_vm2, %v48_v23 }
 0x20e   :  { %v123_v24 = vpop.f32.mrb[0].mxu0 }
 0x20f   :  { %v165_v25 = vpop.f32.mrb[1].mxu0  ;;  %v127_v26 = vmul.f32 %v123_v24, %v123_v24 }
 0x211   :  { %v129_v27 = vsel %vm128_vm3, %v127_v26, 0.0 }
 0x212   :  { %130 = vadd.xlane.f32.xlu1 %v129_v27 }
 0x29f   :  { %v131_v28 = vpop.xlane.xlu1 %130 }
 0x2a0   :  { %177 = vrsqrt.f32 %v131_v28  ;;  %vm134_vm4 = vcmp.eq.f32.partialorder %v131_v28, inf  ;;  %v137_v31 = vand.u32 2147483648, %v131_v28  ;;  %vm136_vm5 = vcmp.eq.f32.partialorder %v131_v28, 0.0 }
 0x2aa   :  { %v178_v29 = vpop.eup %177 }
 0x2ab   :  { %v133_v30 = vmul.f32 %v178_v29, %v131_v28 }
 0x2ad   :  { %v135_v32 = vsel %vm134_vm4, %v131_v28, %v133_v30 }
 0x2ae   :  { %v138_v33 = vsel %vm136_vm5, %v137_v31, %v135_v32 }
 0x2af   :  { %v139_v34 = vadd.f32 1e-06, %v138_v33 }
 0x2b1   :  { %179 = vrcp.f32 %v139_v34 }
 0x2bb   :  { %v180_v35 = vpop.eup %179 }
 0x2bc   :  { %v141_v36 = vmul.f32 %v180_v35, %v123_v24 }
 0x2be   :  { %142 = vst.msk [vmem:[%s239_s4] sm:$0xf] %vm128_vm3, %v141_v36 }

// kernel: forward.7
= control target key start
LH: loop header
LB: loop body
LE: loop exit
PB: predicated region body
PF: predicated region fallthrough
CT: control target
= control target key end

     0   :  { %s2023_s29 = smov 0   ;;  %s2252_s0 = inlined_call_operand.vmem [shape: f32[4,8,32], index: 0, kind: input, shape index: {}]   ;;  %s2253_s1 = inlined_call_operand.vmem [shape: f32[4,8,8], index: 1, kind: input, shape index: {}]   ;;  %s2254_s2 = inlined_call_operand.vmem [shape: f32[1,32], index: 2, kind: input, shape index: {}]   ;;  %s2255_s3 = inlined_call_operand.vmem [shape: f32[1,32], index: 3, kind: input, shape index: {}]   ;;  %s2256_s4 = inlined_call_operand.vmem [shape: f32[32,96], index: 4, kind: input, shape index: {}]   ;;  %s2257_s5 = inlined_call_operand.vmem [shape: f32[1,96], index: 5, kind: input, shape index: {}]   ;;  %s2258_s6 = inlined_call_operand.vmem [shape: f32[32,32], index: 6, kind: input, shape index: {}]   ;;  %s2259_s7 = inlined_call_operand.vmem [shape: f32[1,32], index: 7, kind: input, shape index: {}]   ;;  %s2260_s8 = inlined_call_operand.vmem [shape: f32[1,32], index: 8, kind: input, shape index: {}]   ;;  %s2261_s9 = inlined_call_operand.vmem [shape: f32[1,32], index: 9, kind: input, shape index: {}]   ;;  %s2262_s10 = inlined_call_operand.vmem [shape: f32[32,128], index: 10, kind: input, shape index: {}]   ;;  %s2263_s11 = inlined_call_operand.vmem [shape: f32[1,128], index: 11, kind: input, shape index: {}]   ;;  %s2264_s12 = inlined_call_operand.vmem [shape: f32[128,32], index: 12, kind: input, shape index: {}]   ;;  %s2265_s13 = inlined_call_operand.vmem [shape: f32[1,32], index: 13, kind: input, shape index: {}]   ;;  %s2266_s14 = inlined_call_operand.vmem [shape: f32[4,8,32], index: 14, kind: output, shape index: {}]  }
   0x1 LB: > { %s1642_s30 = sadd.s32 4294967295, %s1929_s29   ;;  %p1646_p0 = scmp.ge.s32.totalorder %s1929_s29, 1  ;;  %s1929_s29 = sphi %s2023_s29, %s24_s29  }
   0x2   : > { %p420_p1 = scmp.lt.s32.totalorder %s1929_s29, 5 }
   0x4   : > { %p421_p2 = pnand %p1646_p0, %p420_p1 }
   0x5   : > { %p468_p3 = scmp.lt.s32.totalorder (!%p421_p2), %s1642_s30, 3  ;;  %vm482_vm0 = vcmask (!%p421_p2), 261120   ;;  %v513_v7 = vld [vmem:[%s2256_s4] sm:$0xff] (!%p421_p2)  ;;  %v514_v8 = vld [vmem:[%s2256_s4 + $0x8] sm:$0xff] (!%p421_p2)  ;;  %v515_v9 = vld [vmem:[%s2256_s4 + $0x10] sm:$0xff] (!%p421_p2)  ;;  %v1931_v10 = vmov (!%p421_p2), 0.0|0.0  }
   0x6   : > { %424 = sbr.rel (%p421_p2) target bundleno = 2525 (0x9dd), region = 76  ;;  %1832 = vmatprep.subr.bf16.mxu1 (!%p421_p2), %v1931_v10  ;;  %v1833_v11 = vpack.c.bf16 (!%p421_p2), %v514_v8, %v513_v7  ;;  %v516_v12 = vld [vmem:[%s2256_s4 + $0x18] sm:$0xff] (!%p421_p2)  ;;  %vm1932_vm1 = vmmov (!%p421_p2), 0   ;;  %v1933_v13 = vmov (!%p421_p2), 0.0   ;;  %v1650_v19 = vld [vmem:[%s2254_s2] ss:$0 sm:$0xff] (!%p421_p2) }
   0x7   : > { %1732 = vmatprep.mubr.msk.f32.mxu1 (!%p421_p2), %vm1932_vm1, %v1933_v13  ;;  %1745 = vmatprep.subr.mxu0 (!%p421_p2), %v1933_v13  ;;  %v1836_v14 = vpack.c.bf16 (!%p421_p2), %v516_v12, %v515_v9  ;;  %v1651_v21 = vld [vmem:[%s2255_s3] ss:$0 sm:$0xff] (!%p421_p2)  ;;  %s1934_s19 = smov (!%p421_p2), 96   ;;  %s1935_s20 = smov (!%p421_p2), 120   ;;  %vm601_vm2 = vcmask (!%p421_p2), 64512   ;;  %vm1272_vm3 = vcmask (!%p421_p2), 130048  }
   0x8   : > { %1747 = vmatprep.mubr.msk.f32.mxu0 (!%p421_p2), %vm1932_vm1, %v1933_v13  ;;  %1834 = vmatpush3.bf16.msra.mxu1 (!%p421_p2), %v1833_v11  ;;  %v1652_v24 = vld [vmem:[%s2257_s5] ss:$0 sm:$0xff] (!%p421_p2)  ;;  %s1936_s21 = smov (!%p421_p2), 88   ;;  %s1937_s22 = smov (!%p421_p2), 80   ;;  %vm1274_vm4 = vcmask (!%p421_p2), 195584  }
   0x9   : > { %1835 = vmatprep.subr.bf16.mxu1 (!%p421_p2), %v1931_v10  ;;  %s1938_s23 = smov (!%p421_p2), 72   ;;  %s1939_s24 = smov (!%p421_p2), 112  }
   0xa   : > { %s1940_s25 = smov (!%p421_p2), 104   ;;  %s1942_s16 = smov (!%p421_p2), 48  }
   0xb   : > { %s1943_s17 = smov (!%p421_p2), 40   ;;  %s1945_s27 = smov (!%p421_p2), 8  }
   0xc   : > { %1837 = vmatpush3.bf16.msra.mxu1 (!%p421_p2), %v1836_v14 }
   0xd   : > { %s2268_s30 = smov (!%p468_p3, %s1642_s30), 3  ;;  %1735 = vmatprep.subr.mxu1 %v1933_v13 }
   0xe   : > { %s2031_s15 = sshll.u32 %s2268_s30, 3  ;;  %s1941_s30 = smov 64  }
   0xf   : > { %s471_s18 = scalar_lea.vmem %s2252_s0, %s2031_s15  ;;  %s475_s28 = scalar_lea.vmem %s2253_s1, %s2031_s15 }
  0x10   : > { %v2037_v0 = vld [vmem:[%s471_s18] sm:$0xff]  ;;  %s1944_s18 = smov 56   ;;  %s479_s26 = scalar_lea.vmem %s2266_s14, %s2031_s15 }
  0x11   : > { %v483_v1 = vsel %vm482_vm0, %v2037_v0, 0.0  ;;  %v481_v36 = vld [vmem:[%s475_s28] sm:$0xff]  ;;  %s1946_s28 = smov 16  }
  0x12   : > { %484 = vadd.xlane.f32.xlu0 %v483_v1 }
  0x9f   : > { %v485_v2 = vpop.xlane.xlu0 %484 }
  0xa0   : > { %v487_v3 = vmul.f32 0.03125, %v485_v2 }
  0xa2   : > { %v488_v4 = vsub.f32 %v2037_v0, %v487_v3 }
  0xa4   : > { %v489_v5 = vmul.f32 %v488_v4, %v488_v4 }
  0xa6   : > { %v490_v6 = vsel %vm482_vm0, %v489_v5, 0.0 }
  0xa7   : > { %491 = vadd.xlane.f32.xlu0 %v490_v6 }
 0x134   : > { %v492_v15 = vpop.xlane.xlu0 %491 }
 0x135   : > { %v493_v16 = vmul.f32 0.03125, %v492_v15 }
 0x137   : > { %v494_v17 = vadd.f32 1e-05, %v493_v16 }
 0x139   : > { %1899 = vrsqrt.f32 %v494_v17 }
 0x143   : > { %v1900_v18 = vpop.eup %1899 }
 0x144   : > { %v496_v20 = vmul.f32 %v1900_v18, %v488_v4 }
 0x146   : > { %v504_v22 = vmul.f32 %v1650_v19, %v496_v20 }
 0x148   : > { %v512_v23 = vadd.f32 %v1651_v21, %v504_v22 }
 0x14a   : > { %1733 = vmatmul.mubr.msk.f32.vlgmr.msra.gmra.mrb[0].mxu1 %vm482_vm0, %v512_v23 }
 0x14b   : > { %1737 = vmatprep.mubr.msk.f32.mxu1 %vm1932_vm1, %v1933_v13 }
 0x21d   : > { %v593_v25 = vpop.f32.mrb[0].mxu1 }
 0x21e   : > { %v2075_v26 = vadd.f32 %v1652_v24, %v593_v25  ;;  %v1734_v27 = vpop.f32.mrb[1].mxu1 }
 0x220   : > { %599 = vrot.lane.b32.xlu1 %v2075_v26, %s1934_s19  ;;  %v597_v28 = vmul.f32 0.35355338, %v2075_v26 }
 0x222   : > { %764 = vrot.lane.b32.xlu0 %v597_v28, %s1935_s20 }
 0x224   : > { %766 = vrot.lane.b32.xlu1 %v2075_v26, %s1936_s21 }
 0x228   : > { %931 = vrot.lane.b32.xlu1 %v2075_v26, %s1937_s22 }
 0x22c   : > { %1096 = vrot.lane.b32.xlu1 %v2075_v26, %s1938_s23 }
 0x230   : > { %929 = vrot.lane.b32.xlu1 %v597_v28, %s1939_s24 }
 0x234   : > { %1094 = vrot.lane.b32.xlu1 %v597_v28, %s1940_s25 }
 0x292   : > { %v600_v29 = vpop.permute.xlu1 %599 }
 0x293   : > { %1736 = vmatpush3.xpose.msk.msra.mxu1 %vm601_vm2, %v600_v29  ;;  %v1277_v29 = vld [vmem:[%s2258_s6 + $0x8] sm:$0xff] }
 0x294   : > { %1740 = vmatprep.subr.mxu1 %v1933_v13  ;;  %v765_v31 = vpop.permute.xlu0 %764 }
 0x296   : > { %v767_v30 = vpop.permute.xlu1 %766  ;;  %1738 = vmatmul.mubr.msk.f32.vlgmr.msra.gmra.mrb[2].mxu1 %vm601_vm2, %v597_v28  ;;  %v1276_v28 = vld [vmem:[%s2258_s6] sm:$0xff] }
 0x297   : > { %1746 = vmatpush3.xpose.msk.msra.mxu0 %vm601_vm2, %v767_v30  ;;  %1742 = vmatprep.mubr.msk.f32.mxu1 %vm1932_vm1, %v1933_v13  ;;  %v1839_v30 = vpack.c.bf16 %v1277_v29, %v1276_v28  ;;  %v1494_v29 = vld [vmem:[%s2264_s12 + $0x60] sm:$0xff] }
 0x298   : > { %1755 = vmatprep.subr.mxu0 %v1933_v13 }
 0x29a   : > { %v932_v32 = vpop.permute.xlu1 %931  ;;  %1748 = vmatmul.mubr.msk.f32.vlgmr.msra.gmra.mrb[0].mxu0 %vm601_vm2, %v765_v31 }
 0x29b   : > { %1756 = vmatpush3.xpose.msk.msra.mxu0 %vm601_vm2, %v932_v32  ;;  %1757 = vmatprep.mubr.msk.f32.mxu0 %vm1932_vm1, %v1933_v13 }
 0x29c   : > { %1765 = vmatprep.subr.mxu0 %v1933_v13 }
 0x29e   : > { %v1097_v33 = vpop.permute.xlu1 %1096 }
 0x2a2   : > { %v930_v34 = vpop.permute.xlu1 %929 }
 0x2a3   : > { %1758 = vmatmul.mubr.msk.f32.vlgmr.msra.gmra.mrb[2].mxu0 %vm601_vm2, %v930_v34  ;;  %v1279_v34 = vld [vmem:[%s2258_s6 + $0x18] sm:$0xff] }
 0x2a4   : > { %1766 = vmatpush3.xpose.msk.msra.mxu0 %vm601_vm2, %v1097_v33  ;;  %1767 = vmatprep.mubr.msk.f32.mxu0 %vm1932_vm1, %v1933_v13  ;;  %v1278_v33 = vld [vmem:[%s2258_s6 + $0x10] sm:$0xff] }
 0x2a5   : > { %1850 = vmatprep.subr.bf16.mxu0 %v1931_v10 }
 0x2a6   : > { %v1095_v35 = vpop.permute.xlu1 %1094 }
 0x2a7   : > { %1768 = vmatmul.mubr.msk.f32.vlgmr.msra.gmra.mrb[4].mxu0 %vm601_vm2, %v1095_v35  ;;  %v1842_v35 = vpack.c.bf16 %v1279_v34, %v1278_v33  ;;  %v1497_v33 = vld [vmem:[%s2264_s12 + $0x78] sm:$0xff] }
 0x2a8   : > { %1829 = vmatprep.mubr.msk.f32.mxu0 %vm1932_vm1, %v1933_v13 }
 0x369   : > { %v673_v37 = vpop.f32.mrb[2].mxu1 }
 0x36a   : > { %v674_v38 = vadd.f32 %v673_v37, %v481_v36  ;;  %v1739_v39 = vpop.f32.mrb[3].mxu1 }
 0x36c   : > { %v677_v40 = vsel %vm601_vm2, %v674_v38, -inf }
 0x36d   : > { %v838_v41 = vpop.f32.mrb[0].mxu0  ;;  %678 = vmax.xlane.f32.xlu1 %v677_v40 }
 0x36e   : > { %v839_v42 = vadd.f32 %v838_v41, %v481_v36  ;;  %v1749_v43 = vpop.f32.mrb[1].mxu0 }
 0x370   : > { %v842_v44 = vsel %vm601_vm2, %v839_v42, -inf }
 0x371   : > { %843 = vmax.xlane.f32.xlu0 %v842_v44 }
 0x376   : > { %v1003_v45 = vpop.f32.mrb[2].mxu0 }
 0x377   : > { %v1004_v46 = vadd.f32 %v1003_v45, %v481_v36  ;;  %v1759_v47 = vpop.f32.mrb[3].mxu0 }
 0x379   : > { %v1007_v48 = vsel %vm601_vm2, %v1004_v46, -inf }
 0x37a   : > { %v1168_v49 = vpop.f32.mrb[4].mxu0  ;;  %1008 = vmax.xlane.f32.xlu1 %v1007_v48  ;;  %v1666_v48 = vld [vmem:[%s2259_s7] ss:$0 sm:$0xff] }
 0x37b   : > { %v1169_v50 = vadd.f32 %v1168_v49, %v481_v36  ;;  %v1769_v51 = vpop.f32.mrb[5].mxu0 }
 0x37d   : > { %v1172_v52 = vsel %vm601_vm2, %v1169_v50, -inf }
 0x37e   : > { %1173 = vmax.xlane.f32.xlu0 %v1172_v52 }
 0x38b   : > { %688 = vrot.lane.b32.xlu1 %v2075_v26, %s1941_s30  ;;  %s1947_s30 = smov 24  }
 0x3fa   : > { %v679_v53 = vpop.xlane.xlu1 %678 }
 0x3fb   : > { %v680_v54 = vsub.f32 %v674_v38, %v679_v53 }
 0x3fd   : > { %v681_v55 = vmul.f32 1.442695, %v680_v54 }
 0x3fe   : > { %v844_v56 = vpop.xlane.xlu0 %843 }
 0x3ff   : > { %1901 = vpow2.f32 %v681_v55  ;;  %v845_v57 = vsub.f32 %v839_v42, %v844_v56 }
 0x401   : > { %v846_v58 = vmul.f32 1.442695, %v845_v57 }
 0x403   : > { %1903 = vpow2.f32 %v846_v58  ;;  %v1390_v58 = vld [vmem:[%s2262_s10] sm:$0xff] }
 0x407   : > { %v1009_v59 = vpop.xlane.xlu1 %1008 }
 0x408   : > { %v1010_v60 = vsub.f32 %v1004_v46, %v1009_v59 }
 0x409   : > { %v1902_v61 = vpop.eup %1901 }
 0x40a   : > { %v1011_v62 = vmul.f32 1.442695, %v1010_v60  ;;  %v683_v63 = vsel %vm601_vm2, %v1902_v61, 0.0  ;;  %v1392_v60 = vld [vmem:[%s2262_s10 + $0x10] sm:$0xff] }
 0x40b   : > { %v1174_v1 = vpop.xlane.xlu0 %1173  ;;  %684 = vadd.xlane.f32.xlu1 %v683_v63  ;;  %v689_v2 = vpop.permute.xlu1 %688 }
 0x40c   : > { %1905 = vpow2.f32 %v1011_v62  ;;  %v1175_v3 = vsub.f32 %v1169_v50, %v1174_v1  ;;  %1741 = vmatpush3.msra.mxu1 %v689_v2 }
 0x40d   : > { %v1904_v4 = vpop.eup %1903  ;;  %1750 = vmatprep.subr.mxu1 %v1933_v13 }
 0x40e   : > { %v1176_v5 = vmul.f32 1.442695, %v1175_v3  ;;  %v848_v6 = vsel %vm601_vm2, %v1904_v4, 0.0 }
 0x40f   : > { %849 = vadd.xlane.f32.xlu0 %v848_v6  ;;  %v1669_v6 = vld [vmem:[%s2261_s9] ss:$0 sm:$0xff] }
 0x410   : > { %1907 = vpow2.f32 %v1176_v5 }
 0x416   : > { %v1906_v7 = vpop.eup %1905 }
 0x417   : > { %v1013_v8 = vsel %vm601_vm2, %v1906_v7, 0.0 }
 0x418   : > { %1014 = vadd.xlane.f32.xlu1 %v1013_v8 }
 0x41a   : > { %v1908_v9 = vpop.eup %1907 }
 0x41b   : > { %v1178_v11 = vsel %vm601_vm2, %v1908_v9, 0.0 }
 0x41c   : > { %1179 = vadd.xlane.f32.xlu0 %v1178_v11  ;;  %v1483_v11 = vld [vmem:[%s2264_s12 + $0x8] sm:$0xff] }
 0x429   : > { %1018 = vrot.lane.b32.xlu1 %v2075_v26, %s1942_s16 }
 0x42d   : > { %1183 = vrot.lane.b32.xlu1 %v2075_v26, %s1943_s17 }
 0x432   : > { %853 = vrot.lane.b32.xlu0 %v2075_v26, %s1944_s18 }
 0x498   : > { %v685_v12 = vpop.xlane.xlu1 %684 }
 0x499   : > { %1909 = vrcp.f32 %v685_v12 }
 0x49c   : > { %v850_v14 = vpop.xlane.xlu0 %849 }
 0x49d   : > { %1911 = vrcp.f32 %v850_v14  ;;  %v1484_v14 = vld [vmem:[%s2264_s12 + $0x10] sm:$0xff] }
 0x4a3   : > { %v1910_v15 = vpop.eup %1909 }
 0x4a4   : > { %v687_v16 = vmul.f32 %v1910_v15, %v1902_v61  ;;  %v1393_v61 = vld [vmem:[%s2262_s10 + $0x18] sm:$0xff] }
 0x4a5   : > { %v1015_v17 = vpop.xlane.xlu1 %1014  ;;  %v1848_v62 = vpack.c.bf16 %v1393_v61, %v1392_v60  ;;  %v1485_v15 = vld [vmem:[%s2264_s12 + $0x18] sm:$0xff] }
 0x4a6   : > { %1913 = vrcp.f32 %v1015_v17  ;;  %1743 = vmatmul.mubr.msk.f32.vlgmr.msra.gmra.mrb[4].mxu1 %vm601_vm2, %v687_v16  ;;  %v1854_v16 = vpack.c.bf16 %v1485_v15, %v1484_v14  ;;  %v1486_v17 = vld [vmem:[%s2264_s12 + $0x20] sm:$0xff] }
 0x4a7   : > { %1752 = vmatprep.mubr.msk.f32.mxu1 %vm1932_vm1, %v1933_v13  ;;  %v1912_v19 = vpop.eup %1911 }
 0x4a8   : > { %v852_v20 = vmul.f32 %v1912_v19, %v1904_v4  ;;  %v1668_v4 = vld [vmem:[%s2260_s8] ss:$0 sm:$0xff] }
 0x4a9   : > { %v1180_v18 = vpop.xlane.xlu0 %1179  ;;  %v1019_v21 = vpop.permute.xlu1 %1018 }
 0x4aa   : > { %1915 = vrcp.f32 %v1180_v18  ;;  %v1487_v18 = vld [vmem:[%s2264_s12 + $0x28] sm:$0xff] }
 0x4ab   : > { %v1857_v19 = vpack.c.bf16 %v1487_v18, %v1486_v17 }
 0x4ad   : > { %v854_v22 = vpop.permute.xlu0 %853  ;;  %v1184_v25 = vpop.permute.xlu1 %1183 }
 0x4ae   : > { %1751 = vmatpush3.msra.mxu1 %v854_v22 }
 0x4af   : > { %1753 = vmatmul.mubr.msk.f32.vlgmr.msra.gmra.mrb[6].mxu1 %vm601_vm2, %v852_v20  ;;  %1760 = vmatprep.subr.mxu1 %v1933_v13  ;;  %v1488_v20 = vld [vmem:[%s2264_s12 + $0x30] sm:$0xff] }
 0x4b0   : > { %v1914_v23 = vpop.eup %1913  ;;  %1761 = vmatpush3.msra.mxu1 %v1019_v21  ;;  %1762 = vmatprep.mubr.msk.f32.mxu1 %vm1932_vm1, %v1933_v13  ;;  %v1489_v21 = vld [vmem:[%s2264_s12 + $0x38] sm:$0xff] }
 0x4b1   : > { %v1017_v24 = vmul.f32 %v1914_v23, %v1906_v7  ;;  %1770 = vmatprep.subr.mxu1 %v1933_v13  ;;  %v1860_v22 = vpack.c.bf16 %v1489_v21, %v1488_v20  ;;  %v1490_v23 = vld [vmem:[%s2264_s12 + $0x40] sm:$0xff] }
 0x4b3   : > { %1763 = vmatmul.mubr.msk.f32.vlgmr.msra.gmra.mrb[8].mxu1 %vm601_vm2, %v1017_v24  ;;  %v1491_v24 = vld [vmem:[%s2264_s12 + $0x48] sm:$0xff] }
 0x4b4   : > { %v1916_v26 = vpop.eup %1915  ;;  %1771 = vmatpush3.msra.mxu1 %v1184_v25  ;;  %1772 = vmatprep.mubr.msk.f32.mxu1 %vm1932_vm1, %v1933_v13  ;;  %v1863_v25 = vpack.c.bf16 %v1491_v24, %v1490_v23 }
 0x4b5   : > { %v1182_v27 = vmul.f32 %v1916_v26, %v1908_v9  ;;  %1838 = vmatprep.subr.bf16.mxu1 %v1931_v10  ;;  %v1482_v9 = vld [vmem:[%s2264_s12] sm:$0xff]  ;;  %v1492_v26 = vld [vmem:[%s2264_s12 + $0x50] sm:$0xff] }
 0x4b6   : > { %v1851_v12 = vpack.c.bf16 %v1483_v11, %v1482_v9 }
 0x4b7   : > { %1773 = vmatmul.mubr.msk.f32.vlgmr.msra.gmra.mrb[10].mxu1 %vm601_vm2, %v1182_v27  ;;  %v1493_v27 = vld [vmem:[%s2264_s12 + $0x58] sm:$0xff] }
 0x4b8   : > { %1783 = vmatprep.mubr.msk.f32.mxu1 %vm1932_vm1, %v1933_v13  ;;  %1840 = vmatpush3.bf16.msra.mxu1 %v1839_v30  ;;  %v1866_v28 = vpack.c.bf16 %v1493_v27, %v1492_v26  ;;  %v1495_v30 = vld [vmem:[%s2264_s12 + $0x68] sm:$0xff] }
 0x4b9   : > { %1841 = vmatprep.subr.bf16.mxu1 %v1931_v10  ;;  %1852 = vmatpush3.bf16.msra.mxu0 %v1851_v12 }
 0x4ba   : > { %1853 = vmatprep.subr.bf16.mxu0 %v1931_v10 }
 0x4bc   : > { %1843 = vmatpush3.bf16.msra.mxu1 %v1842_v35  ;;  %v1670_v35 = vld [vmem:[%s2263_s11] ss:$0 sm:$0xff] }
 0x4bd   : > { %1844 = vmatprep.subr.bf16.mxu1 %v1931_v10  ;;  %1855 = vmatpush3.bf16.msra.mxu0 %v1854_v16 }
 0x4be   : > { %1856 = vmatprep.subr.bf16.mxu0 %v1931_v10 }
 0x4c1   : > { %1858 = vmatpush3.bf16.msra.mxu0 %v1857_v19 }
 0x4c2   : > { %1859 = vmatprep.subr.bf16.mxu0 %v1931_v10 }
 0x4c5   : > { %1861 = vmatpush3.bf16.msra.mxu0 %v1860_v22 }
 0x4c6   : > { %1862 = vmatprep.subr.bf16.mxu0 %v1931_v10 }
 0x4c9   : > { %1864 = vmatpush3.bf16.msra.mxu0 %v1863_v25 }
 0x4ca   : > { %1865 = vmatprep.subr.bf16.mxu0 %v1931_v10 }
 0x4cd   : > { %1867 = vmatpush3.bf16.msra.mxu0 %v1866_v28 }
 0x4ce   : > { %1868 = vmatprep.subr.bf16.mxu0 %v1931_v10 }
 0x579   : > { %v760_v31 = vpop.f32.mrb[4].mxu1 }
 0x57a   : > { %v1744_v32 = vpop.f32.mrb[5].mxu1 }
 0x57b   : > { %v1496_v32 = vld [vmem:[%s2264_s12 + $0x70] sm:$0xff] }
 0x57c   : > { %v1872_v34 = vpack.c.bf16 %v1497_v33, %v1496_v32 }
 0x582   : > { %v925_v36 = vpop.f32.mrb[6].mxu1 }
 0x583   : > { %1260 = vrot.lane.b32.xlu0 %v925_v36, %s1945_s27  ;;  %v1754_v37 = vpop.f32.mrb[7].mxu1 }
 0x586   : > { %v1090_v38 = vpop.f32.mrb[8].mxu1 }
 0x587   : > { %1264 = vrot.lane.b32.xlu1 %v1090_v38, %s1946_s28  ;;  %v1764_v39 = vpop.f32.mrb[9].mxu1 }
 0x58a   : > { %v1255_v40 = vpop.f32.mrb[10].mxu1 }
 0x58b   : > { %1268 = vrot.lane.b32.xlu0 %v1255_v40, %s1947_s30  ;;  %v1774_v41 = vpop.f32.mrb[11].mxu1 }
 0x5f5   : > { %v1261_v42 = vpop.permute.xlu0 %1260 }
 0x5f6   : > { %v1271_v44 = vsel %vm601_vm2, %v760_v31, %v1261_v42  ;;  %v1869_v31 = vpack.c.bf16 %v1495_v30, %v1494_v29 }
 0x5f8   : > { %1870 = vmatpush3.bf16.msra.mxu0 %v1869_v31 }
 0x5f9   : > { %v1265_v43 = vpop.permute.xlu1 %1264  ;;  %1871 = vmatprep.subr.bf16.mxu0 %v1931_v10 }
 0x5fa   : > { %v1273_v45 = vsel %vm1272_vm3, %v1271_v44, %v1265_v43  ;;  %v1673_v44 = vld [vmem:[%s2265_s13] ss:$0 sm:$0xff] }
 0x5fc   : > { %1873 = vmatpush3.bf16.msra.mxu0 %v1872_v34 }
 0x5fd   : > { %v1269_v46 = vpop.permute.xlu0 %1268 }
 0x5fe   : > { %v1275_v47 = vsel %vm1274_vm4, %v1273_v45, %v1269_v46 }
 0x5ff   : > { %1784 = vmatmul.mubr.msk.f32.vlgmr.msra.gmra.mrb[12].mxu1 %vm482_vm0, %v1275_v47 }
 0x600   : > { %1794 = vmatprep.mubr.msk.f32.mxu1 %vm1932_vm1, %v1933_v13 }
 0x6d2   : > { %v1356_v49 = vpop.f32.mrb[12].mxu1 }
 0x6d3   : > { %v1357_v50 = vadd.f32 %v1666_v48, %v1356_v49  ;;  %v1785_v51 = vpop.f32.mrb[13].mxu1 }
 0x6d5   : > { %v2156_v52 = vadd.f32 %v1357_v50, %v2037_v0  ;;  %v1391_v0 = vld [vmem:[%s2262_s10 + $0x8] sm:$0xff] }
 0x6d6   : > { %v1845_v59 = vpack.c.bf16 %v1391_v0, %v1390_v58 }
 0x6d7   : > { %v1361_v53 = vsel %vm482_vm0, %v2156_v52, 0.0 }
 0x6d8   : > { %1362 = vadd.xlane.f32.xlu1 %v1361_v53  ;;  %1846 = vmatpush3.bf16.msra.mxu1 %v1845_v59 }
 0x6d9   : > { %1847 = vmatprep.subr.bf16.mxu1 %v1931_v10 }
 0x6dc   : > { %1849 = vmatpush3.bf16.msra.mxu1 %v1848_v62 }
 0x765   : > { %v1363_v54 = vpop.xlane.xlu1 %1362 }
 0x766   : > { %v1364_v55 = vmul.f32 0.03125, %v1363_v54 }
 0x768   : > { %v1365_v56 = vsub.f32 %v2156_v52, %v1364_v55 }
 0x76a   : > { %v1366_v57 = vmul.f32 %v1365_v56, %v1365_v56 }
 0x76c   : > { %v1367_v13 = vsel %vm482_vm0, %v1366_v57, 0.0 }
 0x76d   : > { %1368 = vadd.xlane.f32.xlu0 %v1367_v13 }
 0x7fa   : > { %v1369_v63 = vpop.xlane.xlu0 %1368 }
 0x7fb   : > { %v1370_v1 = vmul.f32 0.03125, %v1369_v63 }
 0x7fd   : > { %v1371_v2 = vadd.f32 1e-05, %v1370_v1 }
 0x7ff   : > { %1917 = vrsqrt.f32 %v1371_v2 }
 0x809   : > { %v1918_v3 = vpop.eup %1917 }
 0x80a   : > { %v1373_v5 = vmul.f32 %v1918_v3, %v1365_v56 }
 0x80c   : > { %v1381_v7 = vmul.f32 %v1668_v4, %v1373_v5 }
 0x80e   : > { %v1389_v8 = vadd.f32 %v1669_v6, %v1381_v7 }
 0x810   : > { %1795 = vmatmul.mubr.msk.f32.vlgmr.msra.gmra.mrb[14].mxu1 %vm482_vm0, %v1389_v8 }
 0x8e3   : > { %v1470_v36 = vpop.f32.mrb[14].mxu1 }
 0x8e4   : > { %v1471_v37 = vadd.f32 %v1670_v35, %v1470_v36  ;;  %v1796_v38 = vpop.f32.mrb[15].mxu1 }
 0x8e6   : > { %v1672_v39 = vmul.f32 -1.702, %v1471_v37 }
 0x8e8   : > { %v1476_v10 = vmul.f32 1.442695, %v1672_v39 }
 0x8ea   : > { %1919 = vpow2.f32 %v1476_v10 }
 0x8f4   : > { %v1920_v40 = vpop.eup %1919 }
 0x8f5   : > { %v1478_v41 = vadd.f32 1.0, %v1920_v40 }
 0x8f7   : > { %1921 = vrcp.f32 %v1478_v41 }
 0x901   : > { %v1922_v42 = vpop.eup %1921 }
 0x902   : > { %v1481_v43 = vmul.f32 %v1922_v42, %v1471_v37 }
 0x904   : > { %1830 = vmatmul.mubr.f32.vlgmr.msra.gmra.mrb[6].mxu0 %v1481_v43 }
 0x9d7   : > { %v1571_v45 = vpop.f32.mrb[6].mxu0 }
 0x9d8   : > { %v1572_v46 = vadd.f32 %v1673_v44, %v1571_v45  ;;  %v1831_v47 = vpop.f32.mrb[7].mxu0 }
 0x9da   : > { %v1575_v48 = vadd.f32 %v1572_v46, %v2156_v52 }
 0x9dc   : > { %1576 = vst.msk [vmem:[%s479_s26] sm:$0xff] %vm482_vm0, %v1575_v48 }
 0x9dd PF: > { %s24_s29 = sadd.s32 1, %s1929_s29  }
 0x9de   : > { %p21_p4 = scmp.ge.s32.totalorder %s24_s29, 6  }
 0x9e0   :  { %23 = sbr.rel (!%p21_p4) target bundleno = 1 (0x1), region = 109 }

// kernel: forward.13
= control target key start
LH: loop header
LB: loop body
LE: loop exit
PB: predicated region body
PF: predicated region fallthrough
CT: control target
= control target key end

     0   :  { %s2101_s0 = inlined_call_operand.vmem [shape: f32[2,5,32], index: 0, kind: input, shape index: {}]   ;;  %s2102_s1 = inlined_call_operand.vmem [shape: f32[2,2,16], index: 1, kind: input, shape index: {}]   ;;  %s2103_s2 = inlined_call_operand.vmem [shape: f32[2,1,2], index: 2, kind: input, shape index: {}]   ;;  %s2104_s3 = inlined_call_operand.vmem [shape: f32[1,32], index: 3, kind: input, shape index: {}]   ;;  %s2105_s4 = inlined_call_operand.vmem [shape: f32[1,32], index: 4, kind: input, shape index: {}]   ;;  %s2106_s5 = inlined_call_operand.vmem [shape: f32[1,32], index: 5, kind: input, shape index: {}]   ;;  %s2107_s6 = inlined_call_operand.vmem [shape: f32[1,32], index: 6, kind: input, shape index: {}]   ;;  %s2108_s7 = inlined_call_operand.vmem [shape: f32[32,51], index: 7, kind: input, shape index: {}]   ;;  %s2109_s8 = inlined_call_operand.vmem [shape: f32[1,51], index: 8, kind: input, shape index: {}]   ;;  %s2110_s9 = inlined_call_operand.vmem [shape: f32[32,32], index: 9, kind: input, shape index: {}]   ;;  %s2111_s10 = inlined_call_operand.vmem [shape: f32[1,32], index: 10, kind: input, shape index: {}]   ;;  %s2112_s11 = inlined_call_operand.vmem [shape: f32[32,4], index: 11, kind: input, shape index: {}]   ;;  %s2113_s12 = inlined_call_operand.vmem [shape: f32[1,4], index: 12, kind: input, shape index: {}]   ;;  %s2114_s13 = inlined_call_operand.vmem [shape: f32[4,4], index: 13, kind: input, shape index: {}]   ;;  %s2115_s14 = inlined_call_operand.vmem [shape: f32[2,4,2], index: 14, kind: output, shape index: {0}]   ;;  %s2116_s15 = inlined_call_operand.vmem [shape: f32[2,4,1], index: 15, kind: output, shape index: {1}]   ;;  %s2117_s16 = inlined_call_operand.hbm [shape: f32[2,4,4], index: 16, kind: output, shape index: {2}]   ;;  %s2118_s17 = inlined_call_operand.hbm [shape: f32[2,4,32], index: 17, kind: output, shape index: {3}]   ;;  %s2119_s18 = inlined_call_operand.hbm [shape: f32[2,4,16], index: 18, kind: output, shape index: {4}]  }
   0x1   :  { %2124 = sst [smem:[#allocation10_spill]] %s2101_s0 }
   0x2   :  { %2125 = sst [smem:[#allocation11_spill]] %s2102_s1 }
   0x3   :  { %2126 = sst [smem:[#allocation12_spill]] %s2103_s2 }
   0x4   :  { %2127 = sst [smem:[#allocation13_spill]] %s2104_s3 }
   0x5   :  { %2128 = sst [smem:[#allocation14_spill]] %s2105_s4 }
   0x6   :  { %2129 = sst [smem:[#allocation15_spill]] %s2106_s5 }
   0x7   :  { %2130 = sst [smem:[#allocation16_spill]] %s2107_s6 }
   0x8   :  { %2131 = sst [smem:[#allocation17_spill]] %s2108_s7 }
   0x9   :  { %2132 = sst [smem:[#allocation18_spill]] %s2109_s8 }
   0xa   :  { %2133 = sst [smem:[#allocation19_spill]] %s2110_s9 }
   0xb   :  { %24 = vsyncpa [#allocation3], 0 }
   0xc   :  { %26 = vsyncpa [#allocation3 + $0x1], 0 }
   0xd   :  { %27 = vsyncpa [#allocation5], 0 }
   0xe   :  { %29 = vsyncpa [#allocation5 + $0x1], 0  ;;  %s1802_s27 = smov 0   ;;  %s1804_s28 = smov 0  }
   0xf   :  { %s1806_s29 = smov 0   ;;  %s1808_s30 = smov 0  }
  0x10 LB: > { %s1823_s0 = sadd.s32 4294967295, %s1694_s30   ;;  %s2120_s19 = sadd.s32 4294967294, %s1694_s30   ;;  %s1694_s30 = sphi %s1808_s30, %s2155_s30   ;;  %s1690_s29 = sphi %s1806_s29, %s2154_s29   ;;  %s1686_s28 = sphi %s1804_s28, %s2153_s28   ;;  %s1682_s27 = sphi %s1802_s27, %s2152_s27  }
  0x11   : > { %s1827_s1 = sadd.s32 1, %s1694_s30   ;;  %s403_s20 = sadd.s32 1, %s1690_s29 }
  0x12   : > { %s400_s21 = ssub.s32 %s1694_s30, %s1827_s1  ;;  %p413_p0 = scmp.ne.s32.totalorder %s1690_s29, %s1686_s28 }
  0x13   : > { %p401_p1 = scmp.eq.s32.totalorder %s400_s21, 0  ;;  %p414_p2 = scmp.eq.s32.totalorder %s1823_s0, 1 }
  0x14   : > { %p419_p3 = scmp.ne.s32.totalorder %s1686_s28, %s1682_s27  ;;  %p420_p4 = scmp.eq.s32.totalorder %s2120_s19, 1 }
  0x15   : > { %s1840_s22 = scalar_select %p401_p1, %s1690_s29, %s403_s20  }
  0x16   : > { %p1842_p5 = por %p414_p2, %p413_p0  ;;  %p1846_p6 = por %p420_p4, %p419_p3 }
  0x17   : > { %2134 = sst [smem:[#allocation9_spill]] %s1840_s22  ;;  %p1389_p7 = scmp.ge.s32.totalorder %s1694_s30, 1 }
  0x18   : > { %p543_p8 = scmp.lt.s32.totalorder %s1694_s30, 3 }
  0x1a   : > { %p544_p9 = pnand %p1389_p7, %p543_p8 }
  0x1b   : > { %p621_p10 = scmp.lt.s32.totalorder (!%p544_p9), %s1823_s0, 1  ;;  %vm641_vm0 = vcmask (!%p544_p9), 258048   ;;  %s2137_s21 = sld [smem:[#allocation10_spill]] (!%p544_p9)  ;;  %v672_v10 = vlaneseq (!%p544_p9)  ;;  %vm677_vm1 = vcmask (!%p544_p9), 258049   ;;  %v1696_v30 = vmov (!%p544_p9), 0.0|0.0  }
  0x1c   : > { %547 = sbr.rel (%p544_p9) target bundleno = 1525 (0x5f5), region = 76  ;;  %s2138_s3 = sld [smem:[#allocation13_spill]] (!%p544_p9)  ;;  %1473 = vmatprep.subr.bf16.mxu0 (!%p544_p9), %v1696_v30  ;;  %1479 = vmatprep.subr.bf16.mxu1 (!%p544_p9), %v1696_v30  ;;  %vm1697_vm2 = vmmov (!%p544_p9), 0   ;;  %v1698_v34 = vmov (!%p544_p9), 0.0   ;;  %vm720_vm3 = vcmask (!%p544_p9), 261120   ;;  %vm1011_vm4 = vcmask (!%p544_p9), 123904  }
  0x1d   : > { %v1860_v11 = vshrl.u32 (!%p544_p9), %v672_v10, 7  ;;  %s2139_s4 = sld [smem:[#allocation14_spill]] (!%p544_p9)  ;;  %s2140_s7 = sld [smem:[#allocation17_spill]] (!%p544_p9)  ;;  %1443 = vmatprep.mubr.msk.f32.mxu0 (!%p544_p9), %vm1697_vm2, %v1698_v34  ;;  %1454 = vmatprep.mubr.msk.f32.mxu1 (!%p544_p9), %vm1697_vm2, %v1698_v34  ;;  %v1699_v48 = vmov (!%p544_p9), 16   ;;  %v1700_v49 = vmov (!%p544_p9), 17   ;;  %vm996_vm5 = vcmask (!%p544_p9), 125952  }
  0x1e   : > { %s2141_s5 = sld [smem:[#allocation15_spill]] (!%p544_p9)  ;;  %s2142_s6 = sld [smem:[#allocation16_spill]] (!%p544_p9)  ;;  %1548 = vset.pattern.permute.xlu1 (!%p544_p9), %v1699_v48  ;;  %1549 = vset.pattern.permute.xlu0 (!%p544_p9), %v1700_v49  ;;  %vm1030_vm9 = vcmask (!%p544_p9), 130048   ;;  %vm1127_vm10 = vcmask (!%p544_p9), 3072   ;;  %vm1122_vm15 = vcmask (!%p544_p9), 11264  }
  0x1f   : > { %v674_v17 = vsub.s32 (!%p544_p9), 0, %v1860_v11  ;;  %s2144_s9 = sld [smem:[#allocation19_spill]] (!%p544_p9)  ;;  %s2145_s8 = sld [smem:[#allocation18_spill]] (!%p544_p9) }
  0x22   : > { %v1397_v13 = vld [vmem:[%s2138_s3] ss:$0 sm:$0xff] (!%p544_p9)  ;;  %s2121_s3 = sand.u32 (!%p544_p9), 1, %s1686_s28  }
  0x23   : > { %s1854_s24 = scalar_select %p621_p10, %s1823_s0, 1  ;;  %v1398_v15 = vld [vmem:[%s2139_s4] ss:$0 sm:$0xff]  ;;  %v708_v28 = vld [vmem:[%s2140_s7 + $0x8] sm:$0xff]  ;;  %v709_v31 = vld [vmem:[%s2140_s7 + $0x10] sm:$0xff] }
  0x24   : > { %v707_v27 = vld [vmem:[%s2140_s7] sm:$0xff]  ;;  %v710_v32 = vld [vmem:[%s2140_s7 + $0x18] sm:$0xff]  ;;  %s1899_s20 = sshll.u32 %s2121_s3, 2  ;;  %s2146_s4 = sld [smem:[#allocation12_spill]] }
  0x25   : > { %s1393_s25 = sshll.u32 %s1854_s24, 3  ;;  %v1474_v29 = vpack.c.bf16 %v708_v28, %v707_v27  ;;  %v1477_v33 = vpack.c.bf16 %v710_v32, %v709_v31  ;;  %v1399_v39 = vld [vmem:[%s2141_s5] ss:$0 sm:$0xff]  ;;  %v809_v51 = vld [vmem:[%s2144_s9 + $0x8] sm:$0xff]  ;;  %v810_v52 = vld [vmem:[%s2144_s9 + $0x10] sm:$0xff]  ;;  %s2123_s3 = scalar_lea.vmem [#allocation6], %s1899_s20 }
  0x26   : > { %s624_s19 = scalar_lea.vmem %s2137_s21, %s1393_s25  ;;  %v1400_v41 = vld [vmem:[%s2142_s6] ss:$0 sm:$0xff]  ;;  %s1394_s25 = sshll.u32 %s1854_s24, 1  ;;  %v811_v54 = vld [vmem:[%s2144_s9 + $0x18] sm:$0xff] }
  0x27   : > { %v640_v0 = vld [vmem:[%s624_s19] sm:$0x1f]  ;;  %1475 = vmatpush3.bf16.msra.mxu0 %v1474_v29  ;;  %s2122_s19 = scalar_lea.vmem [#allocation4], %s1899_s20  ;;  %s2143_s21 = sld [smem:[#allocation11_spill]]  ;;  %v1483_v55 = vpack.c.bf16 %v811_v54, %v810_v52  ;;  %v1703_v54 = vmov 0  }
  0x28   : > { %v642_v1 = vsel %vm641_vm0, %v640_v0, 0.0  ;;  %1476 = vmatprep.subr.bf16.mxu0 %v1696_v30  ;;  %v808_v50 = vld [vmem:[%s2144_s9] sm:$0xff]  ;;  %s1146_s6 = sand.u32 1, %s1823_s0   ;;  %s2147_s7 = scalar_lea.vmem [#allocation4], %s1899_s20 }
  0x29   : > { %643 = vadd.xlane.f32.xlu0 %v642_v1  ;;  %v1480_v53 = vpack.c.bf16 %v809_v51, %v808_v50  ;;  %v1401_v56 = vld [vmem:[%s2145_s8] ss:$0 sm:$0xff]  ;;  %s1184_s8 = sshll.u32 %s2147_s7, 4  ;;  %s1185_s8 = int_to_ptr.vmem [resolvable:$true] %s1184_s8 }
  0x2a   : > { %s1572_s22 = scalar_lea.vmem %s1185_s8, 64 }
  0x2b   : > { %1478 = vmatpush3.bf16.msra.mxu0 %v1477_v33  ;;  %1481 = vmatpush3.bf16.msra.mxu1 %v1480_v53  ;;  %p1573_p11 = scmp.ne.s32.totalorder %s1185_s8, %s1572_s22 }
  0x2c   : > { %1485 = vmatprep.subr.bf16.mxu0 %v1696_v30  ;;  %1482 = vmatprep.subr.bf16.mxu1 %v1696_v30 }
  0x2d   : > { %s628_s26 = scalar_lea.vmem %s2143_s21, %s1394_s25  ;;  %s1395_s25 = sshll.u32 %s1854_s24, 2 }
  0x2e   : > { %v1915_v45 = vld [vmem:[%s628_s26] sm:$0x3]  ;;  %s1702_s26 = smov 109   ;;  %s639_s21 = scalar_lea.vmem %s2116_s15, %s1395_s25 }
  0x2f   : > { %v1010_v46 = vmul.f32 %v1915_v45, %v1915_v45  ;;  %1484 = vmatpush3.bf16.msra.mxu1 %v1483_v55  ;;  %s635_s5 = scalar_lea.vmem %s2115_s14, %s1395_s25  ;;  %p1574_p12 = pnand %p1573_p11, %p1842_p5 }
  0x30   : > { %1468 = vmatprep.subr.mxu1 %v1698_v34  ;;  %s1704_s25 = smov [#allocation4]  }
  0x31   : > { %v1012_v47 = vsel %vm1011_vm4, %v1010_v46, 0.0  ;;  %p1575_p13 = pneg %p1574_p12 }
  0xb6   : > { %v644_v2 = vpop.xlane.xlu0 %643 }
  0xb7   : > { %v646_v3 = vmul.f32 0.03125, %v644_v2 }
  0xb9   : > { %v647_v4 = vsub.f32 %v640_v0, %v646_v3 }
  0xbb   : > { %v648_v5 = vmul.f32 %v647_v4, %v647_v4 }
  0xbd   : > { %v649_v6 = vsel %vm641_vm0, %v648_v5, 0.0 }
  0xbe   : > { %650 = vadd.xlane.f32.xlu0 %v649_v6 }
 0x14b   : > { %v651_v7 = vpop.xlane.xlu0 %650 }
 0x14c   : > { %v652_v8 = vmul.f32 0.03125, %v651_v7 }
 0x14e   : > { %v653_v9 = vadd.f32 1e-05, %v652_v8 }
 0x150   : > { %1550 = vrsqrt.f32 %v653_v9 }
 0x15a   : > { %v1551_v12 = vpop.eup %1550 }
 0x15b   : > { %v655_v14 = vmul.f32 %v1551_v12, %v647_v4 }
 0x15d   : > { %v663_v16 = vmul.f32 %v1397_v13, %v655_v14 }
 0x15f   : > { %v671_v18 = vadd.f32 %v1398_v15, %v663_v16 }
 0x161   : > { %v675_v19 = vrot.slane %v671_v18, %v674_v17 }
 0x163   : > { %v676_v20 = vmul.f32 %v675_v19, %v671_v18 }
 0x165   : > { %v678_v21 = vsel %vm677_vm1, %v676_v20, 0.0 }
 0x166   : > { %679 = vadd.xlane.f32.xlu1 %v678_v21 }
 0x1f3   : > { %v680_v22 = vpop.xlane.xlu1 %679 }
 0x1f4   : > { %v681_v23 = vmul.f32 0.03125, %v680_v22 }
 0x1f6   : > { %v682_v24 = vsub.f32 %v676_v20, %v681_v23 }
 0x1f8   : > { %v683_v25 = vmul.f32 %v682_v24, %v682_v24 }
 0x1fa   : > { %v684_v26 = vsel %vm677_vm1, %v683_v25, 0.0 }
 0x1fb   : > { %685 = vadd.xlane.f32.xlu1 %v684_v26 }
 0x1ff   : > { %1013 = vadd.xlane.f32.xlu1 %v1012_v47 }
 0x288   : > { %v686_v35 = vpop.xlane.xlu1 %685 }
 0x289   : > { %v687_v36 = vmul.f32 0.03125, %v686_v35  ;;  %v903_v35 = vld [vmem:[%s2112_s11] sm:$0xff] }
 0x28b   : > { %v688_v37 = vadd.f32 1e-05, %v687_v36  ;;  %v904_v36 = vld [vmem:[%s2112_s11 + $0x8] sm:$0xff] }
 0x28c   : > { %v1014_v12 = vpop.xlane.xlu1 %1013 }
 0x28d   : > { %1552 = vrsqrt.f32 %v688_v37  ;;  %vm1017_vm7 = vcmp.eq.f32.partialorder %v1014_v12, inf  ;;  %v1020_v15 = vand.u32 2147483648, %v1014_v12  ;;  %vm1019_vm8 = vcmp.eq.f32.partialorder %v1014_v12, 0.0 }
 0x28e   : > { %v1486_v37 = vpack.c.bf16 %v904_v36, %v903_v35 }
 0x297   : > { %v1553_v38 = vpop.eup %1552 }
 0x298   : > { %v690_v40 = vmul.f32 %v1553_v38, %v682_v24  ;;  %v905_v38 = vld [vmem:[%s2112_s11 + $0x10] sm:$0xff] }
 0x29a   : > { %v698_v42 = vmul.f32 %v1399_v39, %v690_v40  ;;  %v906_v39 = vld [vmem:[%s2112_s11 + $0x18] sm:$0xff] }
 0x29b   : > { %v1489_v40 = vpack.c.bf16 %v906_v39, %v905_v38 }
 0x29c   : > { %v706_v43 = vadd.f32 %v1400_v41, %v698_v42  ;;  %v1403_v41 = vld [vmem:[%s2111_s10] ss:$0 sm:$0xff] }
 0x29e   : > { %v719_v44 = vrot.slane %v706_v43, 1  ;;  %1131 = vst.msk [vmem:[%s2122_s19 - $0x1] sm:$0x1e] %vm677_vm1, %v706_v43  ;;  %s1701_s19 = smov 110  }
 0x2a0   : > { %1444 = vmatmul.mubr.msk.f32.vlgmr.msra.gmra.mrb[0].mxu0 %vm720_vm3, %v719_v44 }
 0x2a1   : > { %1465 = vmatprep.mubr.msk.f32.mxu0 %vm1697_vm2, %v1698_v34  ;;  %1487 = vmatpush3.bf16.msra.mxu0 %v1486_v37 }
 0x2a2   : > { %1488 = vmatprep.subr.bf16.mxu0 %v1696_v30 }
 0x2a5   : > { %1490 = vmatpush3.bf16.msra.mxu0 %v1489_v40 }
 0x373   : > { %v789_v57 = vpop.f32.mrb[0].mxu0 }
 0x374   : > { %v1936_v58 = vadd.f32 %v1401_v56, %v789_v57  ;;  %v1445_v59 = vpop.f32.mrb[1].mxu0 }
 0x376   : > { %v799_v60 = vmul.f32 %v1936_v58, %v1936_v58  ;;  %1132 = vst.msk [vmem:[%s2123_s3] sm:$0xf] %vm996_vm5, %v1936_v58  ;;  %v795_v2 = vmin.f32 %v1936_v58, 0.0  ;;  %v794_v9 = vadd.f32 1.0, %v1936_v58  ;;  %vm793_vm6 = vcmp.gt.f32.partialorder %v1936_v58, 0.0  ;;  %s631_s3 = scalar_lea.vmem %s2146_s4, %s1854_s24  ;;  %s2005_s24 = scalar_lea.sflag [#allocation5], %s1146_s6 }
 0x377   : > { %v1113_v49 = vld [vmem:[%s631_s3] sm:$0x1] }
 0x378   : > { %v997_v61 = vsel %vm996_vm5, %v799_v60, 0.0  ;;  %v800_v62 = vmul.f32 %v799_v60, %v1936_v58  ;;  %v796_v3 = vmul.f32 1.442695, %v795_v2  ;;  %vm1114_vm13 = vcmp.eq.f32.partialorder %v1113_v49, 0.0 }
 0x379   : > { %998 = vadd.xlane.f32.xlu1 %v997_v61  ;;  %v1115_v55 = vsel %vm1114_vm13, 1, %v1703_v54 }
 0x37a   : > { %v801_v63 = vmul.f32 0.044715, %v800_v62  ;;  %v1119_v56 = vrot.slane %v1115_v55, %v674_v17 }
 0x37c   : > { %v802_v0 = vadd.f32 %v801_v63, %v1936_v58  ;;  %vm1120_vm14 = vcmp.eq.s32.totalorder %v1119_v56, 1 }
 0x37e   : > { %v803_v1 = vmul.f32 0.7978846, %v802_v0 }
 0x380   : > { %1554 = vtanh.f32 %v803_v1 }
 0x381   : > { %1556 = vpow2.f32 %v796_v3 }
 0x382   : > { %1558 = vrsqrt.f32 %v1014_v12 }
 0x38a   : > { %v1555_v4 = vpop.eup %1554  ;;  %1027 = vperm.xlu1 %1548, %v1936_v58  }
 0x38b   : > { %v805_v5 = vadd.f32 1.0, %v1555_v4  ;;  %v1557_v8 = vpop.eup %1556 }
 0x38c   : > { %v798_v10 = vsel %vm793_vm6, %v794_v9, %v1557_v8  ;;  %v1559_v13 = vpop.eup %1558 }
 0x38d   : > { %v806_v6 = vmul.f32 0.5, %v805_v5  ;;  %v1016_v14 = vmul.f32 %v1559_v13, %v1014_v12 }
 0x38e   : > { %1124 = vrot.lane.b32.xlu1 %v1936_v58, %s1701_s19  ;;  %s1995_s19 = sshll.u32 %s1823_s0, 6 }
 0x38f   : > { %v807_v7 = vmul.f32 %v806_v6, %v1936_v58  ;;  %v1018_v16 = vsel %vm1017_vm7, %v1014_v12, %v1016_v14  ;;  %s2001_s3 = scalar_lea.hbm %s2118_s17, %s1995_s19 }
 0x390   : > { %v1021_v18 = vsel %vm1019_vm8, %v1020_v15, %v1018_v16 }
 0x391   : > { %820 = vrot.lane.b32.xlu0 %v807_v7, %s1702_s26  ;;  %v1022_v19 = vadd.f32 1e-06, %v1021_v18 }
 0x393   : > { %1560 = vrcp.f32 %v1022_v19 }
 0x395   : > { %1109 = vperm.xlu0 %1549, %v798_v10  }
 0x39d   : > { %v1561_v20 = vpop.eup %1560 }
 0x39e   : > { %v1024_v21 = vmul.f32 %v1561_v20, %v1915_v45 }
 0x403   : > { %v821_v22 = vpop.permute.xlu0 %820 }
 0x404   : > { %1455 = vmatmul.mubr.msk.f32.vlgmr.msra.gmra.mrb[0].mxu1 %vm720_vm3, %v821_v22 }
 0x405   : > { %1469 = vmatpush3.xpose.msk.msra.mxu1 %vm1030_vm9, %v1024_v21  ;;  %1470 = vmatprep.mubr.msk.f32.mxu1 %vm1697_vm2, %v1698_v34 }
 0x406   : > { %v999_v23 = vpop.xlane.xlu1 %998 }
 0x407   : > { %1562 = vrsqrt.f32 %v999_v23  ;;  %vm1002_vm11 = vcmp.eq.f32.partialorder %v999_v23, inf  ;;  %v1005_v28 = vand.u32 2147483648, %v999_v23  ;;  %vm1004_vm12 = vcmp.eq.f32.partialorder %v999_v23, 0.0 }
 0x40a   : > { %v1028_v24 = vpop.permute.xlu1 %1027 }
 0x40e   : > { %v1125_v25 = vpop.permute.xlu1 %1124 }
 0x40f   : > { %1128 = vst.msk [vmem:[%s639_s21] sm:$0xf] %vm1127_vm10, %v1125_v25  ;;  %s1576_s21 = sshll.u32 %s1704_s25, 4  ;;  %s1577_s21 = int_to_ptr.vmem [resolvable:$false] %s1576_s21 }
 0x410   : > { %s1578_s0 = scalar_lea.vmem %s1577_s21, 128  ;;  %p1579_p0 = scmp.lt.s32.totalorder %s1185_s8, %s1577_s21 }
 0x411   : > { %v1563_v26 = vpop.eup %1562  ;;  %p1580_p1 = scmp.lt.s32.totalorder %s1578_s0, %s1572_s22 }
 0x412   : > { %v1001_v27 = vmul.f32 %v1563_v26, %v999_v23 }
 0x413   : > { %p1581_p2 = por %p1580_p1, %p1579_p0 }
 0x414   : > { %v1003_v29 = vsel %vm1002_vm11, %v999_v23, %v1001_v27  ;;  %v1110_v60 = vpop.permute.xlu0 %1109 }
 0x415   : > { %v1006_v31 = vsel %vm1004_vm12, %v1005_v28, %v1003_v29  ;;  %p1582_p3 = pnand %p1581_p2, %p1575_p13 }
 0x416   : > { %v1007_v32 = vadd.f32 1e-06, %v1006_v31 }
 0x418   : > { %1564 = vrcp.f32 %v1007_v32 }
 0x422   : > { %v1565_v33 = vpop.eup %1564 }
 0x423   : > { %v1009_v34 = vmul.f32 %v1565_v33, %v1936_v58 }
 0x425   : > { %1471 = vmatmul.mubr.msk.f32.vlgmr.msra.gmra.mrb[2].mxu1 %vm1030_vm9, %v1009_v34 }
 0x4d7   : > { %v890_v42 = vpop.f32.mrb[0].mxu1 }
 0x4d8   : > { %v891_v43 = vadd.f32 %v1403_v41, %v890_v42  ;;  %v1456_v44 = vpop.f32.mrb[1].mxu1 }
 0x4da   : > { %v894_v45 = vmul.f32 %v891_v43, %v891_v43 }
 0x4dc   : > { %v895_v46 = vmul.f32 %v894_v45, %v891_v43 }
 0x4de   : > { %v896_v30 = vmul.f32 0.044715, %v895_v46 }
 0x4e0   : > { %v897_v47 = vadd.f32 %v896_v30, %v891_v43 }
 0x4e2   : > { %v898_v48 = vmul.f32 0.7978846, %v897_v47 }
 0x4e4   : > { %1566 = vtanh.f32 %v898_v48 }
 0x4ee   : > { %v1567_v50 = vpop.eup %1566 }
 0x4ef   : > { %v900_v51 = vadd.f32 1.0, %v1567_v50 }
 0x4f1   : > { %v901_v52 = vmul.f32 0.5, %v900_v51 }
 0x4f3   : > { %v902_v53 = vmul.f32 %v901_v52, %v891_v43 }
 0x4f5   : > { %1466 = vmatmul.mubr.msk.f32.vlgmr.msra.gmra.mrb[2].mxu0 %vm720_vm3, %v902_v53 }
 0x4f8   : > { %v1103_v57 = vpop.f32.mrb[2].mxu1 }
 0x4f9   : > { %v1104_v58 = vadd.f32 %v1103_v57, %v1028_v24  ;;  %v1472_v59 = vpop.f32.mrb[3].mxu1 }
 0x4fb   : > { %v1112_v61 = vmul.f32 %v1110_v60, %v1104_v58 }
 0x4fd   : > { %v1121_v62 = vsel %vm1120_vm14, -1000000.0, %v1112_v61 }
 0x4fe   : > { %1123 = vst.msk [vmem:[%s635_s5] sm:$0xf] %vm1122_vm15, %v1121_v62 }
 0x4ff   : > { %1585 = shalt.err (!%p1582_p3)
}
 0x500   : > { %s1586_s7 = scalar_lea.hbm %s2001_s3, 64  ;;  %s1590_s26 = scalar_lea.hbm %s2118_s17, 128 }
 0x501   : > { %p1587_p4 = scmp.ne.s32.totalorder %s2001_s3, %s1586_s7  ;;  %p1591_p9 = scmp.lt.u32.totalorder %s2001_s3, %s2118_s17 }
 0x502   : > { %p1592_p10 = scmp.lt.u32.totalorder %s1590_s26, %s1586_s7  ;;  %p1594_p12 = scmp.lt.u32.totalorder %s1586_s7, %s2001_s3 }
 0x503   : > { %p1588_p7 = pnand %p1587_p4, %p1842_p5 }
 0x504   : > { %p1593_p11 = por %p1592_p10, %p1591_p9 }
 0x505   : > { %p1589_p8 = pneg %p1588_p7 }
 0x506   : > { %p1595_p13 = por %p1594_p12, %p1593_p11 }
 0x508   : > { %p1596_p0 = pnand %p1595_p13, %p1589_p8 }
 0x50a   : > { %1599 = shalt.err (!%p1596_p0)
}
 0x50b   : > { %1492 = dma.vmem_to_hbm [thread:$0]  (%p1842_p5), %s1185_s8, 64, %s2001_s3, %s2005_s24  }
 0x50c   : > { %s2148_s22 = scalar_lea.vmem [#allocation6], %s1899_s20  ;;  %s1195_s6 = scalar_lea.hbm %s2119_s18, %s1995_s19 }
 0x50d   : > { %s1197_s21 = sshll.u32 %s2148_s22, 4  ;;  %s1705_s7 = smov [#allocation6]   ;;  %s1198_s21 = int_to_ptr.vmem [resolvable:$true] %s1197_s21 }
 0x50e   : > { %s1600_s26 = scalar_lea.vmem %s1198_s21, 64  ;;  %s1604_s4 = sshll.u32 %s1705_s7, 4  ;;  %s1605_s4 = int_to_ptr.vmem [resolvable:$false] %s1604_s4 }
 0x50f   : > { %p1601_p1 = scmp.ne.s32.totalorder %s1198_s21, %s1600_s26  ;;  %s1606_s25 = scalar_lea.vmem %s1605_s4, 128 }
 0x510   : > { %p1607_p4 = scmp.lt.s32.totalorder %s1198_s21, %s1605_s4  ;;  %p1608_p7 = scmp.lt.s32.totalorder %s1606_s25, %s1600_s26 }
 0x511   : > { %p1602_p2 = pnand %p1601_p1, %p1842_p5 }
 0x512   : > { %p1609_p8 = por %p1608_p7, %p1607_p4 }
 0x513   : > { %p1603_p3 = pneg %p1602_p2 }
 0x515   : > { %p1610_p9 = pnand %p1609_p8, %p1603_p3 }
 0x517   : > { %1613 = shalt.err (!%p1610_p9)
}
 0x518   : > { %s1614_s8 = scalar_lea.hbm %s1195_s6, 64  ;;  %s1618_s0 = scalar_lea.hbm %s2119_s18, 128 }
 0x519   : > { %p1615_p10 = scmp.ne.s32.totalorder %s1195_s6, %s1614_s8  ;;  %p1619_p13 = scmp.lt.u32.totalorder %s1195_s6, %s2119_s18 }
 0x51a   : > { %p1620_p0 = scmp.lt.u32.totalorder %s1618_s0, %s1614_s8  ;;  %p1622_p2 = scmp.lt.u32.totalorder %s1614_s8, %s1195_s6 }
 0x51b   : > { %p1616_p11 = pnand %p1615_p10, %p1842_p5 }
 0x51c   : > { %p1621_p1 = por %p1620_p0, %p1619_p13 }
 0x51d   : > { %p1617_p12 = pneg %p1616_p11 }
 0x51e   : > { %p1623_p4 = por %p1622_p2, %p1621_p1 }
 0x520   : > { %p1624_p3 = pnand %p1623_p4, %p1617_p12 }
 0x522   : > { %1627 = shalt.err (!%p1624_p3)
}
 0x523   : > { %1493 = dma.vmem_to_hbm [thread:$0]  (%p1842_p5), %s1198_s21, 64, %s1195_s6, %s2005_s24   ;;  %v1405_v11 = vld [vmem:[%s2113_s12] ss:$0 sm:$0xff]  ;;  %vm1129_vm0 = vcmask 27648  }
 0x524   : > { %v987_v63 = vld [vmem:[%s2114_s13] sm:$0xf]  ;;  %s606_s24 = scalar_lea.vmem [#allocation2], %s1899_s20  ;;  %s2055_s8 = scalar_lea.hbm %s2117_s16, %s1995_s19 }
 0x525   : > { %s1171_s21 = sshll.u32 %s606_s24, 4  ;;  %s2149_s3 = sand.u32 1, %s1686_s28   ;;  %s2057_s21 = int_to_ptr.vmem [resolvable:$true] %s1171_s21 }
 0x526   : > { %s1142_s22 = scalar_lea.sflag [#allocation3], %s2149_s3  ;;  %s1628_s0 = scalar_lea.vmem %s2057_s21, 64 }
 0x527   : > { %p1629_p7 = scmp.ne.s32.totalorder %s2057_s21, %s1628_s0  ;;  %s1706_s20 = smov [#allocation2]  }
 0x528   : > { %s1632_s5 = sshll.u32 %s1706_s20, 4  ;;  %s1633_s5 = int_to_ptr.vmem [resolvable:$false] %s1632_s5 }
 0x529   : > { %p1630_p8 = pnand %p1629_p7, %p1842_p5  ;;  %s1634_s26 = scalar_lea.vmem %s1633_s5, 128 }
 0x52a   : > { %p1635_p10 = scmp.lt.s32.totalorder %s2057_s21, %s1633_s5  ;;  %p1636_p11 = scmp.lt.s32.totalorder %s1634_s26, %s1628_s0 }
 0x52b   : > { %p1631_p9 = pneg %p1630_p8 }
 0x52c   : > { %p1637_p12 = por %p1636_p11, %p1635_p10 }
 0x52e   : > { %p1638_p13 = pnand %p1637_p12, %p1631_p9 }
 0x5c8   : > { %v983_v17 = vpop.f32.mrb[2].mxu0 }
 0x5c9   : > { %v984_v0 = vadd.f32 %v1405_v11, %v983_v17  ;;  %v1467_v1 = vpop.f32.mrb[3].mxu0 }
 0x5cb   : > { %v988_v2 = vadd.f32 %v987_v63, %v984_v0 }
 0x5cd   : > { %v1407_v3 = vmul.f32 -1.442695, %v988_v2 }
 0x5cf   : > { %1568 = vpow2.f32 %v1407_v3 }
 0x5d9   : > { %v1569_v4 = vpop.eup %1568 }
 0x5da   : > { %v992_v5 = vadd.f32 1.0, %v1569_v4 }
 0x5dc   : > { %1570 = vrcp.f32 %v992_v5 }
 0x5e6   : > { %v1571_v6 = vpop.eup %1570 }
 0x5e7   : > { %1130 = vst.msk [vmem:[%s606_s24] sm:$0xf] %vm1129_vm0, %v1571_v6 }
 0x5e8   : > { %1641 = shalt.err (!%p1638_p13)
}
 0x5e9   : > { %s1642_s19 = scalar_lea.hbm %s2055_s8, 64  ;;  %s1646_s9 = scalar_lea.hbm %s2117_s16, 128 }
 0x5ea   : > { %p1643_p0 = scmp.ne.s32.totalorder %s2055_s8, %s1642_s19  ;;  %p1647_p4 = scmp.lt.u32.totalorder %s2055_s8, %s2117_s16 }
 0x5eb   : > { %p1648_p3 = scmp.lt.u32.totalorder %s1646_s9, %s1642_s19  ;;  %p1650_p8 = scmp.lt.u32.totalorder %s1642_s19, %s2055_s8 }
 0x5ec   : > { %p1644_p1 = pnand %p1643_p0, %p1842_p5 }
 0x5ed   : > { %p1649_p7 = por %p1648_p3, %p1647_p4 }
 0x5ee   : > { %p1645_p2 = pneg %p1644_p1 }
 0x5ef   : > { %p1651_p9 = por %p1650_p8, %p1649_p7 }
 0x5f1   : > { %p1652_p10 = pnand %p1651_p9, %p1645_p2 }
 0x5f3   : > { %1655 = shalt.err (!%p1652_p10)
}
 0x5f4   : > { %1491 = dma.vmem_to_hbm [thread:$0]  (%p1842_p5), %s2057_s21, 64, %s2055_s8, %s1142_s22  }
 0x5f5 PF: > { %p1507_p11 = scmp.ge.s32.totalorder %s1694_s30, 2  ;;  %s1223_s25 = sand.u32 1, %s1682_s27  }
 0x5f6   : > { %s1224_s3 = scalar_lea.sflag [#allocation3], %s1223_s25 }
 0x5f7   : > { %p1498_p12 = pnand %p1507_p11, %p1846_p6 }
 0x5f9   : > { %1673 = dma.done.wait (!%p1498_p12), %s1224_s3, 64  }
 0x5fa   : > { %1675 = vsyncadd (!%p1498_p12), %s1224_s3, 4294967232  ;;  %s2150_s0 = sadd.s32 4294967294, %s1694_s30  }
 0x5fb   : > { %s1232_s20 = sand.u32 1, %s2150_s0  }
 0x5fc   : > { %s1233_s5 = scalar_lea.sflag [#allocation5], %s1232_s20 }
 0x5fd   : > { %1677 = dma.done.wait (!%p1498_p12), %s1233_s5, 128  }
 0x5fe   : > { %1679 = vsyncadd (!%p1498_p12), %s1233_s5, 4294967168  ;;  %s2151_s2 = sld [smem:[#allocation9_spill]]  ;;  %p32_p5 = scmp.ge.s32.totalorder %s1827_s1, 4  }
 0x5ff   : > { %s2152_s27 = smov %s1686_s28  ;;  %s2153_s28 = smov %s1690_s29 }
 0x600   : > { %s2155_s30 = smov %s1827_s1  ;;  %34 = sbr.rel (!%p32_p5) target bundleno = 16 (0x10), region = 173 }
 0x604   : > { %s2154_s29 = smov %s2151_s2 }
 0x607   :  { %1247 = vsyncpa [#allocation3], 1 }
 0x608   :  { %1249 = vsyncpa [#allocation3 + $0x1], 1 }
 0x609   :  { %1250 = vsyncpa [#allocation5], 1 }
 0x60a   :  { %1252 = vsyncpa [#allocation5 + $0x1], 1 }

</bundles_post_ra>
